<compile_context>
chip_gen: v6e
topology: v6e:2x2x1
jax: 0.10.0
libtpu: 0.0.40
codegen_flags: <defaults>
</compile_context>

<pallas_src>
import math
from functools import partial

import jax
import jax.numpy as jnp
from jax.experimental import pallas as pl
from jax.experimental.pallas import tpu as pltpu

_QKV_STRIDE = 128   # fused q/k/v projection: q, k, v each in its own 128-lane block
_GATE_STRIDE = 128  # LSTM: each gate in its own 128-lane block (hidden padded to 128 lanes)
_VIEW_STRIDE = 128  # fc1 + .view(-1,5,72): each view row in its own 128-lane block
_CAT_STRIDE = 128   # tail concat: covr / gcn / lstm pieces at lane offsets 0 / 128 / 256


# ----------------------------------------------------------------------------------
# Fused forward kernel (single invocation, no grid, everything VMEM resident)
# ----------------------------------------------------------------------------------
def _fused_forward_kernel(
    num_blocks, eps, n_nodes, cat_feat,
    # inputs
    x_ref,        # (B*T, C)   cov_inputs.permute(0,2,1) flattened over (B, T)
    seq_ref,      # (B*5, 72)  inp_seq flattened over (B, node)
    aprop_ref,    # (B*5, B*5) block-diagonal normalized GCN propagation matrix
    lmask_ref,    # (B*5, B*5) Luong additive mask (0 within a batch block, -1e9 elsewhere)
    hsum_ref,     # (C, heads) 0/1: sums the lanes belonging to one head
    hbc_ref,      # (heads, C) 0/1: broadcasts a per-head scalar back to its lanes
    wqkv_ref, bqkv_ref,            # (C, 3*128), (1, 3*128)  [1/sqrt(D) folded into Q]
    wo_ref, bo_ref,                # (C, C), (1, C)
    lnw_ref, lnb_ref,              # (T, C), (T, C)
    fc1e_ref, fc1w_ref, fc1b_ref,  # (C, 5*128), (T, 5*128), (1, 5*128)
    g1w_ref, g1b_ref,              # (72, g1), (1, g1)
    g2w_ref, g2b_ref,              # (g1, 128), (1, 128)  [padded to a 128-lane block]
    wih_ref, whh_ref, blstm_ref,   # (72, 512), (128, 512), (1, 512)
    wstack_ref,                    # (384, 640) per-view-node final-FC weights, lane blocked
    fmask_ref,                     # (B*5, 640) 0/1 node-block mask
    ssum_ref,                      # (B, B*5)   0/1 per-batch row-sum matrix
    rlane_ref,                     # (640, 96)  folds the 5 lane blocks onto the output lanes
    bf_ref,                        # (1, 96)
    # output
    out_ref,                       # (B, 96)
    # scratch
    xb_ref,                        # (B*5, 3*128) tail concat buffer (lane-aligned pieces)
):
    f32 = jnp.float32
    B = out_ref.shape[0]
    BT, C = x_ref.shape
    T = BT // B

    # ---- transformer encoder x num_blocks; all matmuls batched over B -------------
    w_qkv = wqkv_ref[...]
    b_qkv = bqkv_ref[...]
    w_out = wo_ref[...]
    b_out = bo_ref[...]
    ln_w = lnw_ref[...]
    ln_b = lnb_ref[...]
    hsum = hsum_ref[...]
    hbc = hbc_ref[...]

    x = x_ref[...]                                                       # (B*T, C)
    for _ in range(num_blocks):
        qkv = jnp.dot(x, w_qkv, preferred_element_type=f32) + b_qkv      # (B*T, 384)
        q = qkv[:, 0:C]                          # scale already folded into the weights
        k = qkv[:, _QKV_STRIDE:_QKV_STRIDE + C]
        v = qkv[:, 2 * _QKV_STRIDE:2 * _QKV_STRIDE + C]

        # all (l, m) query/key pairs stacked along sublanes -> ONE hsum matmul
        qk = jnp.concatenate(
            [q[l * T:(l + 1) * T, :] * k[m * T:(m + 1) * T, :]
             for l in range(B) for m in range(B)], axis=0)               # (B*B*T, C)
        scores = jnp.dot(qk, hsum, preferred_element_type=f32)           # (B*B*T, nh)

        # softmax over the key (m) axis per (query l, position n, head h)
        w_pairs = []
        for l in range(B):
            s_l = [scores[(l * B + m) * T:(l * B + m + 1) * T, :] for m in range(B)]
            mx = s_l[0]
            for m in range(1, B):
                mx = jnp.maximum(mx, s_l[m])
            es = [jnp.exp(s - mx) for s in s_l]
            den = es[0]
            for m in range(1, B):
                den = den + es[m]
            inv = pl.reciprocal(den, approx=True)
            w_pairs.extend([e * inv for e in es])
        w_all = jnp.concatenate(w_pairs, axis=0)                         # (B*B*T, nh)
        wbc = jnp.dot(w_all, hbc, preferred_element_type=f32)            # (B*B*T, C)

        attn = []
        for l in range(B):
            o = wbc[(l * B) * T:(l * B + 1) * T, :] * v[0:T, :]
            for m in range(1, B):
                o = o + wbc[(l * B + m) * T:(l * B + m + 1) * T, :] * v[m * T:(m + 1) * T, :]
            attn.append(o)
        attn = jnp.concatenate(attn, axis=0)                             # (B*T, C)

        res = jnp.dot(attn, w_out, preferred_element_type=f32) + b_out + x
        # layer_norm1 + conv1d_1/conv1d_2 branch is dead code in the reference forward.
        new_x = []
        for b in range(B):
            r = res[b * T:(b + 1) * T, :]
            mu = jnp.mean(r)
            var = jnp.mean((r - mu) ** 2)
            ln = (r - mu) * jax.lax.rsqrt(var + eps) * ln_w + ln_b
            new_x.append(ln + r)
        x = jnp.concatenate(new_x, axis=0)

    # ---- fc1 over the T axis fused with the raw .view(-1, 5, C), 128-lane blocked --
    r_exp = jnp.dot(x, fc1e_ref[...], preferred_element_type=f32)        # (B*T, 640)
    fc1_w = fc1w_ref[...]
    fc1_b = fc1b_ref[...]
    for b in range(B):
        flat = jnp.sum(r_exp[b * T:(b + 1) * T, :] * fc1_w,
                       axis=0, keepdims=True) + fc1_b                    # (1, 640)
        for i in range(n_nodes):
            xb_ref[pl.ds(b * n_nodes + i, 1), 0:_CAT_STRIDE] = \
                flat[:, i * _VIEW_STRIDE:(i + 1) * _VIEW_STRIDE]

    # ---- two GCN layers, batched across B via the block-diagonal propagation -------
    seq = seq_ref[...]                                                   # (B*5, 72)
    a_prop = aprop_ref[...]
    h1 = jnp.dot(a_prop, jnp.dot(seq, g1w_ref[...], preferred_element_type=f32),
                 preferred_element_type=f32) + g1b_ref[...]
    h1 = jnp.maximum(h1, 0.0)
    h2 = jnp.dot(a_prop, jnp.dot(h1, g2w_ref[...], preferred_element_type=f32),
                 preferred_element_type=f32) + g2b_ref[...]
    xb_ref[:, _CAT_STRIDE:2 * _CAT_STRIDE] = jnp.maximum(h2, 0.0)        # pad lanes stay 0

    # ---- LSTM over the leading axis of inp_seq (seq_len == B) ----------------------
    gx = jnp.dot(seq, wih_ref[...], preferred_element_type=f32) + blstm_ref[...]  # (B*5,512)
    whh = whh_ref[...]
    h = jnp.zeros((n_nodes, _GATE_STRIDE), f32)
    c = jnp.zeros((n_nodes, _GATE_STRIDE), f32)
    for t in range(B):   # short, fully unrolled; all gate slices are 128-lane aligned
        gates = gx[t * n_nodes:(t + 1) * n_nodes, :] + \
            jnp.dot(h, whh, preferred_element_type=f32)
        i_g = jax.nn.sigmoid(gates[:, 0:_GATE_STRIDE])
        f_g = jax.nn.sigmoid(gates[:, _GATE_STRIDE:2 * _GATE_STRIDE])
        g_g = jnp.tanh(gates[:, 2 * _GATE_STRIDE:3 * _GATE_STRIDE])
        o_g = jax.nn.sigmoid(gates[:, 3 * _GATE_STRIDE:4 * _GATE_STRIDE])
        c = f_g * c + i_g * g_g
        h = o_g * jnp.tanh(c)             # pad lanes remain exactly 0
        xb_ref[pl.ds(t * n_nodes, n_nodes), 2 * _CAT_STRIDE:3 * _CAT_STRIDE] = h

    # ---- Luong self-attention (batched over B) + final FC (flatten folded in) ------
    xb = xb_ref[...]                                                     # (B*5, 384)
    scale = 1.0 / math.sqrt(cat_feat)
    sc = jax.lax.dot_general(xb, xb, (((1,), (1,)), ((), ())),
                             preferred_element_type=f32) * scale + lmask_ref[...]
    sc = sc - jnp.max(sc, axis=-1, keepdims=True)
    p = jnp.exp(sc)
    p = p * pl.reciprocal(jnp.sum(p, axis=-1, keepdims=True), approx=True)
    att = jnp.dot(p, xb, preferred_element_type=f32)                     # (B*5, 384)

    z = jnp.dot(att, wstack_ref[...], preferred_element_type=f32) * fmask_ref[...]  # (B*5,640)
    out640 = jnp.dot(ssum_ref[...], z, preferred_element_type=f32)       # (B, 640)
    out_ref[...] = jnp.dot(out640, rlane_ref[...],
                           preferred_element_type=f32) + bf_ref[...]


# ----------------------------------------------------------------------------------
# JAX glue (tiny layout reshapes + the 5x5 GCN normalization + B-dependent constants)
# ----------------------------------------------------------------------------------
def gcn_propagation_matrix(inp_lap):
    """Dense equivalent of dense_to_sparse + add_self_loops + gcn_norm (edge weights = 1)."""
    n = inp_lap.shape[0]
    adj = (inp_lap != 0).astype(jnp.float32)
    eye = jnp.eye(n, dtype=jnp.float32)
    a_hat = jnp.where(eye > 0, 1.0, adj)        # off-diagonal edges + one self loop per node
    deg = a_hat.sum(axis=0)
    dinv = jax.lax.rsqrt(deg)
    a_norm = dinv[:, None] * a_hat * dinv[None, :]
    return a_norm.T


def graph_water_transformer_cov(params, cov_inputs, inp_seq, inp_lap, cfg):
    C, T = cfg["input_shape"]
    B = cov_inputs.shape[0]
    n_nodes = inp_seq.shape[1]
    cat_feat = C + cfg["gcn_unit2"] + cfg["lstm_units"]
    out_dim = params["final_b"].shape[1]

    # tiny layout glue (free XLA reshapes / transpose)
    x_slab = jnp.transpose(cov_inputs.astype(jnp.float32), (0, 2, 1)).reshape(B * T, C)
    seq_slab = inp_seq.astype(jnp.float32).reshape(B * n_nodes, C)

    a_prop = gcn_propagation_matrix(inp_lap.astype(jnp.float32))
    a_prop_bd = jnp.kron(jnp.eye(B, dtype=jnp.float32), a_prop)          # (B*5, B*5)

    bid = jnp.repeat(jnp.arange(B), n_nodes)                             # row -> batch id
    lmask = jnp.where(bid[:, None] == bid[None, :], 0.0, -1e9).astype(jnp.float32)

    node = jnp.arange(B * n_nodes) % n_nodes
    col_blk = jnp.arange(n_nodes * _CAT_STRIDE) // _CAT_STRIDE
    fmask = (node[:, None] == col_blk[None, :]).astype(jnp.float32)      # (B*5, 640)
    ssum = (jnp.arange(B)[:, None] == bid[None, :]).astype(jnp.float32)  # (B, B*5)

    args = (
        x_slab, seq_slab, a_prop_bd, lmask,
        params["head_sum"], params["head_bcast"],
        params["qkv_w"], params["qkv_b"],
        params["out_proj_w_t"], params["out_proj_b"],
        params["ln2_w"], params["ln2_b"],
        params["fc1_expand"], params["fc1_w_pad"], params["fc1_b_pad"],
        params["gcn1_w_t"], params["gcn1_b"],
        params["gcn2_w_pad"], params["gcn2_b_pad"],
        params["lstm_w_ih_pad"], params["lstm_w_hh_pad"], params["lstm_b_pad"],
        params["final_w_stack"], fmask, ssum, params["final_lane_fold"], params["final_b"],
    )
    kernel = partial(_fused_forward_kernel, cfg["num_transformer_blocks"],
                     cfg["epsilon"], n_nodes, cat_feat)
    return pl.pallas_call(
        kernel,
        out_shape=jax.ShapeDtypeStruct((B, out_dim), jnp.float32),
        in_specs=[pl.BlockSpec(memory_space=pltpu.MemorySpace.VMEM)] * len(args),
        out_specs=pl.BlockSpec(memory_space=pltpu.MemorySpace.VMEM),
        scratch_shapes=[pltpu.VMEM((B * n_nodes, 3 * _CAT_STRIDE), jnp.float32)],
        compiler_params=pltpu.CompilerParams(vmem_limit_bytes=16 * 1024 * 1024),
        cost_estimate=pl.CostEstimate(flops=12_000_000, transcendentals=8_000,
                                      bytes_accessed=2_600_000),
    )(*args)


# ----------------------------------------------------------------------------------
# Parameters: natural ("torch-like") layout + one-time packing into kernel layout
# ----------------------------------------------------------------------------------
def init_params(key, cfg):
    C, T = cfg["input_shape"]
    H = cfg["lstm_units"]
    g1, g2 = cfg["gcn_unit1"], cfg["gcn_unit2"]
    ks = jax.random.split(key, 17)

    def rnd(k, shape, scale=0.1):
        return scale * jax.random.normal(k, shape, dtype=jnp.float32)

    return dict(
        in_proj_w_t=rnd(ks[0], (C, 3 * C)), in_proj_b=rnd(ks[1], (3 * C,)),
        out_proj_w_t=rnd(ks[2], (C, C)), out_proj_b=rnd(ks[3], (C,)),
        ln2_w=1.0 + rnd(ks[4], (T, C)), ln2_b=rnd(ks[5], (T, C)),
        fc1_w_t=rnd(ks[6], (T, 5)), fc1_b=rnd(ks[7], (5,)),
        gcn1_w_t=rnd(ks[8], (C, g1)), gcn1_b=rnd(ks[9], (g1,)),
        gcn2_w_t=rnd(ks[10], (g1, g2)), gcn2_b=rnd(ks[11], (g2,)),
        lstm_w_ih_t=rnd(ks[12], (C, 4 * H)), lstm_w_hh_t=rnd(ks[13], (H, 4 * H)),
        lstm_b=rnd(ks[14], (4 * H,)),                      # b_ih + b_hh combined
        final_w_t=rnd(ks[15], (5 * (C + g2 + H), 96)), final_b=rnd(ks[16], (96,)),
    )


def pack_params(base, cfg):
    """One-time packing into the kernel's 128-lane-aligned VMEM layout."""
    C, T = cfg["input_shape"]
    nh = cfg["num_heads"]
    D = C // nh
    H = cfg["lstm_units"]
    g1, g2 = cfg["gcn_unit1"], cfg["gcn_unit2"]
    q_scale = 1.0 / math.sqrt(D)

    head_sum = (jnp.arange(C)[:, None] // D == jnp.arange(nh)[None, :]).astype(jnp.float32)

    # fused QKV projection: q/k/v at lane offsets 0/128/256, 1/sqrt(D) folded into Q
    w_in, b_in = base["in_proj_w_t"], base["in_proj_b"]
    wqkv = jnp.zeros((C, 3 * _QKV_STRIDE), jnp.float32)
    bqkv = jnp.zeros((1, 3 * _QKV_STRIDE), jnp.float32)
    for g, s in enumerate((q_scale, 1.0, 1.0)):
        wqkv = wqkv.at[:, g * _QKV_STRIDE:g * _QKV_STRIDE + C].set(s * w_in[:, g * C:(g + 1) * C])
        bqkv = bqkv.at[0, g * _QKV_STRIDE:g * _QKV_STRIDE + C].set(s * b_in[g * C:(g + 1) * C])

    # fc1 + .view(-1,5,C): view row i occupies lanes [i*128, i*128+C) of the flat vector
    pos = jnp.arange(5 * _VIEW_STRIDE)
    row, lane = pos // _VIEW_STRIDE, pos % _VIEW_STRIDE
    valid = lane < C
    flatpos = row * C + lane
    c_idx = jnp.where(valid, flatpos // 5, 0)
    k_idx = jnp.where(valid, flatpos % 5, 0)
    fc1_expand = ((jnp.arange(C)[:, None] == c_idx[None, :]) & valid[None, :]).astype(jnp.float32)
    fc1_w_pad = jnp.where(valid[None, :], base["fc1_w_t"][:, k_idx], 0.0)
    fc1_b_pad = jnp.where(valid, base["fc1_b"][k_idx], 0.0).reshape(1, -1)

    # GCN layer 2 padded to a full 128-lane block (valid cols [0, g2), pad lanes zero)
    g2w_pad = jnp.zeros((g1, _CAT_STRIDE), jnp.float32).at[:, :g2].set(base["gcn2_w_t"])
    g2b_pad = jnp.zeros((1, _CAT_STRIDE), jnp.float32).at[0, :g2].set(base["gcn2_b"])

    # LSTM: gates at 128-lane offsets, hidden state padded to 128 lanes (pad stays 0)
    def pad_gates(w):
        out = jnp.zeros(w.shape[:-1] + (4 * _GATE_STRIDE,), jnp.float32)
        for g in range(4):
            out = out.at[..., g * _GATE_STRIDE:g * _GATE_STRIDE + H].set(
                w[..., g * H:(g + 1) * H])
        return out
    wih_pad = pad_gates(base["lstm_w_ih_t"])
    whh_pad = jnp.zeros((_GATE_STRIDE, 4 * _GATE_STRIDE), jnp.float32)
    whh_pad = whh_pad.at[:H, :].set(pad_gates(base["lstm_w_hh_t"]))
    blstm_pad = pad_gates(base["lstm_b"].reshape(1, -1))

    # final FC: the 96-wide weight chunk of view node i lives at lanes [i*128, i*128+96)
    feat = C + g2 + H
    p = jnp.arange(3 * _CAT_STRIDE)
    blk, off = p // _CAT_STRIDE, p % _CAT_STRIDE
    widths = jnp.array([C, g2, H])
    starts = jnp.array([0, C, C + g2])
    p_valid = off < widths[blk]
    f_idx = jnp.where(p_valid, starts[blk] + off, 0)
    wfin = base["final_w_t"]
    wstack = jnp.zeros((3 * _CAT_STRIDE, 5 * _CAT_STRIDE), jnp.float32)
    for i in range(5):
        chunk = jnp.where(p_valid[:, None], wfin[i * feat + f_idx, :], 0.0)
        wstack = wstack.at[:, i * _CAT_STRIDE:i * _CAT_STRIDE + 96].set(chunk)
    rlane = jnp.zeros((5 * _CAT_STRIDE, 96), jnp.float32)
    for i in range(5):
        rlane = rlane.at[i * _CAT_STRIDE:i * _CAT_STRIDE + 96, :].set(
            jnp.eye(96, dtype=jnp.float32))

    return dict(
        head_sum=head_sum, head_bcast=head_sum.T,
        qkv_w=wqkv, qkv_b=bqkv,
        out_proj_w_t=base["out_proj_w_t"], out_proj_b=base["out_proj_b"].reshape(1, -1),
        ln2_w=base["ln2_w"], ln2_b=base["ln2_b"],
        fc1_expand=fc1_expand, fc1_w_pad=fc1_w_pad, fc1_b_pad=fc1_b_pad,
        gcn1_w_t=base["gcn1_w_t"], gcn1_b=base["gcn1_b"].reshape(1, -1),
        gcn2_w_pad=g2w_pad, gcn2_b_pad=g2b_pad,
        lstm_w_ih_pad=wih_pad, lstm_w_hh_pad=whh_pad, lstm_b_pad=blstm_pad,
        final_w_stack=wstack, final_lane_fold=rlane, final_b=base["final_b"].reshape(1, -1),
    )


# ----------------------------------------------------------------------------------
# Pure-JAX reference of the PyTorch forward (numerical check only)
# ----------------------------------------------------------------------------------
def reference_forward(base, cov_inputs, inp_seq, inp_lap, cfg):
    C, T = cfg["input_shape"]
    nh = cfg["num_heads"]
    D = C // nh
    eps = cfg["epsilon"]
    H = cfg["lstm_units"]
    B = cov_inputs.shape[0]

    def encoder_block(cov):
        x = jnp.transpose(cov, (0, 2, 1))                           # (L, N, E)
        L, N, E = x.shape
        qkv = x @ base["in_proj_w_t"] + base["in_proj_b"]
        q, k, v = jnp.split(qkv, 3, axis=-1)

        def heads(t):
            return t.reshape(L, N, nh, D).transpose(1, 2, 0, 3)     # (N, nh, L, D)

        qh = heads(q) * (1.0 / math.sqrt(D))
        kh = heads(k)
        vh = heads(v)
        s = jnp.einsum("nhld,nhmd->nhlm", qh, kh)
        p = jax.nn.softmax(s, axis=-1)
        oh = jnp.einsum("nhlm,nhmd->nhld", p, vh)
        attn = oh.transpose(2, 0, 1, 3).reshape(L, N, E)
        attn = attn @ base["out_proj_w_t"] + base["out_proj_b"]
        res = attn + x
        mu = jnp.mean(res, axis=(1, 2), keepdims=True)
        var = jnp.mean((res - mu) ** 2, axis=(1, 2), keepdims=True)
        ln = (res - mu) * jax.lax.rsqrt(var + eps) * base["ln2_w"] + base["ln2_b"]
        res = ln + res
        return jnp.transpose(res, (0, 2, 1))

    cov = cov_inputs
    for _ in range(cfg["num_transformer_blocks"]):
        cov = encoder_block(cov)
    cov = cov @ base["fc1_w_t"] + base["fc1_b"]                     # (B, C, 5)
    cov_reshape = cov.reshape(-1, 5, C)

    a_prop = gcn_propagation_matrix(inp_lap)
    h1 = jax.nn.relu(jnp.einsum("ij,bjf->bif", a_prop, inp_seq @ base["gcn1_w_t"])
                     + base["gcn1_b"])
    h2 = jax.nn.relu(jnp.einsum("ij,bjf->bif", a_prop, h1 @ base["gcn2_w_t"])
                     + base["gcn2_b"])

    hs = jnp.zeros((inp_seq.shape[1], H), jnp.float32)
    cs = jnp.zeros((inp_seq.shape[1], H), jnp.float32)
    outs = []
    for t in range(inp_seq.shape[0]):
        g = inp_seq[t] @ base["lstm_w_ih_t"] + hs @ base["lstm_w_hh_t"] + base["lstm_b"]
        i_g = jax.nn.sigmoid(g[:, 0 * H:1 * H])
        f_g = jax.nn.sigmoid(g[:, 1 * H:2 * H])
        g_g = jnp.tanh(g[:, 2 * H:3 * H])
        o_g = jax.nn.sigmoid(g[:, 3 * H:4 * H])
        cs = f_g * cs + i_g * g_g
        hs = o_g * jnp.tanh(cs)
        outs.append(hs)
    xx = jnp.stack(outs, axis=0)

    xcat = jnp.concatenate([cov_reshape, h2, xx], axis=2)
    dim = xcat.shape[-1]
    s = jnp.einsum("bik,bjk->bij", xcat, xcat) / math.sqrt(dim)
    p = jax.nn.softmax(s, axis=-1)
    att = jnp.einsum("bij,bjk->bik", p, xcat)
    return att.reshape(B, -1) @ base["final_w_t"] + base["final_b"]


# ----------------------------------------------------------------------------------
# demo
# ----------------------------------------------------------------------------------
if __name__ == "__main__":
    cfg = dict(
        input_shape=(72, 8),        # (C, T)
        num_heads=4,
        dropout=0.1,                # eval mode -> identity
        epsilon=1e-5,
        lstm_units=36,
        num_transformer_blocks=2,
        gcn_unit1=48,
        gcn_unit2=36,               # 72 + 36 + 36 = 144 -> flatten 5*144 = 720
        ff_dim=16,                  # unused: dead conv1d branch
    )
    B = 2

    k_cov, k_seq, k_par = jax.random.split(jax.random.PRNGKey(0), 3)
    cov_inputs = jax.random.normal(
        k_cov, (B, cfg["input_shape"][0], cfg["input_shape"][1]), dtype=jnp.float32)
    inp_seq = jax.random.normal(k_seq, (B, 5, 72), dtype=jnp.float32)

    # symmetric 5-node ring adjacency, zero diagonal
    inp_lap = jnp.zeros((5, 5), jnp.float32)
    for a, b in [(0, 1), (1, 2), (2, 3), (3, 4), (4, 0)]:
        inp_lap = inp_lap.at[a, b].set(1.0).at[b, a].set(1.0)

    base_params = init_params(k_par, cfg)
    packed_params = pack_params(base_params, cfg)

    fwd = jax.jit(partial(graph_water_transformer_cov, cfg=cfg))
    out = jax.block_until_ready(fwd(packed_params, cov_inputs, inp_seq, inp_lap))
    assert out.shape == (B, 96) and out.dtype == jnp.float32

    ref_fn = jax.jit(partial(reference_forward, cfg=cfg))
    ref = jax.block_until_ready(ref_fn(base_params, cov_inputs, inp_seq, inp_lap))
    max_err = float(jnp.max(jnp.abs(out - ref)))
    assert max_err < 2e-2, f"kernel vs reference mismatch: max abs err = {max_err}"

    print("KERNEL_OK")
</pallas_src>

<mosaic_0001>
module attributes {stable_mosaic.version = 11 : i64} {
  func.func @_fused_forward_kernel(%arg0: memref<16x72xf32, #tpu.memory_space<vmem>>, %arg1: memref<10x72xf32, #tpu.memory_space<vmem>>, %arg2: memref<10x10xf32, #tpu.memory_space<vmem>>, %arg3: memref<10x10xf32, #tpu.memory_space<vmem>>, %arg4: memref<72x4xf32, #tpu.memory_space<vmem>>, %arg5: memref<4x72xf32, #tpu.memory_space<vmem>>, %arg6: memref<72x384xf32, #tpu.memory_space<vmem>>, %arg7: memref<1x384xf32, #tpu.memory_space<vmem>>, %arg8: memref<72x72xf32, #tpu.memory_space<vmem>>, %arg9: memref<1x72xf32, #tpu.memory_space<vmem>>, %arg10: memref<8x72xf32, #tpu.memory_space<vmem>>, %arg11: memref<8x72xf32, #tpu.memory_space<vmem>>, %arg12: memref<72x640xf32, #tpu.memory_space<vmem>>, %arg13: memref<8x640xf32, #tpu.memory_space<vmem>>, %arg14: memref<1x640xf32, #tpu.memory_space<vmem>>, %arg15: memref<72x48xf32, #tpu.memory_space<vmem>>, %arg16: memref<1x48xf32, #tpu.memory_space<vmem>>, %arg17: memref<48x128xf32, #tpu.memory_space<vmem>>, %arg18: memref<1x128xf32, #tpu.memory_space<vmem>>, %arg19: memref<72x512xf32, #tpu.memory_space<vmem>>, %arg20: memref<128x512xf32, #tpu.memory_space<vmem>>, %arg21: memref<1x512xf32, #tpu.memory_space<vmem>>, %arg22: memref<384x640xf32, #tpu.memory_space<vmem>>, %arg23: memref<10x640xf32, #tpu.memory_space<vmem>>, %arg24: memref<2x10xf32, #tpu.memory_space<vmem>>, %arg25: memref<640x96xf32, #tpu.memory_space<vmem>>, %arg26: memref<1x96xf32, #tpu.memory_space<vmem>>, %arg27: memref<2x96xf32, #tpu.memory_space<vmem>>, %arg28: memref<10x384xf32, #tpu.memory_space<vmem>>) attributes {dimension_semantics = [], scalar_prefetch = 0 : i64, scratch_operands = 1 : i64, tpu.core_type = #tpu.core_type<tc>} {
    %c0 = arith.constant 0 : index
    %c0_0 = arith.constant 0 : index
    %0 = vector.load %arg6[%c0, %c0_0] : memref<72x384xf32, #tpu.memory_space<vmem>>, vector<72x384xf32>
    %c0_1 = arith.constant 0 : index
    %c0_2 = arith.constant 0 : index
    %1 = vector.load %arg7[%c0_1, %c0_2] : memref<1x384xf32, #tpu.memory_space<vmem>>, vector<1x384xf32>
    %c0_3 = arith.constant 0 : index
    %c0_4 = arith.constant 0 : index
    %2 = vector.load %arg8[%c0_3, %c0_4] : memref<72x72xf32, #tpu.memory_space<vmem>>, vector<72x72xf32>
    %c0_5 = arith.constant 0 : index
    %c0_6 = arith.constant 0 : index
    %3 = vector.load %arg9[%c0_5, %c0_6] : memref<1x72xf32, #tpu.memory_space<vmem>>, vector<1x72xf32>
    %c0_7 = arith.constant 0 : index
    %c0_8 = arith.constant 0 : index
    %4 = vector.load %arg10[%c0_7, %c0_8] : memref<8x72xf32, #tpu.memory_space<vmem>>, vector<8x72xf32>
    %c0_9 = arith.constant 0 : index
    %c0_10 = arith.constant 0 : index
    %5 = vector.load %arg11[%c0_9, %c0_10] : memref<8x72xf32, #tpu.memory_space<vmem>>, vector<8x72xf32>
    %c0_11 = arith.constant 0 : index
    %c0_12 = arith.constant 0 : index
    %6 = vector.load %arg4[%c0_11, %c0_12] : memref<72x4xf32, #tpu.memory_space<vmem>>, vector<72x4xf32>
    %c0_13 = arith.constant 0 : index
    %c0_14 = arith.constant 0 : index
    %7 = vector.load %arg5[%c0_13, %c0_14] : memref<4x72xf32, #tpu.memory_space<vmem>>, vector<4x72xf32>
    %c0_15 = arith.constant 0 : index
    %c0_16 = arith.constant 0 : index
    %8 = vector.load %arg0[%c0_15, %c0_16] : memref<16x72xf32, #tpu.memory_space<vmem>>, vector<16x72xf32>
    %cst = arith.constant dense<0.000000e+00> : vector<16x384xf32>
    %9 = tpu.matmul %8, %0, %cst {dimension_numbers = #tpu.dot_dimension_numbers<[1], [0], [0], [1], [0, 0, 1, 1], [], []>} : vector<16x72xf32>, vector<72x384xf32>, vector<16x384xf32> -> vector<16x384xf32>
    %10 = vector.broadcast %1 : vector<1x384xf32> to vector<16x384xf32>
    %11 = arith.addf %9, %10 : vector<16x384xf32>
    %12 = vector.extract_strided_slice %11 {offsets = [0, 0], sizes = [16, 72], strides = [1, 1]} : vector<16x384xf32> to vector<16x72xf32>
    %13 = vector.extract_strided_slice %11 {offsets = [0, 128], sizes = [16, 72], strides = [1, 1]} : vector<16x384xf32> to vector<16x72xf32>
    %14 = vector.extract_strided_slice %11 {offsets = [0, 256], sizes = [16, 72], strides = [1, 1]} : vector<16x384xf32> to vector<16x72xf32>
    %15 = vector.extract_strided_slice %12 {offsets = [0, 0], sizes = [8, 72], strides = [1, 1]} : vector<16x72xf32> to vector<8x72xf32>
    %16 = vector.extract_strided_slice %13 {offsets = [0, 0], sizes = [8, 72], strides = [1, 1]} : vector<16x72xf32> to vector<8x72xf32>
    %17 = arith.mulf %15, %16 : vector<8x72xf32>
    %18 = vector.extract_strided_slice %12 {offsets = [0, 0], sizes = [8, 72], strides = [1, 1]} : vector<16x72xf32> to vector<8x72xf32>
    %19 = vector.extract_strided_slice %13 {offsets = [8, 0], sizes = [8, 72], strides = [1, 1]} : vector<16x72xf32> to vector<8x72xf32>
    %20 = arith.mulf %18, %19 : vector<8x72xf32>
    %21 = vector.extract_strided_slice %12 {offsets = [8, 0], sizes = [8, 72], strides = [1, 1]} : vector<16x72xf32> to vector<8x72xf32>
    %22 = vector.extract_strided_slice %13 {offsets = [0, 0], sizes = [8, 72], strides = [1, 1]} : vector<16x72xf32> to vector<8x72xf32>
    %23 = arith.mulf %21, %22 : vector<8x72xf32>
    %24 = vector.extract_strided_slice %12 {offsets = [8, 0], sizes = [8, 72], strides = [1, 1]} : vector<16x72xf32> to vector<8x72xf32>
    %25 = vector.extract_strided_slice %13 {offsets = [8, 0], sizes = [8, 72], strides = [1, 1]} : vector<16x72xf32> to vector<8x72xf32>
    %26 = arith.mulf %24, %25 : vector<8x72xf32>
    %27 = tpu.concatenate %17, %20, %23, %26 in 0 : vector<8x72xf32>, vector<8x72xf32>, vector<8x72xf32>, vector<8x72xf32> -> vector<32x72xf32>
    %cst_17 = arith.constant dense<0.000000e+00> : vector<32x4xf32>
    %28 = tpu.matmul %27, %6, %cst_17 {dimension_numbers = #tpu.dot_dimension_numbers<[1], [0], [0], [1], [0, 0, 1, 1], [], []>} : vector<32x72xf32>, vector<72x4xf32>, vector<32x4xf32> -> vector<32x4xf32>
    %29 = vector.extract_strided_slice %28 {offsets = [0, 0], sizes = [8, 4], strides = [1, 1]} : vector<32x4xf32> to vector<8x4xf32>
    %30 = vector.extract_strided_slice %28 {offsets = [8, 0], sizes = [8, 4], strides = [1, 1]} : vector<32x4xf32> to vector<8x4xf32>
    %31 = arith.maximumf %29, %30 : vector<8x4xf32>
    %32 = arith.subf %29, %31 : vector<8x4xf32>
    %33 = math.exp %32 : vector<8x4xf32>
    %34 = arith.subf %30, %31 : vector<8x4xf32>
    %35 = math.exp %34 : vector<8x4xf32>
    %36 = arith.addf %33, %35 : vector<8x4xf32>
    %37 = tpu.reciprocal %36 {approx = true} : vector<8x4xf32> -> vector<8x4xf32>
    %38 = arith.mulf %33, %37 : vector<8x4xf32>
    %39 = arith.mulf %35, %37 : vector<8x4xf32>
    %40 = vector.extract_strided_slice %28 {offsets = [16, 0], sizes = [8, 4], strides = [1, 1]} : vector<32x4xf32> to vector<8x4xf32>
    %41 = vector.extract_strided_slice %28 {offsets = [24, 0], sizes = [8, 4], strides = [1, 1]} : vector<32x4xf32> to vector<8x4xf32>
    %42 = arith.maximumf %40, %41 : vector<8x4xf32>
    %43 = arith.subf %40, %42 : vector<8x4xf32>
    %44 = math.exp %43 : vector<8x4xf32>
    %45 = arith.subf %41, %42 : vector<8x4xf32>
    %46 = math.exp %45 : vector<8x4xf32>
    %47 = arith.addf %44, %46 : vector<8x4xf32>
    %48 = tpu.reciprocal %47 {approx = true} : vector<8x4xf32> -> vector<8x4xf32>
    %49 = arith.mulf %44, %48 : vector<8x4xf32>
    %50 = arith.mulf %46, %48 : vector<8x4xf32>
    %51 = tpu.concatenate %38, %39, %49, %50 in 0 : vector<8x4xf32>, vector<8x4xf32>, vector<8x4xf32>, vector<8x4xf32> -> vector<32x4xf32>
    %cst_18 = arith.constant dense<0.000000e+00> : vector<32x72xf32>
    %52 = tpu.matmul %51, %7, %cst_18 {dimension_numbers = #tpu.dot_dimension_numbers<[1], [0], [0], [1], [0, 0, 1, 1], [], []>} : vector<32x4xf32>, vector<4x72xf32>, vector<32x72xf32> -> vector<32x72xf32>
    %53 = vector.extract_strided_slice %52 {offsets = [0, 0], sizes = [8, 72], strides = [1, 1]} : vector<32x72xf32> to vector<8x72xf32>
    %54 = vector.extract_strided_slice %14 {offsets = [0, 0], sizes = [8, 72], strides = [1, 1]} : vector<16x72xf32> to vector<8x72xf32>
    %55 = arith.mulf %53, %54 : vector<8x72xf32>
    %56 = vector.extract_strided_slice %52 {offsets = [8, 0], sizes = [8, 72], strides = [1, 1]} : vector<32x72xf32> to vector<8x72xf32>
    %57 = vector.extract_strided_slice %14 {offsets = [8, 0], sizes = [8, 72], strides = [1, 1]} : vector<16x72xf32> to vector<8x72xf32>
    %58 = arith.mulf %56, %57 : vector<8x72xf32>
    %59 = arith.addf %55, %58 : vector<8x72xf32>
    %60 = vector.extract_strided_slice %52 {offsets = [16, 0], sizes = [8, 72], strides = [1, 1]} : vector<32x72xf32> to vector<8x72xf32>
    %61 = vector.extract_strided_slice %14 {offsets = [0, 0], sizes = [8, 72], strides = [1, 1]} : vector<16x72xf32> to vector<8x72xf32>
    %62 = arith.mulf %60, %61 : vector<8x72xf32>
    %63 = vector.extract_strided_slice %52 {offsets = [24, 0], sizes = [8, 72], strides = [1, 1]} : vector<32x72xf32> to vector<8x72xf32>
    %64 = vector.extract_strided_slice %14 {offsets = [8, 0], sizes = [8, 72], strides = [1, 1]} : vector<16x72xf32> to vector<8x72xf32>
    %65 = arith.mulf %63, %64 : vector<8x72xf32>
    %66 = arith.addf %62, %65 : vector<8x72xf32>
    %67 = tpu.concatenate %59, %66 in 0 : vector<8x72xf32>, vector<8x72xf32> -> vector<16x72xf32>
    %cst_19 = arith.constant dense<0.000000e+00> : vector<16x72xf32>
    %68 = tpu.matmul %67, %2, %cst_19 {dimension_numbers = #tpu.dot_dimension_numbers<[1], [0], [0], [1], [0, 0, 1, 1], [], []>} : vector<16x72xf32>, vector<72x72xf32>, vector<16x72xf32> -> vector<16x72xf32>
    %69 = vector.broadcast %3 : vector<1x72xf32> to vector<16x72xf32>
    %70 = arith.addf %68, %69 : vector<16x72xf32>
    %71 = arith.addf %70, %8 : vector<16x72xf32>
    %72 = vector.extract_strided_slice %71 {offsets = [0, 0], sizes = [8, 72], strides = [1, 1]} : vector<16x72xf32> to vector<8x72xf32>
    %73 = vector.shape_cast %72 : vector<8x72xf32> to vector<1x8x72xf32>
    %cst_20 = arith.constant dense<0.000000e+00> : vector<1xf32>
    %74 = vector.multi_reduction <add>, %73, %cst_20 [1, 2] : vector<1x8x72xf32> to vector<1xf32>
    %75 = vector.shape_cast %74 : vector<1xf32> to vector<1x1x1xf32>
    %76 = vector.extract %75[0, 0, 0] : f32 from vector<1x1x1xf32>
    %cst_21 = arith.constant 5.760000e+02 : f32
    %77 = arith.divf %76, %cst_21 : f32
    %78 = vector.broadcast %77 : f32 to vector<8x72xf32>
    %79 = arith.subf %72, %78 : vector<8x72xf32>
    %80 = arith.mulf %79, %79 : vector<8x72xf32>
    %81 = vector.shape_cast %80 : vector<8x72xf32> to vector<1x8x72xf32>
    %cst_22 = arith.constant dense<0.000000e+00> : vector<1xf32>
    %82 = vector.multi_reduction <add>, %81, %cst_22 [1, 2] : vector<1x8x72xf32> to vector<1xf32>
    %83 = vector.shape_cast %82 : vector<1xf32> to vector<1x1x1xf32>
    %84 = vector.extract %83[0, 0, 0] : f32 from vector<1x1x1xf32>
    %cst_23 = arith.constant 5.760000e+02 : f32
    %85 = arith.divf %84, %cst_23 : f32
    %86 = vector.broadcast %77 : f32 to vector<8x72xf32>
    %87 = arith.subf %72, %86 : vector<8x72xf32>
    %cst_24 = arith.constant 9.99999974E-6 : f32
    %88 = arith.addf %85, %cst_24 : f32
    %89 = math.rsqrt %88 : f32
    %90 = vector.broadcast %89 : f32 to vector<8x72xf32>
    %91 = arith.mulf %87, %90 : vector<8x72xf32>
    %92 = arith.mulf %91, %4 : vector<8x72xf32>
    %93 = arith.addf %92, %5 : vector<8x72xf32>
    %94 = arith.addf %93, %72 : vector<8x72xf32>
    %95 = vector.extract_strided_slice %71 {offsets = [8, 0], sizes = [8, 72], strides = [1, 1]} : vector<16x72xf32> to vector<8x72xf32>
    %96 = vector.shape_cast %95 : vector<8x72xf32> to vector<1x8x72xf32>
    %cst_25 = arith.constant dense<0.000000e+00> : vector<1xf32>
    %97 = vector.multi_reduction <add>, %96, %cst_25 [1, 2] : vector<1x8x72xf32> to vector<1xf32>
    %98 = vector.shape_cast %97 : vector<1xf32> to vector<1x1x1xf32>
    %99 = vector.extract %98[0, 0, 0] : f32 from vector<1x1x1xf32>
    %cst_26 = arith.constant 5.760000e+02 : f32
    %100 = arith.divf %99, %cst_26 : f32
    %101 = vector.broadcast %100 : f32 to vector<8x72xf32>
    %102 = arith.subf %95, %101 : vector<8x72xf32>
    %103 = arith.mulf %102, %102 : vector<8x72xf32>
    %104 = vector.shape_cast %103 : vector<8x72xf32> to vector<1x8x72xf32>
    %cst_27 = arith.constant dense<0.000000e+00> : vector<1xf32>
    %105 = vector.multi_reduction <add>, %104, %cst_27 [1, 2] : vector<1x8x72xf32> to vector<1xf32>
    %106 = vector.shape_cast %105 : vector<1xf32> to vector<1x1x1xf32>
    %107 = vector.extract %106[0, 0, 0] : f32 from vector<1x1x1xf32>
    %cst_28 = arith.constant 5.760000e+02 : f32
    %108 = arith.divf %107, %cst_28 : f32
    %109 = vector.broadcast %100 : f32 to vector<8x72xf32>
    %110 = arith.subf %95, %109 : vector<8x72xf32>
    %cst_29 = arith.constant 9.99999974E-6 : f32
    %111 = arith.addf %108, %cst_29 : f32
    %112 = math.rsqrt %111 : f32
    %113 = vector.broadcast %112 : f32 to vector<8x72xf32>
    %114 = arith.mulf %110, %113 : vector<8x72xf32>
    %115 = arith.mulf %114, %4 : vector<8x72xf32>
    %116 = arith.addf %115, %5 : vector<8x72xf32>
    %117 = arith.addf %116, %95 : vector<8x72xf32>
    %118 = tpu.concatenate %94, %117 in 0 : vector<8x72xf32>, vector<8x72xf32> -> vector<16x72xf32>
    %cst_30 = arith.constant dense<0.000000e+00> : vector<16x384xf32>
    %119 = tpu.matmul %118, %0, %cst_30 {dimension_numbers = #tpu.dot_dimension_numbers<[1], [0], [0], [1], [0, 0, 1, 1], [], []>} : vector<16x72xf32>, vector<72x384xf32>, vector<16x384xf32> -> vector<16x384xf32>
    %120 = vector.broadcast %1 : vector<1x384xf32> to vector<16x384xf32>
    %121 = arith.addf %119, %120 : vector<16x384xf32>
    %122 = vector.extract_strided_slice %121 {offsets = [0, 0], sizes = [16, 72], strides = [1, 1]} : vector<16x384xf32> to vector<16x72xf32>
    %123 = vector.extract_strided_slice %121 {offsets = [0, 128], sizes = [16, 72], strides = [1, 1]} : vector<16x384xf32> to vector<16x72xf32>
    %124 = vector.extract_strided_slice %121 {offsets = [0, 256], sizes = [16, 72], strides = [1, 1]} : vector<16x384xf32> to vector<16x72xf32>
    %125 = vector.extract_strided_slice %122 {offsets = [0, 0], sizes = [8, 72], strides = [1, 1]} : vector<16x72xf32> to vector<8x72xf32>
    %126 = vector.extract_strided_slice %123 {offsets = [0, 0], sizes = [8, 72], strides = [1, 1]} : vector<16x72xf32> to vector<8x72xf32>
    %127 = arith.mulf %125, %126 : vector<8x72xf32>
    %128 = vector.extract_strided_slice %122 {offsets = [0, 0], sizes = [8, 72], strides = [1, 1]} : vector<16x72xf32> to vector<8x72xf32>
    %129 = vector.extract_strided_slice %123 {offsets = [8, 0], sizes = [8, 72], strides = [1, 1]} : vector<16x72xf32> to vector<8x72xf32>
    %130 = arith.mulf %128, %129 : vector<8x72xf32>
    %131 = vector.extract_strided_slice %122 {offsets = [8, 0], sizes = [8, 72], strides = [1, 1]} : vector<16x72xf32> to vector<8x72xf32>
    %132 = vector.extract_strided_slice %123 {offsets = [0, 0], sizes = [8, 72], strides = [1, 1]} : vector<16x72xf32> to vector<8x72xf32>
    %133 = arith.mulf %131, %132 : vector<8x72xf32>
    %134 = vector.extract_strided_slice %122 {offsets = [8, 0], sizes = [8, 72], strides = [1, 1]} : vector<16x72xf32> to vector<8x72xf32>
    %135 = vector.extract_strided_slice %123 {offsets = [8, 0], sizes = [8, 72], strides = [1, 1]} : vector<16x72xf32> to vector<8x72xf32>
    %136 = arith.mulf %134, %135 : vector<8x72xf32>
    %137 = tpu.concatenate %127, %130, %133, %136 in 0 : vector<8x72xf32>, vector<8x72xf32>, vector<8x72xf32>, vector<8x72xf32> -> vector<32x72xf32>
    %cst_31 = arith.constant dense<0.000000e+00> : vector<32x4xf32>
    %138 = tpu.matmul %137, %6, %cst_31 {dimension_numbers = #tpu.dot_dimension_numbers<[1], [0], [0], [1], [0, 0, 1, 1], [], []>} : vector<32x72xf32>, vector<72x4xf32>, vector<32x4xf32> -> vector<32x4xf32>
    %139 = vector.extract_strided_slice %138 {offsets = [0, 0], sizes = [8, 4], strides = [1, 1]} : vector<32x4xf32> to vector<8x4xf32>
    %140 = vector.extract_strided_slice %138 {offsets = [8, 0], sizes = [8, 4], strides = [1, 1]} : vector<32x4xf32> to vector<8x4xf32>
    %141 = arith.maximumf %139, %140 : vector<8x4xf32>
    %142 = arith.subf %139, %141 : vector<8x4xf32>
    %143 = math.exp %142 : vector<8x4xf32>
    %144 = arith.subf %140, %141 : vector<8x4xf32>
    %145 = math.exp %144 : vector<8x4xf32>
    %146 = arith.addf %143, %145 : vector<8x4xf32>
    %147 = tpu.reciprocal %146 {approx = true} : vector<8x4xf32> -> vector<8x4xf32>
    %148 = arith.mulf %143, %147 : vector<8x4xf32>
    %149 = arith.mulf %145, %147 : vector<8x4xf32>
    %150 = vector.extract_strided_slice %138 {offsets = [16, 0], sizes = [8, 4], strides = [1, 1]} : vector<32x4xf32> to vector<8x4xf32>
    %151 = vector.extract_strided_slice %138 {offsets = [24, 0], sizes = [8, 4], strides = [1, 1]} : vector<32x4xf32> to vector<8x4xf32>
    %152 = arith.maximumf %150, %151 : vector<8x4xf32>
    %153 = arith.subf %150, %152 : vector<8x4xf32>
    %154 = math.exp %153 : vector<8x4xf32>
    %155 = arith.subf %151, %152 : vector<8x4xf32>
    %156 = math.exp %155 : vector<8x4xf32>
    %157 = arith.addf %154, %156 : vector<8x4xf32>
    %158 = tpu.reciprocal %157 {approx = true} : vector<8x4xf32> -> vector<8x4xf32>
    %159 = arith.mulf %154, %158 : vector<8x4xf32>
    %160 = arith.mulf %156, %158 : vector<8x4xf32>
    %161 = tpu.concatenate %148, %149, %159, %160 in 0 : vector<8x4xf32>, vector<8x4xf32>, vector<8x4xf32>, vector<8x4xf32> -> vector<32x4xf32>
    %cst_32 = arith.constant dense<0.000000e+00> : vector<32x72xf32>
    %162 = tpu.matmul %161, %7, %cst_32 {dimension_numbers = #tpu.dot_dimension_numbers<[1], [0], [0], [1], [0, 0, 1, 1], [], []>} : vector<32x4xf32>, vector<4x72xf32>, vector<32x72xf32> -> vector<32x72xf32>
    %163 = vector.extract_strided_slice %162 {offsets = [0, 0], sizes = [8, 72], strides = [1, 1]} : vector<32x72xf32> to vector<8x72xf32>
    %164 = vector.extract_strided_slice %124 {offsets = [0, 0], sizes = [8, 72], strides = [1, 1]} : vector<16x72xf32> to vector<8x72xf32>
    %165 = arith.mulf %163, %164 : vector<8x72xf32>
    %166 = vector.extract_strided_slice %162 {offsets = [8, 0], sizes = [8, 72], strides = [1, 1]} : vector<32x72xf32> to vector<8x72xf32>
    %167 = vector.extract_strided_slice %124 {offsets = [8, 0], sizes = [8, 72], strides = [1, 1]} : vector<16x72xf32> to vector<8x72xf32>
    %168 = arith.mulf %166, %167 : vector<8x72xf32>
    %169 = arith.addf %165, %168 : vector<8x72xf32>
    %170 = vector.extract_strided_slice %162 {offsets = [16, 0], sizes = [8, 72], strides = [1, 1]} : vector<32x72xf32> to vector<8x72xf32>
    %171 = vector.extract_strided_slice %124 {offsets = [0, 0], sizes = [8, 72], strides = [1, 1]} : vector<16x72xf32> to vector<8x72xf32>
    %172 = arith.mulf %170, %171 : vector<8x72xf32>
    %173 = vector.extract_strided_slice %162 {offsets = [24, 0], sizes = [8, 72], strides = [1, 1]} : vector<32x72xf32> to vector<8x72xf32>
    %174 = vector.extract_strided_slice %124 {offsets = [8, 0], sizes = [8, 72], strides = [1, 1]} : vector<16x72xf32> to vector<8x72xf32>
    %175 = arith.mulf %173, %174 : vector<8x72xf32>
    %176 = arith.addf %172, %175 : vector<8x72xf32>
    %177 = tpu.concatenate %169, %176 in 0 : vector<8x72xf32>, vector<8x72xf32> -> vector<16x72xf32>
    %cst_33 = arith.constant dense<0.000000e+00> : vector<16x72xf32>
    %178 = tpu.matmul %177, %2, %cst_33 {dimension_numbers = #tpu.dot_dimension_numbers<[1], [0], [0], [1], [0, 0, 1, 1], [], []>} : vector<16x72xf32>, vector<72x72xf32>, vector<16x72xf32> -> vector<16x72xf32>
    %179 = vector.broadcast %3 : vector<1x72xf32> to vector<16x72xf32>
    %180 = arith.addf %178, %179 : vector<16x72xf32>
    %181 = arith.addf %180, %118 : vector<16x72xf32>
    %182 = vector.extract_strided_slice %181 {offsets = [0, 0], sizes = [8, 72], strides = [1, 1]} : vector<16x72xf32> to vector<8x72xf32>
    %183 = vector.shape_cast %182 : vector<8x72xf32> to vector<1x8x72xf32>
    %cst_34 = arith.constant dense<0.000000e+00> : vector<1xf32>
    %184 = vector.multi_reduction <add>, %183, %cst_34 [1, 2] : vector<1x8x72xf32> to vector<1xf32>
    %185 = vector.shape_cast %184 : vector<1xf32> to vector<1x1x1xf32>
    %186 = vector.extract %185[0, 0, 0] : f32 from vector<1x1x1xf32>
    %cst_35 = arith.constant 5.760000e+02 : f32
    %187 = arith.divf %186, %cst_35 : f32
    %188 = vector.broadcast %187 : f32 to vector<8x72xf32>
    %189 = arith.subf %182, %188 : vector<8x72xf32>
    %190 = arith.mulf %189, %189 : vector<8x72xf32>
    %191 = vector.shape_cast %190 : vector<8x72xf32> to vector<1x8x72xf32>
    %cst_36 = arith.constant dense<0.000000e+00> : vector<1xf32>
    %192 = vector.multi_reduction <add>, %191, %cst_36 [1, 2] : vector<1x8x72xf32> to vector<1xf32>
    %193 = vector.shape_cast %192 : vector<1xf32> to vector<1x1x1xf32>
    %194 = vector.extract %193[0, 0, 0] : f32 from vector<1x1x1xf32>
    %cst_37 = arith.constant 5.760000e+02 : f32
    %195 = arith.divf %194, %cst_37 : f32
    %196 = vector.broadcast %187 : f32 to vector<8x72xf32>
    %197 = arith.subf %182, %196 : vector<8x72xf32>
    %cst_38 = arith.constant 9.99999974E-6 : f32
    %198 = arith.addf %195, %cst_38 : f32
    %199 = math.rsqrt %198 : f32
    %200 = vector.broadcast %199 : f32 to vector<8x72xf32>
    %201 = arith.mulf %197, %200 : vector<8x72xf32>
    %202 = arith.mulf %201, %4 : vector<8x72xf32>
    %203 = arith.addf %202, %5 : vector<8x72xf32>
    %204 = arith.addf %203, %182 : vector<8x72xf32>
    %205 = vector.extract_strided_slice %181 {offsets = [8, 0], sizes = [8, 72], strides = [1, 1]} : vector<16x72xf32> to vector<8x72xf32>
    %206 = vector.shape_cast %205 : vector<8x72xf32> to vector<1x8x72xf32>
    %cst_39 = arith.constant dense<0.000000e+00> : vector<1xf32>
    %207 = vector.multi_reduction <add>, %206, %cst_39 [1, 2] : vector<1x8x72xf32> to vector<1xf32>
    %208 = vector.shape_cast %207 : vector<1xf32> to vector<1x1x1xf32>
    %209 = vector.extract %208[0, 0, 0] : f32 from vector<1x1x1xf32>
    %cst_40 = arith.constant 5.760000e+02 : f32
    %210 = arith.divf %209, %cst_40 : f32
    %211 = vector.broadcast %210 : f32 to vector<8x72xf32>
    %212 = arith.subf %205, %211 : vector<8x72xf32>
    %213 = arith.mulf %212, %212 : vector<8x72xf32>
    %214 = vector.shape_cast %213 : vector<8x72xf32> to vector<1x8x72xf32>
    %cst_41 = arith.constant dense<0.000000e+00> : vector<1xf32>
    %215 = vector.multi_reduction <add>, %214, %cst_41 [1, 2] : vector<1x8x72xf32> to vector<1xf32>
    %216 = vector.shape_cast %215 : vector<1xf32> to vector<1x1x1xf32>
    %217 = vector.extract %216[0, 0, 0] : f32 from vector<1x1x1xf32>
    %cst_42 = arith.constant 5.760000e+02 : f32
    %218 = arith.divf %217, %cst_42 : f32
    %219 = vector.broadcast %210 : f32 to vector<8x72xf32>
    %220 = arith.subf %205, %219 : vector<8x72xf32>
    %cst_43 = arith.constant 9.99999974E-6 : f32
    %221 = arith.addf %218, %cst_43 : f32
    %222 = math.rsqrt %221 : f32
    %223 = vector.broadcast %222 : f32 to vector<8x72xf32>
    %224 = arith.mulf %220, %223 : vector<8x72xf32>
    %225 = arith.mulf %224, %4 : vector<8x72xf32>
    %226 = arith.addf %225, %5 : vector<8x72xf32>
    %227 = arith.addf %226, %205 : vector<8x72xf32>
    %228 = tpu.concatenate %204, %227 in 0 : vector<8x72xf32>, vector<8x72xf32> -> vector<16x72xf32>
    %c0_44 = arith.constant 0 : index
    %c0_45 = arith.constant 0 : index
    %229 = vector.load %arg12[%c0_44, %c0_45] : memref<72x640xf32, #tpu.memory_space<vmem>>, vector<72x640xf32>
    %cst_46 = arith.constant dense<0.000000e+00> : vector<16x640xf32>
    %230 = tpu.matmul %228, %229, %cst_46 {dimension_numbers = #tpu.dot_dimension_numbers<[1], [0], [0], [1], [0, 0, 1, 1], [], []>} : vector<16x72xf32>, vector<72x640xf32>, vector<16x640xf32> -> vector<16x640xf32>
    %c0_47 = arith.constant 0 : index
    %c0_48 = arith.constant 0 : index
    %231 = vector.load %arg13[%c0_47, %c0_48] : memref<8x640xf32, #tpu.memory_space<vmem>>, vector<8x640xf32>
    %c0_49 = arith.constant 0 : index
    %c0_50 = arith.constant 0 : index
    %232 = vector.load %arg14[%c0_49, %c0_50] : memref<1x640xf32, #tpu.memory_space<vmem>>, vector<1x640xf32>
    %233 = vector.extract_strided_slice %230 {offsets = [0, 0], sizes = [8, 640], strides = [1, 1]} : vector<16x640xf32> to vector<8x640xf32>
    %234 = arith.mulf %233, %231 : vector<8x640xf32>
    %cst_51 = arith.constant dense<0.000000e+00> : vector<640xf32>
    %235 = vector.multi_reduction <add>, %234, %cst_51 [0] : vector<8x640xf32> to vector<640xf32>
    %236 = vector.shape_cast %235 : vector<640xf32> to vector<1x640xf32>
    %237 = arith.addf %236, %232 : vector<1x640xf32>
    %238 = vector.extract_strided_slice %237 {offsets = [0, 0], sizes = [1, 128], strides = [1, 1]} : vector<1x640xf32> to vector<1x128xf32>
    %c0_52 = arith.constant 0 : index
    %c0_53 = arith.constant 0 : index
    %239 = vector.load %arg28[%c0_52, %c0_53] : memref<10x384xf32, #tpu.memory_space<vmem>>, vector<1x128xf32>
    tpu.vector_store %arg28[%c0_52, %c0_53], %238 {strides = array<i32>} : memref<10x384xf32, #tpu.memory_space<vmem>>, vector<1x128xf32>,
    %240 = vector.extract_strided_slice %237 {offsets = [0, 128], sizes = [1, 128], strides = [1, 1]} : vector<1x640xf32> to vector<1x128xf32>
    %c1 = arith.constant 1 : index
    %c0_54 = arith.constant 0 : index
    %241 = vector.load %arg28[%c1, %c0_54] : memref<10x384xf32, #tpu.memory_space<vmem>>, vector<1x128xf32>
    tpu.vector_store %arg28[%c1, %c0_54], %240 {strides = array<i32>} : memref<10x384xf32, #tpu.memory_space<vmem>>, vector<1x128xf32>,
    %242 = vector.extract_strided_slice %237 {offsets = [0, 256], sizes = [1, 128], strides = [1, 1]} : vector<1x640xf32> to vector<1x128xf32>
    %c2 = arith.constant 2 : index
    %c0_55 = arith.constant 0 : index
    %243 = vector.load %arg28[%c2, %c0_55] : memref<10x384xf32, #tpu.memory_space<vmem>>, vector<1x128xf32>
    tpu.vector_store %arg28[%c2, %c0_55], %242 {strides = array<i32>} : memref<10x384xf32, #tpu.memory_space<vmem>>, vector<1x128xf32>,
    %244 = vector.extract_strided_slice %237 {offsets = [0, 384], sizes = [1, 128], strides = [1, 1]} : vector<1x640xf32> to vector<1x128xf32>
    %c3 = arith.constant 3 : index
    %c0_56 = arith.constant 0 : index
    %245 = vector.load %arg28[%c3, %c0_56] : memref<10x384xf32, #tpu.memory_space<vmem>>, vector<1x128xf32>
    tpu.vector_store %arg28[%c3, %c0_56], %244 {strides = array<i32>} : memref<10x384xf32, #tpu.memory_space<vmem>>, vector<1x128xf32>,
    %246 = vector.extract_strided_slice %237 {offsets = [0, 512], sizes = [1, 128], strides = [1, 1]} : vector<1x640xf32> to vector<1x128xf32>
    %c4 = arith.constant 4 : index
    %c0_57 = arith.constant 0 : index
    %247 = vector.load %arg28[%c4, %c0_57] : memref<10x384xf32, #tpu.memory_space<vmem>>, vector<1x128xf32>
    tpu.vector_store %arg28[%c4, %c0_57], %246 {strides = array<i32>} : memref<10x384xf32, #tpu.memory_space<vmem>>, vector<1x128xf32>,
    %248 = vector.extract_strided_slice %230 {offsets = [8, 0], sizes = [8, 640], strides = [1, 1]} : vector<16x640xf32> to vector<8x640xf32>
    %249 = arith.mulf %248, %231 : vector<8x640xf32>
    %cst_58 = arith.constant dense<0.000000e+00> : vector<640xf32>
    %250 = vector.multi_reduction <add>, %249, %cst_58 [0] : vector<8x640xf32> to vector<640xf32>
    %251 = vector.shape_cast %250 : vector<640xf32> to vector<1x640xf32>
    %252 = arith.addf %251, %232 : vector<1x640xf32>
    %253 = vector.extract_strided_slice %252 {offsets = [0, 0], sizes = [1, 128], strides = [1, 1]} : vector<1x640xf32> to vector<1x128xf32>
    %c5 = arith.constant 5 : index
    %c0_59 = arith.constant 0 : index
    %254 = vector.load %arg28[%c5, %c0_59] : memref<10x384xf32, #tpu.memory_space<vmem>>, vector<1x128xf32>
    tpu.vector_store %arg28[%c5, %c0_59], %253 {strides = array<i32>} : memref<10x384xf32, #tpu.memory_space<vmem>>, vector<1x128xf32>,
    %255 = vector.extract_strided_slice %252 {offsets = [0, 128], sizes = [1, 128], strides = [1, 1]} : vector<1x640xf32> to vector<1x128xf32>
    %c6 = arith.constant 6 : index
    %c0_60 = arith.constant 0 : index
    %256 = vector.load %arg28[%c6, %c0_60] : memref<10x384xf32, #tpu.memory_space<vmem>>, vector<1x128xf32>
    tpu.vector_store %arg28[%c6, %c0_60], %255 {strides = array<i32>} : memref<10x384xf32, #tpu.memory_space<vmem>>, vector<1x128xf32>,
    %257 = vector.extract_strided_slice %252 {offsets = [0, 256], sizes = [1, 128], strides = [1, 1]} : vector<1x640xf32> to vector<1x128xf32>
    %c7 = arith.constant 7 : index
    %c0_61 = arith.constant 0 : index
    %258 = vector.load %arg28[%c7, %c0_61] : memref<10x384xf32, #tpu.memory_space<vmem>>, vector<1x128xf32>
    tpu.vector_store %arg28[%c7, %c0_61], %257 {strides = array<i32>} : memref<10x384xf32, #tpu.memory_space<vmem>>, vector<1x128xf32>,
    %259 = vector.extract_strided_slice %252 {offsets = [0, 384], sizes = [1, 128], strides = [1, 1]} : vector<1x640xf32> to vector<1x128xf32>
    %c8 = arith.constant 8 : index
    %c0_62 = arith.constant 0 : index
    %260 = vector.load %arg28[%c8, %c0_62] : memref<10x384xf32, #tpu.memory_space<vmem>>, vector<1x128xf32>
    tpu.vector_store %arg28[%c8, %c0_62], %259 {strides = array<i32>} : memref<10x384xf32, #tpu.memory_space<vmem>>, vector<1x128xf32>,
    %261 = vector.extract_strided_slice %252 {offsets = [0, 512], sizes = [1, 128], strides = [1, 1]} : vector<1x640xf32> to vector<1x128xf32>
    %c9 = arith.constant 9 : index
    %c0_63 = arith.constant 0 : index
    %262 = vector.load %arg28[%c9, %c0_63] : memref<10x384xf32, #tpu.memory_space<vmem>>, vector<1x128xf32>
    tpu.vector_store %arg28[%c9, %c0_63], %261 {strides = array<i32>} : memref<10x384xf32, #tpu.memory_space<vmem>>, vector<1x128xf32>,
    %c0_64 = arith.constant 0 : index
    %c0_65 = arith.constant 0 : index
    %263 = vector.load %arg1[%c0_64, %c0_65] : memref<10x72xf32, #tpu.memory_space<vmem>>, vector<10x72xf32>
    %c0_66 = arith.constant 0 : index
    %c0_67 = arith.constant 0 : index
    %264 = vector.load %arg2[%c0_66, %c0_67] : memref<10x10xf32, #tpu.memory_space<vmem>>, vector<10x10xf32>
    %c0_68 = arith.constant 0 : index
    %c0_69 = arith.constant 0 : index
    %265 = vector.load %arg15[%c0_68, %c0_69] : memref<72x48xf32, #tpu.memory_space<vmem>>, vector<72x48xf32>
    %cst_70 = arith.constant dense<0.000000e+00> : vector<10x48xf32>
    %266 = tpu.matmul %263, %265, %cst_70 {dimension_numbers = #tpu.dot_dimension_numbers<[1], [0], [0], [1], [0, 0, 1, 1], [], []>} : vector<10x72xf32>, vector<72x48xf32>, vector<10x48xf32> -> vector<10x48xf32>
    %cst_71 = arith.constant dense<0.000000e+00> : vector<10x48xf32>
    %267 = tpu.matmul %264, %266, %cst_71 {dimension_numbers = #tpu.dot_dimension_numbers<[1], [0], [0], [1], [0, 0, 1, 1], [], []>} : vector<10x10xf32>, vector<10x48xf32>, vector<10x48xf32> -> vector<10x48xf32>
    %c0_72 = arith.constant 0 : index
    %c0_73 = arith.constant 0 : index
    %268 = vector.load %arg16[%c0_72, %c0_73] : memref<1x48xf32, #tpu.memory_space<vmem>>, vector<1x48xf32>
    %269 = vector.broadcast %268 : vector<1x48xf32> to vector<10x48xf32>
    %270 = arith.addf %267, %269 : vector<10x48xf32>
    %cst_74 = arith.constant 0.000000e+00 : f32
    %271 = vector.broadcast %cst_74 : f32 to vector<10x48xf32>
    %272 = arith.maximumf %270, %271 : vector<10x48xf32>
    %c0_75 = arith.constant 0 : index
    %c0_76 = arith.constant 0 : index
    %273 = vector.load %arg17[%c0_75, %c0_76] : memref<48x128xf32, #tpu.memory_space<vmem>>, vector<48x128xf32>
    %cst_77 = arith.constant dense<0.000000e+00> : vector<10x128xf32>
    %274 = tpu.matmul %272, %273, %cst_77 {dimension_numbers = #tpu.dot_dimension_numbers<[1], [0], [0], [1], [0, 0, 1, 1], [], []>} : vector<10x48xf32>, vector<48x128xf32>, vector<10x128xf32> -> vector<10x128xf32>
    %cst_78 = arith.constant dense<0.000000e+00> : vector<10x128xf32>
    %275 = tpu.matmul %264, %274, %cst_78 {dimension_numbers = #tpu.dot_dimension_numbers<[1], [0], [0], [1], [0, 0, 1, 1], [], []>} : vector<10x10xf32>, vector<10x128xf32>, vector<10x128xf32> -> vector<10x128xf32>
    %c0_79 = arith.constant 0 : index
    %c0_80 = arith.constant 0 : index
    %276 = vector.load %arg18[%c0_79, %c0_80] : memref<1x128xf32, #tpu.memory_space<vmem>>, vector<1x128xf32>
    %277 = vector.broadcast %276 : vector<1x128xf32> to vector<10x128xf32>
    %278 = arith.addf %275, %277 : vector<10x128xf32>
    %cst_81 = arith.constant 0.000000e+00 : f32
    %279 = vector.broadcast %cst_81 : f32 to vector<10x128xf32>
    %280 = arith.maximumf %278, %279 : vector<10x128xf32>
    %c0_82 = arith.constant 0 : index
    %c128 = arith.constant 128 : index
    %281 = vector.load %arg28[%c0_82, %c128] : memref<10x384xf32, #tpu.memory_space<vmem>>, vector<10x128xf32>
    tpu.vector_store %arg28[%c0_82, %c128], %280 {strides = array<i32>} : memref<10x384xf32, #tpu.memory_space<vmem>>, vector<10x128xf32>,
    %c0_83 = arith.constant 0 : index
    %c0_84 = arith.constant 0 : index
    %282 = vector.load %arg19[%c0_83, %c0_84] : memref<72x512xf32, #tpu.memory_space<vmem>>, vector<72x512xf32>
    %cst_85 = arith.constant dense<0.000000e+00> : vector<10x512xf32>
    %283 = tpu.matmul %263, %282, %cst_85 {dimension_numbers = #tpu.dot_dimension_numbers<[1], [0], [0], [1], [0, 0, 1, 1], [], []>} : vector<10x72xf32>, vector<72x512xf32>, vector<10x512xf32> -> vector<10x512xf32>
    %c0_86 = arith.constant 0 : index
    %c0_87 = arith.constant 0 : index
    %284 = vector.load %arg21[%c0_86, %c0_87] : memref<1x512xf32, #tpu.memory_space<vmem>>, vector<1x512xf32>
    %285 = vector.broadcast %284 : vector<1x512xf32> to vector<10x512xf32>
    %286 = arith.addf %283, %285 : vector<10x512xf32>
    %c0_88 = arith.constant 0 : index
    %c0_89 = arith.constant 0 : index
    %287 = vector.load %arg20[%c0_88, %c0_89] : memref<128x512xf32, #tpu.memory_space<vmem>>, vector<128x512xf32>
    %cst_90 = arith.constant 0.000000e+00 : f32
    %288 = vector.broadcast %cst_90 : f32 to vector<5x128xf32>
    %cst_91 = arith.constant 0.000000e+00 : f32
    %289 = vector.broadcast %cst_91 : f32 to vector<5x128xf32>
    %290 = vector.extract_strided_slice %286 {offsets = [0, 0], sizes = [5, 512], strides = [1, 1]} : vector<10x512xf32> to vector<5x512xf32>
    %cst_92 = arith.constant dense<0.000000e+00> : vector<5x512xf32>
    %291 = tpu.matmul %288, %287, %cst_92 {dimension_numbers = #tpu.dot_dimension_numbers<[1], [0], [0], [1], [0, 0, 1, 1], [], []>} : vector<5x128xf32>, vector<128x512xf32>, vector<5x512xf32> -> vector<5x512xf32>
    %292 = arith.addf %290, %291 : vector<5x512xf32>
    %293 = vector.extract_strided_slice %292 {offsets = [0, 0], sizes = [5, 128], strides = [1, 1]} : vector<5x512xf32> to vector<5x128xf32>
    %294 = arith.negf %293 : vector<5x128xf32>
    %295 = math.exp %294 : vector<5x128xf32>
    %cst_93 = arith.constant 1.000000e+00 : f32
    %296 = vector.broadcast %cst_93 : f32 to vector<5x128xf32>
    %297 = arith.addf %296, %295 : vector<5x128xf32>
    %298 = arith.divf %296, %297 : vector<5x128xf32>
    %299 = vector.extract_strided_slice %292 {offsets = [0, 128], sizes = [5, 128], strides = [1, 1]} : vector<5x512xf32> to vector<5x128xf32>
    %300 = arith.negf %299 : vector<5x128xf32>
    %301 = math.exp %300 : vector<5x128xf32>
    %cst_94 = arith.constant 1.000000e+00 : f32
    %302 = vector.broadcast %cst_94 : f32 to vector<5x128xf32>
    %303 = arith.addf %302, %301 : vector<5x128xf32>
    %304 = arith.divf %302, %303 : vector<5x128xf32>
    %305 = vector.extract_strided_slice %292 {offsets = [0, 256], sizes = [5, 128], strides = [1, 1]} : vector<5x512xf32> to vector<5x128xf32>
    %306 = math.tanh %305 : vector<5x128xf32>
    %307 = vector.extract_strided_slice %292 {offsets = [0, 384], sizes = [5, 128], strides = [1, 1]} : vector<5x512xf32> to vector<5x128xf32>
    %308 = arith.negf %307 : vector<5x128xf32>
    %309 = math.exp %308 : vector<5x128xf32>
    %cst_95 = arith.constant 1.000000e+00 : f32
    %310 = vector.broadcast %cst_95 : f32 to vector<5x128xf32>
    %311 = arith.addf %310, %309 : vector<5x128xf32>
    %312 = arith.divf %310, %311 : vector<5x128xf32>
    %313 = arith.mulf %304, %289 : vector<5x128xf32>
    %314 = arith.mulf %298, %306 : vector<5x128xf32>
    %315 = arith.addf %313, %314 : vector<5x128xf32>
    %316 = math.tanh %315 : vector<5x128xf32>
    %317 = arith.mulf %312, %316 : vector<5x128xf32>
    %c0_96 = arith.constant 0 : index
    %c256 = arith.constant 256 : index
    %318 = vector.load %arg28[%c0_96, %c256] : memref<10x384xf32, #tpu.memory_space<vmem>>, vector<5x128xf32>
    tpu.vector_store %arg28[%c0_96, %c256], %317 {strides = array<i32>} : memref<10x384xf32, #tpu.memory_space<vmem>>, vector<5x128xf32>,
    %319 = vector.extract_strided_slice %286 {offsets = [5, 0], sizes = [5, 512], strides = [1, 1]} : vector<10x512xf32> to vector<5x512xf32>
    %cst_97 = arith.constant dense<0.000000e+00> : vector<5x512xf32>
    %320 = tpu.matmul %317, %287, %cst_97 {dimension_numbers = #tpu.dot_dimension_numbers<[1], [0], [0], [1], [0, 0, 1, 1], [], []>} : vector<5x128xf32>, vector<128x512xf32>, vector<5x512xf32> -> vector<5x512xf32>
    %321 = arith.addf %319, %320 : vector<5x512xf32>
    %322 = vector.extract_strided_slice %321 {offsets = [0, 0], sizes = [5, 128], strides = [1, 1]} : vector<5x512xf32> to vector<5x128xf32>
    %323 = arith.negf %322 : vector<5x128xf32>
    %324 = math.exp %323 : vector<5x128xf32>
    %cst_98 = arith.constant 1.000000e+00 : f32
    %325 = vector.broadcast %cst_98 : f32 to vector<5x128xf32>
    %326 = arith.addf %325, %324 : vector<5x128xf32>
    %327 = arith.divf %325, %326 : vector<5x128xf32>
    %328 = vector.extract_strided_slice %321 {offsets = [0, 128], sizes = [5, 128], strides = [1, 1]} : vector<5x512xf32> to vector<5x128xf32>
    %329 = arith.negf %328 : vector<5x128xf32>
    %330 = math.exp %329 : vector<5x128xf32>
    %cst_99 = arith.constant 1.000000e+00 : f32
    %331 = vector.broadcast %cst_99 : f32 to vector<5x128xf32>
    %332 = arith.addf %331, %330 : vector<5x128xf32>
    %333 = arith.divf %331, %332 : vector<5x128xf32>
    %334 = vector.extract_strided_slice %321 {offsets = [0, 256], sizes = [5, 128], strides = [1, 1]} : vector<5x512xf32> to vector<5x128xf32>
    %335 = math.tanh %334 : vector<5x128xf32>
    %336 = vector.extract_strided_slice %321 {offsets = [0, 384], sizes = [5, 128], strides = [1, 1]} : vector<5x512xf32> to vector<5x128xf32>
    %337 = arith.negf %336 : vector<5x128xf32>
    %338 = math.exp %337 : vector<5x128xf32>
    %cst_100 = arith.constant 1.000000e+00 : f32
    %339 = vector.broadcast %cst_100 : f32 to vector<5x128xf32>
    %340 = arith.addf %339, %338 : vector<5x128xf32>
    %341 = arith.divf %339, %340 : vector<5x128xf32>
    %342 = arith.mulf %333, %315 : vector<5x128xf32>
    %343 = arith.mulf %327, %335 : vector<5x128xf32>
    %344 = arith.addf %342, %343 : vector<5x128xf32>
    %345 = math.tanh %344 : vector<5x128xf32>
    %346 = arith.mulf %341, %345 : vector<5x128xf32>
    %c5_101 = arith.constant 5 : index
    %c256_102 = arith.constant 256 : index
    %347 = vector.load %arg28[%c5_101, %c256_102] : memref<10x384xf32, #tpu.memory_space<vmem>>, vector<5x128xf32>
    tpu.vector_store %arg28[%c5_101, %c256_102], %346 {strides = array<i32>} : memref<10x384xf32, #tpu.memory_space<vmem>>, vector<5x128xf32>,
    %c0_103 = arith.constant 0 : index
    %c0_104 = arith.constant 0 : index
    %348 = vector.load %arg28[%c0_103, %c0_104] : memref<10x384xf32, #tpu.memory_space<vmem>>, vector<10x384xf32>
    %cst_105 = arith.constant dense<0.000000e+00> : vector<10x10xf32>
    %349 = tpu.matmul %348, %348, %cst_105 {dimension_numbers = #tpu.dot_dimension_numbers<[1], [1], [0], [0], [0, 0, 1, 0], [], []>} : vector<10x384xf32>, vector<10x384xf32>, vector<10x10xf32> -> vector<10x10xf32>
    %cst_106 = arith.constant 0.0833333358 : f32
    %350 = vector.broadcast %cst_106 : f32 to vector<10x10xf32>
    %351 = arith.mulf %349, %350 : vector<10x10xf32>
    %c0_107 = arith.constant 0 : index
    %c0_108 = arith.constant 0 : index
    %352 = vector.load %arg3[%c0_107, %c0_108] : memref<10x10xf32, #tpu.memory_space<vmem>>, vector<10x10xf32>
    %353 = arith.addf %351, %352 : vector<10x10xf32>
    %cst_109 = arith.constant dense<0xFF800000> : vector<10xf32>
    %354 = vector.multi_reduction <maximumf>, %353, %cst_109 [1] : vector<10x10xf32> to vector<10xf32>
    %355 = vector.shape_cast %354 : vector<10xf32> to vector<10x1xf32>
    %356 = vector.broadcast %355 : vector<10x1xf32> to vector<10x10xf32>
    %357 = arith.subf %353, %356 : vector<10x10xf32>
    %358 = math.exp %357 : vector<10x10xf32>
    %cst_110 = arith.constant dense<0.000000e+00> : vector<10xf32>
    %359 = vector.multi_reduction <add>, %358, %cst_110 [1] : vector<10x10xf32> to vector<10xf32>
    %360 = vector.shape_cast %359 : vector<10xf32> to vector<10x1xf32>
    %361 = tpu.reciprocal %360 {approx = true} : vector<10x1xf32> -> vector<10x1xf32>
    %362 = vector.broadcast %361 : vector<10x1xf32> to vector<10x10xf32>
    %363 = arith.mulf %358, %362 : vector<10x10xf32>
    %cst_111 = arith.constant dense<0.000000e+00> : vector<10x384xf32>
    %364 = tpu.matmul %363, %348, %cst_111 {dimension_numbers = #tpu.dot_dimension_numbers<[1], [0], [0], [1], [0, 0, 1, 1], [], []>} : vector<10x10xf32>, vector<10x384xf32>, vector<10x384xf32> -> vector<10x384xf32>
    %c0_112 = arith.constant 0 : index
    %c0_113 = arith.constant 0 : index
    %365 = vector.load %arg22[%c0_112, %c0_113] : memref<384x640xf32, #tpu.memory_space<vmem>>, vector<384x640xf32>
    %cst_114 = arith.constant dense<0.000000e+00> : vector<10x640xf32>
    %366 = tpu.matmul %364, %365, %cst_114 {dimension_numbers = #tpu.dot_dimension_numbers<[1], [0], [0], [1], [0, 0, 1, 1], [], []>} : vector<10x384xf32>, vector<384x640xf32>, vector<10x640xf32> -> vector<10x640xf32>
    %c0_115 = arith.constant 0 : index
    %c0_116 = arith.constant 0 : index
    %367 = vector.load %arg23[%c0_115, %c0_116] : memref<10x640xf32, #tpu.memory_space<vmem>>, vector<10x640xf32>
    %368 = arith.mulf %366, %367 : vector<10x640xf32>
    %c0_117 = arith.constant 0 : index
    %c0_118 = arith.constant 0 : index
    %369 = vector.load %arg24[%c0_117, %c0_118] : memref<2x10xf32, #tpu.memory_space<vmem>>, vector<2x10xf32>
    %cst_119 = arith.constant dense<0.000000e+00> : vector<2x640xf32>
    %370 = tpu.matmul %369, %368, %cst_119 {dimension_numbers = #tpu.dot_dimension_numbers<[1], [0], [0], [1], [0, 0, 1, 1], [], []>} : vector<2x10xf32>, vector<10x640xf32>, vector<2x640xf32> -> vector<2x640xf32>
    %c0_120 = arith.constant 0 : index
    %c0_121 = arith.constant 0 : index
    %371 = vector.load %arg25[%c0_120, %c0_121] : memref<640x96xf32, #tpu.memory_space<vmem>>, vector<640x96xf32>
    %cst_122 = arith.constant dense<0.000000e+00> : vector<2x96xf32>
    %372 = tpu.matmul %370, %371, %cst_122 {dimension_numbers = #tpu.dot_dimension_numbers<[1], [0], [0], [1], [0, 0, 1, 1], [], []>} : vector<2x640xf32>, vector<640x96xf32>, vector<2x96xf32> -> vector<2x96xf32>
    %c0_123 = arith.constant 0 : index
    %c0_124 = arith.constant 0 : index
    %373 = vector.load %arg26[%c0_123, %c0_124] : memref<1x96xf32, #tpu.memory_space<vmem>>, vector<1x96xf32>
    %374 = vector.broadcast %373 : vector<1x96xf32> to vector<2x96xf32>
    %375 = arith.addf %372, %374 : vector<2x96xf32>
    %c0_125 = arith.constant 0 : index
    %c0_126 = arith.constant 0 : index
    %376 = vector.load %arg27[%c0_125, %c0_126] : memref<2x96xf32, #tpu.memory_space<vmem>>, vector<2x96xf32>
    tpu.vector_store %arg27[%c0_125, %c0_126], %375 {strides = array<i32>} : memref<2x96xf32, #tpu.memory_space<vmem>>, vector<2x96xf32>,
    return
  }
}

</mosaic_0001>

<bundles_post_ra>
// kernel: eq.28
= control target key start
LH: loop header
LB: loop body
LE: loop exit
PB: predicated region body
PF: predicated region fallthrough
CT: control target
= control target key end

     0   :  { %vm8_vm0 = vcmask 39936   ;;  %vm14_vm1 = vcmask 80936   ;;  %s42_s0 = inlined_call_operand.vmem [shape: s32[2,5], index: 0, kind: input, shape index: {}]   ;;  %s43_s1 = inlined_call_operand.vmem [shape: s32[10], index: 1, kind: output, shape index: {}]  }
   0x1   :  { %v5_v0 = vld [vmem:[%s42_s0] sm:$0x3]  ;;  %s25_s0 = smov 5  }
   0x2   :  { %6 = vst [vmem:[#allocation1] sm:$0x3] %v5_v0 }
   0x9   :  { %v11_v1 = vld [vmem:[#allocation1 + $0x1] sm:$0x1]   ;;  %v7_v2 = vld [vmem:[#allocation1] sm:$0x1]  }
   0xa   :  { %12 = vrot.lane.b32.xlu0 %v11_v1, %s25_s0  ;;  %9 = vst.msk [vmem:[#allocation0] sm:$0x1] %vm8_vm0, %v7_v2  }
  0x7c   :  { %v13_v3 = vpop.permute.xlu0 %12  }
  0x7d   :  { %15 = vst.msk [vmem:[#allocation0] sm:$0x1] %vm14_vm1, %v13_v3  }
  0x84   :  { %v20_v4 = vld [vmem:[#allocation0] sm:$0x1] }
  0x85   :  { %23 = vst [vmem:[%s43_s1] sm:$0x1] %v20_v4 }

// kernel: graph_water_transformer_cov.1
= control target key start
LH: loop header
LB: loop body
LE: loop exit
PB: predicated region body
PF: predicated region fallthrough
CT: control target
= control target key end

     0   :  { %s7232_s0 = inlined_call_operand.vmem [shape: f32[16,72], index: 0, kind: input, shape index: {}]   ;;  %s7233_s1 = inlined_call_operand.vmem [shape: f32[10,72], index: 1, kind: input, shape index: {}]   ;;  %s7234_s2 = inlined_call_operand.vmem [shape: f32[10,10], index: 2, kind: input, shape index: {}]   ;;  %s7235_s3 = inlined_call_operand.vmem [shape: f32[10,10], index: 3, kind: input, shape index: {}]   ;;  %s7236_s4 = inlined_call_operand.vmem [shape: f32[72,4], index: 4, kind: input, shape index: {}]   ;;  %s7237_s5 = inlined_call_operand.hbm [shape: f32[4,72], index: 5, kind: input, shape index: {}]   ;;  %s7238_s6 = inlined_call_operand.vmem [shape: f32[72,384], index: 6, kind: input, shape index: {}]   ;;  %s7239_s7 = inlined_call_operand.hbm [shape: f32[1,384], index: 7, kind: input, shape index: {}]   ;;  %s7240_s8 = inlined_call_operand.hbm [shape: f32[72,72], index: 8, kind: input, shape index: {}]   ;;  %s7241_s9 = inlined_call_operand.hbm [shape: f32[1,72], index: 9, kind: input, shape index: {}]   ;;  %s7242_s10 = inlined_call_operand.hbm [shape: f32[8,72], index: 10, kind: input, shape index: {}]   ;;  %s7243_s11 = inlined_call_operand.hbm [shape: f32[8,72], index: 11, kind: input, shape index: {}]   ;;  %s7244_s12 = inlined_call_operand.vmem [shape: f32[72,640], index: 12, kind: input, shape index: {}]   ;;  %s7245_s13 = inlined_call_operand.hbm [shape: f32[8,640], index: 13, kind: input, shape index: {}]   ;;  %s7246_s14 = inlined_call_operand.hbm [shape: f32[1,640], index: 14, kind: input, shape index: {}]   ;;  %s7247_s15 = inlined_call_operand.vmem [shape: f32[72,48], index: 15, kind: input, shape index: {}]   ;;  %s7248_s16 = inlined_call_operand.hbm [shape: f32[1,48], index: 16, kind: input, shape index: {}]   ;;  %s7249_s17 = inlined_call_operand.vmem [shape: f32[48,128], index: 17, kind: input, shape index: {}]   ;;  %s7250_s18 = inlined_call_operand.hbm [shape: f32[1,128], index: 18, kind: input, shape index: {}]   ;;  %s7251_s19 = inlined_call_operand.hbm [shape: f32[72,512], index: 19, kind: input, shape index: {}]   ;;  %s7252_s20 = inlined_call_operand.vmem [shape: f32[128,512], index: 20, kind: input, shape index: {}]   ;;  %s7253_s21 = inlined_call_operand.hbm [shape: f32[1,512], index: 21, kind: input, shape index: {}]   ;;  %s7254_s22 = inlined_call_operand.hbm [shape: f32[384,640], index: 22, kind: input, shape index: {}]   ;;  %s7255_s23 = inlined_call_operand.vmem [shape: f32[10,640], index: 23, kind: input, shape index: {}]   ;;  %s7256_s24 = inlined_call_operand.vmem [shape: f32[2,10], index: 24, kind: input, shape index: {}]   ;;  %s7257_s25 = inlined_call_operand.vmem [shape: f32[640,96], index: 25, kind: input, shape index: {}]   ;;  %s7258_s26 = inlined_call_operand.hbm [shape: f32[1,96], index: 26, kind: input, shape index: {}]   ;;  %s7259_s27 = inlined_call_operand.hbm [shape: f32[2,96], index: 27, kind: output, shape index: {}]  }
   0x1   :  { %7266 = sst [smem:[#allocation36_spill]] %s7232_s0 }
   0x2   :  { %7267 = sst [smem:[#allocation37_spill]] %s7233_s1 }
   0x3   :  { %7268 = sst [smem:[#allocation38_spill]] %s7234_s2 }
   0x4   :  { %7269 = sst [smem:[#allocation39_spill]] %s7235_s3 }
   0x5   :  { %7270 = sst [smem:[#allocation40_spill]] %s7236_s4 }
   0x6   :  { %7271 = sst [smem:[#allocation41_spill]] %s7237_s5 }
   0x7   :  { %7272 = sst [smem:[#allocation42_spill]] %s7238_s6 }
   0x8   :  { %7273 = sst [smem:[#allocation43_spill]] %s7239_s7 }
   0x9   :  { %7274 = sst [smem:[#allocation44_spill]] %s7240_s8 }
   0xa   :  { %7275 = sst [smem:[#allocation45_spill]] %s7241_s9 }
   0xb   :  { %7276 = sst [smem:[#allocation46_spill]] %s7242_s10 }
   0xc   :  { %7277 = sst [smem:[#allocation47_spill]] %s7243_s11 }
   0xd   :  { %32 = vsyncpa [#allocation4], 0 }
   0xe   :  { %33 = vsyncpa [#allocation7], 0 }
   0xf   :  { %34 = vsyncpa [#allocation10], 0 }
  0x10   :  { %35 = vsyncpa [#allocation13], 0 }
  0x11   :  { %36 = vsyncpa [#allocation16], 0 }
  0x12   :  { %37 = vsyncpa [#allocation19], 0 }
  0x13   :  { %38 = vsyncpa [#allocation22], 0 }
  0x14   :  { %39 = vsyncpa [#allocation25], 0 }
  0x15   :  { %40 = vsyncpa [#allocation5], 0  ;;  %s5586_s7 = smov [#allocation6]   ;;  %s5587_s8 = smov [#allocation9]  }
  0x16   :  { %s69_s4 = sshll.u32 %s5586_s7, 4  ;;  %s91_s30 = sshll.u32 %s5587_s8, 4  ;;  %s70_s4 = int_to_ptr.vmem [resolvable:$true] %s69_s4  ;;  %s92_s30 = int_to_ptr.vmem [resolvable:$true] %s91_s30 }
  0x17   :  { %s5276_s9 = scalar_lea.vmem %s70_s4, 48  ;;  %s5280_s5 = scalar_lea.vmem %s70_s4, 64 }
  0x18   :  { %p5277_p0 = scmp.ne.s32.totalorder %s70_s4, %s5276_s9  ;;  %p5281_p1 = scmp.lt.s32.totalorder %s70_s4, %s70_s4 }
  0x19   :  { %p5282_p2 = scmp.lt.s32.totalorder %s5280_s5, %s5276_s9 }
  0x1b   :  { %p5283_p3 = por %p5282_p2, %p5281_p1 }
  0x1d   :  { %p5284_p4 = pnand %p5283_p3, %p5277_p0 }
  0x1f   :  { %5287 = shalt.err (!%p5284_p4)
}
  0x20   :  { %s7278_s10 = sld [smem:[#allocation43_spill]]  ;;  %s5296_s29 = scalar_lea.vmem %s92_s30, 16 }
  0x21   :  { %p5297_p5 = scmp.ne.s32.totalorder %s92_s30, %s5296_s29  ;;  %s5300_s1 = scalar_lea.vmem %s92_s30, 32 }
  0x22   :  { %p5301_p6 = scmp.lt.s32.totalorder %s92_s30, %s92_s30  ;;  %p5302_p7 = scmp.lt.s32.totalorder %s5300_s1, %s5296_s29 }
  0x24   :  { %p5303_p8 = por %p5302_p7, %p5301_p6 }
  0x26   :  { %72 = dma.hbm_to_vmem [thread:$0]  %s7278_s10, 48, %s70_s4, [#allocation7]  }
  0x27   :  { %p5304_p9 = pnand %p5303_p8, %p5297_p5 }
  0x29   :  { %5307 = shalt.err (!%p5304_p9)
}
  0x2a   :  { %s7279_s2 = sld [smem:[#allocation45_spill]]  ;;  %s5588_s3 = smov [#allocation12]  }
  0x2b   :  { %s111_s7 = sshll.u32 %s5588_s3, 4  ;;  %s5589_s8 = smov [#allocation15]   ;;  %s112_s7 = int_to_ptr.vmem [resolvable:$true] %s111_s7 }
  0x2c   :  { %s133_s9 = sshll.u32 %s5589_s8, 4  ;;  %s5316_s5 = scalar_lea.vmem %s112_s7, 128  ;;  %s134_s9 = int_to_ptr.vmem [resolvable:$true] %s133_s9 }
  0x2d   :  { %p5317_p10 = scmp.ne.s32.totalorder %s112_s7, %s5316_s5  ;;  %p5321_p11 = scmp.lt.s32.totalorder %s112_s7, %s112_s7 }
  0x2e   :  { %p5322_p12 = scmp.lt.s32.totalorder %s5316_s5, %s5316_s5 }
  0x30   :  { %94 = dma.hbm_to_vmem [thread:$0]  %s7279_s2, 16, %s92_s30, [#allocation10]  }
  0x31   :  { %p5323_p13 = por %p5322_p12, %p5321_p11 }
  0x33   :  { %p5324_p0 = pnand %p5323_p13, %p5317_p10 }
  0x35   :  { %5327 = shalt.err (!%p5324_p0)
}
  0x36   :  { %s7280_s0 = sld [smem:[#allocation47_spill]]  ;;  %s5336_s10 = scalar_lea.vmem %s134_s9, 80 }
  0x37   :  { %p5337_p1 = scmp.ne.s32.totalorder %s134_s9, %s5336_s10  ;;  %s5340_s30 = scalar_lea.vmem %s134_s9, 96 }
  0x38   :  { %p5341_p2 = scmp.lt.s32.totalorder %s134_s9, %s134_s9  ;;  %p5342_p3 = scmp.lt.s32.totalorder %s5340_s30, %s5336_s10 }
  0x3a   :  { %p5343_p4 = por %p5342_p3, %p5341_p2 }
  0x3c   :  { %114 = dma.hbm_to_vmem [thread:$0]  %s7280_s0, 128, %s112_s7, [#allocation13]  }
  0x3d   :  { %p5344_p5 = pnand %p5343_p4, %p5337_p1 }
  0x3f   :  { %5347 = shalt.err (!%p5344_p5)
}
  0x40   :  { %136 = dma.hbm_to_vmem [thread:$0]  %s7246_s14, 80, %s134_s9, [#allocation16]  }
  0x41   :  { %s5590_s6 = smov [#allocation18]   ;;  %s5591_s2 = smov [#allocation21]  }
  0x42   :  { %s157_s11 = sshll.u32 %s5590_s6, 4  ;;  %s181_s3 = sshll.u32 %s5591_s2, 4  ;;  %s158_s11 = int_to_ptr.vmem [resolvable:$true] %s157_s11  ;;  %s182_s3 = int_to_ptr.vmem [resolvable:$true] %s181_s3 }
  0x43   :  { %s5356_s8 = scalar_lea.vmem %s158_s11, 16  ;;  %s5360_s7 = scalar_lea.vmem %s158_s11, 32 }
  0x44   :  { %p5357_p6 = scmp.ne.s32.totalorder %s158_s11, %s5356_s8  ;;  %p5361_p7 = scmp.lt.s32.totalorder %s158_s11, %s158_s11 }
  0x45   :  { %p5362_p8 = scmp.lt.s32.totalorder %s5360_s7, %s5356_s8 }
  0x47   :  { %p5363_p9 = por %p5362_p8, %p5361_p7 }
  0x49   :  { %p5364_p10 = pnand %p5363_p9, %p5357_p6 }
  0x4b   :  { %5367 = shalt.err (!%p5364_p10)
}
  0x4c   :  { %160 = dma.hbm_to_vmem [thread:$0]  %s7250_s18, 16, %s158_s11, [#allocation19]  }
  0x4d   :  { %s5376_s28 = scalar_lea.vmem %s182_s3, 64  ;;  %p5381_p12 = scmp.lt.s32.totalorder %s182_s3, %s182_s3 }
  0x4e   :  { %p5377_p11 = scmp.ne.s32.totalorder %s182_s3, %s5376_s28  ;;  %p5382_p13 = scmp.lt.s32.totalorder %s5376_s28, %s5376_s28 }
  0x50   :  { %p5383_p0 = por %p5382_p13, %p5381_p12 }
  0x52   :  { %p5384_p1 = pnand %p5383_p0, %p5377_p11 }
  0x54   :  { %5387 = shalt.err (!%p5384_p1)
}
  0x55   :  { %184 = dma.hbm_to_vmem [thread:$0]  %s7253_s21, 64, %s182_s3, [#allocation22]  }
  0x56   :  { %s5592_s0 = smov [#allocation3]   ;;  %s5593_s30 = smov [#allocation8]  }
  0x57   :  { %s57_s10 = sshll.u32 %s5592_s0, 4  ;;  %s78_s29 = sshll.u32 %s5593_s30, 4  ;;  %s58_s10 = int_to_ptr.vmem [resolvable:$true] %s57_s10  ;;  %s79_s29 = int_to_ptr.vmem [resolvable:$true] %s78_s29 }
  0x58   :  { %s5396_s1 = scalar_lea.vmem %s58_s10, 64  ;;  %p5401_p3 = scmp.lt.s32.totalorder %s58_s10, %s58_s10 }
  0x59   :  { %p5397_p2 = scmp.ne.s32.totalorder %s58_s10, %s5396_s1  ;;  %p5402_p4 = scmp.lt.s32.totalorder %s5396_s1, %s5396_s1 }
  0x5b   :  { %p5403_p5 = por %p5402_p4, %p5401_p3 }
  0x5d   :  { %p5404_p6 = pnand %p5403_p5, %p5397_p2 }
  0x5f   :  { %5407 = shalt.err (!%p5404_p6)
}
  0x60   :  { %s7281_s11 = sld [smem:[#allocation41_spill]]  ;;  %s5416_s2 = scalar_lea.vmem %s79_s29, 1152 }
  0x61   :  { %p5417_p7 = scmp.ne.s32.totalorder %s79_s29, %s5416_s2  ;;  %p5421_p8 = scmp.lt.s32.totalorder %s79_s29, %s79_s29 }
  0x62   :  { %p5422_p9 = scmp.lt.s32.totalorder %s5416_s2, %s5416_s2 }
  0x64   :  { %p5423_p10 = por %p5422_p9, %p5421_p8 }
  0x66   :  { %60 = dma.hbm_to_vmem [thread:$0]  %s7281_s11, 64, %s58_s10, [#allocation4]  }
  0x67   :  { %p5424_p11 = pnand %p5423_p10, %p5417_p7 }
  0x69   :  { %5427 = shalt.err (!%p5424_p11)
}
  0x6a   :  { %s5594_s21 = smov 128   ;;  %s5595_s3 = smov 8  }
  0x6b   :  { %s7282_s5 = sld [smem:[#allocation44_spill]]  ;;  %s5596_s4 = smov [#allocation11]  }
  0x6c   :  { %s101_s28 = sshll.u32 %s5596_s4, 4  ;;  %s5597_s14 = smov [#allocation14]   ;;  %s102_s28 = int_to_ptr.vmem [resolvable:$true] %s101_s28 }
  0x6d   :  { %s123_s9 = sshll.u32 %s5597_s14, 4  ;;  %s5436_s0 = scalar_lea.vmem %s102_s28, 128  ;;  %s124_s9 = int_to_ptr.vmem [resolvable:$true] %s123_s9 }
  0x6e   :  { %p5437_p12 = scmp.ne.s32.totalorder %s102_s28, %s5436_s0  ;;  %p5441_p13 = scmp.lt.s32.totalorder %s102_s28, %s102_s28 }
  0x6f   :  { %p5442_p0 = scmp.lt.s32.totalorder %s5436_s0, %s5436_s0 }
  0x71   :  { %84 = dma.hbm_to_vmem [thread:$0]  %s7282_s5, 1152, %s79_s29, [#allocation7], %s5594_s21, %s5594_s21, %s5595_s3  }
  0x72   :  { %p5443_p1 = por %p5442_p0, %p5441_p13 }
  0x74   :  { %p5444_p2 = pnand %p5443_p1, %p5437_p12 }
  0x76   :  { %5447 = shalt.err (!%p5444_p2)
}
  0x77   :  { %s7283_s1 = sld [smem:[#allocation46_spill]]  ;;  %s5456_s18 = scalar_lea.vmem %s124_s9, 640 }
  0x78   :  { %p5457_p3 = scmp.ne.s32.totalorder %s124_s9, %s5456_s18  ;;  %p5461_p4 = scmp.lt.s32.totalorder %s124_s9, %s124_s9 }
  0x79   :  { %p5462_p5 = scmp.lt.s32.totalorder %s5456_s18, %s5456_s18 }
  0x7b   :  { %p5463_p6 = por %p5462_p5, %p5461_p4 }
  0x7d   :  { %104 = dma.hbm_to_vmem [thread:$0]  %s7283_s1, 128, %s102_s28, [#allocation10]  }
  0x7e   :  { %p5464_p7 = pnand %p5463_p6, %p5457_p3 }
  0x80   :  { %5467 = shalt.err (!%p5464_p7)
}
  0x81   :  { %126 = dma.hbm_to_vmem [thread:$0]  %s7245_s13, 640, %s124_s9, [#allocation13]  }
  0x82   :  { %s5598_s11 = smov [#allocation17]   ;;  %s5599_s21 = smov [#allocation20]  }
  0x83   :  { %s145_s2 = sshll.u32 %s5598_s11, 4  ;;  %s166_s3 = sshll.u32 %s5599_s21, 4  ;;  %s146_s2 = int_to_ptr.vmem [resolvable:$true] %s145_s2  ;;  %s167_s3 = int_to_ptr.vmem [resolvable:$true] %s166_s3 }
  0x84   :  { %s5476_s8 = scalar_lea.vmem %s146_s2, 16  ;;  %s5480_s7 = scalar_lea.vmem %s146_s2, 32 }
  0x85   :  { %p5477_p8 = scmp.ne.s32.totalorder %s146_s2, %s5476_s8  ;;  %p5481_p9 = scmp.lt.s32.totalorder %s146_s2, %s146_s2 }
  0x86   :  { %p5482_p10 = scmp.lt.s32.totalorder %s5480_s7, %s5476_s8 }
  0x88   :  { %p5483_p11 = por %p5482_p10, %p5481_p9 }
  0x8a   :  { %p5484_p12 = pnand %p5483_p11, %p5477_p8 }
  0x8c   :  { %5487 = shalt.err (!%p5484_p12)
}
  0x8d   :  { %148 = dma.hbm_to_vmem [thread:$0]  %s7248_s16, 16, %s146_s2, [#allocation16]  }
  0x8e   :  { %s5496_s28 = scalar_lea.vmem %s167_s3, 4608  ;;  %p5501_p0 = scmp.lt.s32.totalorder %s167_s3, %s167_s3 }
  0x8f   :  { %p5497_p13 = scmp.ne.s32.totalorder %s167_s3, %s5496_s28  ;;  %p5502_p1 = scmp.lt.s32.totalorder %s5496_s28, %s5496_s28 }
  0x91   :  { %p5503_p2 = por %p5502_p1, %p5501_p0 }
  0x93   :  { %p5504_p3 = pnand %p5503_p2, %p5497_p13 }
  0x95   :  { %5507 = shalt.err (!%p5504_p3)
}
  0x96   :  { %s5600_s13 = smov 512   ;;  %s5601_s14 = smov 32  }
  0x97   :  { %172 = dma.hbm_to_vmem [thread:$0]  %s7251_s19, 4608, %s167_s3, [#allocation19], %s5600_s13, %s5600_s13, %s5601_s14  }
  0x98   :  { %s5602_s10 = smov [#allocation23]  }
  0x99   :  { %s190_s30 = sshll.u32 %s5602_s10, 4  ;;  %s191_s30 = int_to_ptr.vmem [resolvable:$true] %s190_s30 }
  0x9a   :  { %s5516_s1 = scalar_lea.vmem %s191_s30, 30720  ;;  %p5521_p5 = scmp.lt.s32.totalorder %s191_s30, %s191_s30 }
  0x9b   :  { %p5517_p4 = scmp.ne.s32.totalorder %s191_s30, %s5516_s1  ;;  %p5522_p6 = scmp.lt.s32.totalorder %s5516_s1, %s5516_s1 }
  0x9d   :  { %p5523_p7 = por %p5522_p6, %p5521_p5 }
  0x9f   :  { %p5524_p8 = pnand %p5523_p7, %p5517_p4 }
  0xa1   :  { %5527 = shalt.err (!%p5524_p8)
}
  0xa2   :  { %s5603_s16 = smov 640   ;;  %s5604_s18 = smov 40  }
  0xa3   :  { %196 = dma.hbm_to_vmem [thread:$0]  %s7254_s22, 30720, %s191_s30, [#allocation22], %s5603_s16, %s5603_s16, %s5604_s18  }
  0xa4   :  { %s5605_s11 = smov [#allocation24]  }
  0xa5   :  { %s209_s2 = sshll.u32 %s5605_s11, 4  ;;  %s210_s2 = int_to_ptr.vmem [resolvable:$true] %s209_s2 }
  0xa6   :  { %s5536_s19 = scalar_lea.vmem %s210_s2, 16  ;;  %s5540_s21 = scalar_lea.vmem %s210_s2, 32 }
  0xa7   :  { %p5537_p9 = scmp.ne.s32.totalorder %s210_s2, %s5536_s19  ;;  %p5541_p10 = scmp.lt.s32.totalorder %s210_s2, %s210_s2 }
  0xa8   :  { %p5542_p11 = scmp.lt.s32.totalorder %s5540_s21, %s5536_s19 }
  0xaa   :  { %p5543_p12 = por %p5542_p11, %p5541_p10 }
  0xac   :  { %p5544_p13 = pnand %p5543_p12, %p5537_p9 }
  0xae   :  { %5547 = shalt.err (!%p5544_p13)
}
  0xaf   :  { %212 = dma.hbm_to_vmem [thread:$0]  %s7258_s26, 16, %s210_s2, [#allocation25]  }
  0xb0   :  { %5568 = dma.done.wait [#allocation4], 64  }
  0xb1   :  { %5569 = vsyncadd [#allocation4], 4294967232 }
  0xb2   :  { %5570 = dma.done.wait [#allocation7], 1200  }
  0xb3   :  { %5571 = vsyncadd [#allocation7], 4294966096 }
  0xb4   :  { %5572 = dma.done.wait [#allocation10], 144  }
  0xb5   :  { %5573 = vsyncadd [#allocation10], 4294967152 }
  0xb6   :  { %5574 = dma.done.wait [#allocation13], 768  }
  0xb7   :  { %5575 = vsyncadd [#allocation13], 4294966528 }
  0xb8   :  { %5576 = dma.done.wait [#allocation16], 96  }
  0xb9   :  { %5577 = vsyncadd [#allocation16], 4294967200 }
  0xba   :  { %5578 = dma.done.wait [#allocation19], 4624  }
  0xbb   :  { %5579 = vsyncadd [#allocation19], 4294962672 }
  0xbc   :  { %5580 = dma.done.wait [#allocation22], 30784  }
  0xbd   :  { %5581 = vsyncadd [#allocation22], 4294936512 }
  0xbe   :  { %5582 = dma.done.wait [#allocation25], 16  }
  0xbf   :  { %5583 = vsyncadd [#allocation25], 4294967280  ;;  %v5606_v0 = vmov 0.0   ;;  %s7284_s7 = sld [smem:[#allocation42_spill]]  ;;  %vm323_vm0 = vcmask 588800   ;;  %v308_v30 = vlaneseq  ;;  %vm618_vm1 = vcmask 1043456  }
  0xc0   :  { %394 = vmatprep.mubr.f32.mxu1 %v5606_v0  ;;  %s7285_s3 = sld [smem:[#allocation40_spill]]  ;;  %v5989_v34 = vld [vmem:[#allocation6] sm:$0x7]  ;;  %v6087_v58 = vld [vmem:[#allocation3] sm:$0xf]  ;;  %v6097_v59 = vld [vmem:[#allocation8 + $0x40] sm:$0xff] }
  0xc1   :  { %s7286_s28 = sld [smem:[#allocation36_spill]]  ;;  %v5981_v31 = vshrl.u32 %v308_v30, 7  ;;  %vm605_vm2 = vcmask 31744   ;;  %vm1924_vm3 = vcmask 80896   ;;  %vm1931_vm4 = vcmask 1041408  }
  0xc2   :  { %vm2018_vm5 = vcmask 392192   ;;  %vm3016_vm6 = vcmask 74752   ;;  %vm5607_vm7 = vmmov 0   ;;  %vm4449_vm8 = vcmask 779264  }
  0xc3   :  { %v5984_v32 = vsub.s32 0, %v5981_v31  ;;  %v5987_v33 = vsub.s32 1, %v5981_v31 }
  0xc5   :  { %v5795_v1 = vld [vmem:[%s7284_s7 + $0xc8] sm:$0xff]  ;;  %v5800_v2 = vld [vmem:[%s7284_s7 + $0xc0] sm:$0xff]  ;;  %v5805_v3 = vld [vmem:[%s7284_s7 + $0xb0] sm:$0xff]  ;;  %v5993_v35 = vrot.slane %v5989_v34, %v5984_v32  ;;  %v5997_v36 = vrot.slane %v5989_v34, %v5987_v33 }
  0xc6   :  { %344 = vmatprep.subr.mxu1 %v5795_v1  ;;  %v5811_v4 = vld [vmem:[%s7284_s7 + $0xa8] sm:$0xff]  ;;  %v5817_v5 = vld [vmem:[%s7284_s7 + $0x98] sm:$0xff]  ;;  %v5823_v6 = vld [vmem:[%s7284_s7 + $0x90] sm:$0xff] }
  0xc7   :  { %345 = vmatpush1.msra.mxu1 %v5800_v2  ;;  %v5829_v7 = vld [vmem:[%s7284_s7 + $0x80] sm:$0xff]  ;;  %v5835_v8 = vld [vmem:[%s7284_s7 + $0x78] sm:$0xff]  ;;  %v5841_v9 = vld [vmem:[%s7284_s7 + $0x68] sm:$0xff] }
  0xc8   :  { %346 = vmatprep.subr.mxu1 %v5805_v3  ;;  %v5846_v10 = vld [vmem:[%s7285_s3 + $0x40] sm:$0xff]  ;;  %v5858_v12 = vld [vmem:[%s7285_s3 + $0x38] sm:$0xff]  ;;  %v5864_v13 = vld [vmem:[%s7284_s7 + $0x50] sm:$0xff] }
  0xc9   :  { %347 = vmatpush1.msra.mxu1 %v5811_v4  ;;  %v5852_v11 = vld [vmem:[%s7284_s7 + $0x60] sm:$0xff]  ;;  %4844 = vmatprep.subr.mxu0 %v5846_v10  ;;  %v5870_v14 = vld [vmem:[%s7285_s3 + $0x30] sm:$0xff]  ;;  %v5876_v15 = vld [vmem:[%s7284_s7 + $0x48] sm:$0xff] }
  0xca   :  { %348 = vmatprep.subr.mxu1 %v5817_v5  ;;  %4845 = vmatpush3.msra.mxu0 %v5846_v10  ;;  %v5883_v16 = vld [vmem:[%s7284_s7 + $0x38] sm:$0xff]  ;;  %v5889_v17 = vld [vmem:[%s7285_s3 + $0x28] sm:$0xff]  ;;  %v5895_v18 = vld [vmem:[%s7284_s7 + $0x30] sm:$0xff] }
  0xcb   :  { %349 = vmatpush1.msra.mxu1 %v5823_v6  ;;  %4846 = vmatprep.subr.mxu0 %v5858_v12  ;;  %v5902_v19 = vld [vmem:[%s7284_s7 + $0x20] sm:$0xff]  ;;  %v5909_v20 = vld [vmem:[%s7284_s7 + $0x18] sm:$0xff]  ;;  %v5916_v21 = vld [vmem:[%s7284_s7 + $0x8] sm:$0xff] }
  0xcc   :  { %350 = vmatprep.subr.mxu1 %v5829_v7  ;;  %4847 = vmatpush3.msra.mxu0 %v5858_v12  ;;  %v5923_v22 = vld [vmem:[%s7284_s7] sm:$0xff]  ;;  %v5939_v24 = vld [vmem:[%s7286_s28 + $0x8] sm:$0xff]  ;;  %v5955_v26 = vld [vmem:[%s7285_s3 + $0x18] sm:$0xff] }
  0xcd   :  { %351 = vmatpush1.msra.mxu1 %v5835_v8  ;;  %4848 = vmatprep.subr.mxu0 %v5870_v14  ;;  %v5929_v23 = vld [vmem:[%s7286_s28] sm:$0xff]  ;;  %v5962_v27 = vld [vmem:[%s7285_s3 + $0x10] sm:$0xff]  ;;  %v5969_v28 = vld [vmem:[%s7285_s3 + $0x8] sm:$0xff] }
  0xce   :  { %352 = vmatprep.subr.mxu1 %v5841_v9  ;;  %4849 = vmatpush3.msra.mxu0 %v5870_v14  ;;  %v5948_v25 = vld [vmem:[%s7285_s3 + $0x20] sm:$0xff]  ;;  %v6029_v49 = vld [vmem:[%s7284_s7 + $0xd0] sm:$0xff]  ;;  %v6036_v50 = vld [vmem:[%s7284_s7 + $0xb8] sm:$0xff] }
  0xcf   :  { %353 = vmatpush1.msra.mxu1 %v5852_v11  ;;  %4850 = vmatprep.subr.mxu0 %v5889_v17  ;;  %v5976_v29 = vld [vmem:[%s7285_s3] sm:$0xff]  ;;  %v6050_v52 = vld [vmem:[%s7284_s7 + $0x88] sm:$0xff]  ;;  %v6057_v53 = vld [vmem:[%s7284_s7 + $0x70] sm:$0xff] }
  0xd0   :  { %354 = vmatprep.subr.mxu1 %v5864_v13  ;;  %4851 = vmatpush3.msra.mxu0 %v5889_v17  ;;  %v6043_v51 = vld [vmem:[%s7284_s7 + $0xa0] sm:$0xff]  ;;  %v6064_v54 = vld [vmem:[%s7284_s7 + $0x58] sm:$0xff]  ;;  %v6076_v56 = vld [vmem:[%s7284_s7 + $0x28] sm:$0xff] }
  0xd1   :  { %355 = vmatpush1.msra.mxu1 %v5876_v15  ;;  %4852 = vmatprep.subr.mxu0 %v5948_v25  ;;  %v6071_v55 = vld [vmem:[%s7284_s7 + $0x40] sm:$0xff]  ;;  %v6083_v57 = vld [vmem:[%s7284_s7 + $0x10] sm:$0xff] }
  0xd2   :  { %356 = vmatprep.subr.mxu1 %v5883_v16  ;;  %4853 = vmatpush3.msra.mxu0 %v5948_v25 }
  0xd3   :  { %357 = vmatpush1.msra.mxu1 %v5895_v18  ;;  %4854 = vmatprep.subr.mxu0 %v5955_v26 }
  0xd4   :  { %358 = vmatprep.subr.mxu1 %v5902_v19  ;;  %4855 = vmatpush3.msra.mxu0 %v5955_v26 }
  0xd5   :  { %359 = vmatpush1.msra.mxu1 %v5909_v20  ;;  %4856 = vmatprep.subr.mxu0 %v5962_v27 }
  0xd6   :  { %360 = vmatprep.subr.mxu1 %v5916_v21  ;;  %4857 = vmatpush3.msra.mxu0 %v5962_v27 }
  0xd7   :  { %361 = vmatpush1.msra.mxu1 %v5923_v22  ;;  %4858 = vmatprep.subr.mxu0 %v5969_v28 }
  0xd8   :  { %4473 = vmatmul.mubr.msk.f32.vlgmr.msra.gmra.mxu1 %vm323_vm0, %v5929_v23  ;;  %4859 = vmatpush3.msra.mxu0 %v5969_v28 }
  0xd9   :  { %400 = vmatprep.mubr.f32.mxu1 %v5606_v0  ;;  %4860 = vmatprep.subr.mxu0 %v5976_v29 }
  0xda   :  { %4861 = vmatpush3.msra.mxu0 %v5976_v29  ;;  %4823 = vmatprep.subr.mxu1 %v6029_v49 }
  0xdb   :  { %898 = vmatprep.subr.mxu0 %v5795_v1  ;;  %4824 = vmatpush3.msra.mxu1 %v6029_v49 }
  0xdc   :  { %4474 = vmatmul.mubr.msk.f32.gmra.mxu1 %vm323_vm0, %v5939_v24  ;;  %4825 = vmatprep.subr.mxu1 %v6036_v50 }
  0xdd   :  { %4841 = vmatprep.mubr.msk.f32.mxu1 %vm323_vm0, %v5929_v23  ;;  %4826 = vmatpush3.msra.mxu1 %v6036_v50 }
  0xde   :  { %4827 = vmatprep.subr.mxu1 %v6043_v51 }
  0xdf   :  { %4828 = vmatpush3.msra.mxu1 %v6043_v51 }
  0xe0   :  { %4829 = vmatprep.subr.mxu1 %v6050_v52 }
  0xe1   :  { %4830 = vmatpush3.msra.mxu1 %v6050_v52 }
  0xe2   :  { %4831 = vmatprep.subr.mxu1 %v6057_v53 }
  0xe3   :  { %4832 = vmatpush3.msra.mxu1 %v6057_v53 }
  0xe4   :  { %4833 = vmatprep.subr.mxu1 %v6064_v54 }
  0xe5   :  { %4834 = vmatpush3.msra.mxu1 %v6064_v54 }
  0xe6   :  { %4835 = vmatprep.subr.mxu1 %v6071_v55 }
  0xe7   :  { %4836 = vmatpush3.msra.mxu1 %v6071_v55 }
  0xe8   :  { %4837 = vmatprep.subr.mxu1 %v6076_v56 }
  0xe9   :  { %4838 = vmatpush3.msra.mxu1 %v6076_v56 }
  0xea   :  { %4839 = vmatprep.subr.mxu1 %v6083_v57 }
  0xeb   :  { %4840 = vmatpush3.msra.mxu1 %v6083_v57 }
  0xec   :  { %4842 = vmatmul.mubr.msk.f32.vlgmr.msra.gmra.mxu1 %vm323_vm0, %v5939_v24  ;;  %4868 = vmatprep.subr.msk.mxu1 %vm618_vm1, %v6087_v58 }
  0xed   :  { %4869 = vmatpush3.msk.msra.mxu1 %vm618_vm1, %v6087_v58 }
  0xee   :  { %4876 = vmatprep.subr.mxu1 %v6097_v59 }
 0x198   :  { %v396_v37 = vpop.f32.mrf.mxu1 }
 0x199   :  { %v397_v39 = vadd.f32 %v396_v37, %v5993_v35  ;;  %v6101_v37 = vld [vmem:[#allocation8 + $0x38] sm:$0xff] }
 0x19a   :  { %v398_v38 = vpop.f32.mrf.mxu1 }
 0x19b   :  { %v399_v40 = vadd.f32 %v398_v38, %v5997_v36 }
 0x19c   :  { %v402_v41 = vpop.f32.mrf.mxu1 }
 0x19d   :  { %v482_v42 = vmul.f32 %v399_v40, %v397_v39  ;;  %v403_v43 = vadd.f32 %v402_v41, %v5993_v35  ;;  %v6105_v41 = vld [vmem:[#allocation8 + $0x30] sm:$0xff] }
 0x19e   :  { %v404_v44 = vpop.f32.mrf.mxu1 }
 0x19f   :  { %v405_v45 = vadd.f32 %v404_v44, %v5997_v36  ;;  %4862 = vmatprep.mubr.msk.f32.mxu0 %vm323_vm0, %v482_v42  ;;  %v484_v47 = vmul.f32 %v403_v43, %v399_v40  ;;  %v6110_v42 = vld [vmem:[#allocation8 + $0x28] sm:$0xff]  ;;  %v6121_v44 = vld [vmem:[#allocation8 + $0x18] sm:$0xff] }
 0x1a1   :  { %v483_v46 = vmul.f32 %v405_v45, %v397_v39  ;;  %v485_v48 = vmul.f32 %v405_v45, %v403_v43  ;;  %v6117_v43 = vld [vmem:[#allocation8 + $0x20] sm:$0xff]  ;;  %v6125_v45 = vld [vmem:[#allocation8 + $0x10] sm:$0xff] }
 0x1a3   :  { %4863 = vmatmul.mubr.msk.f32.vlgmr.msra.gmra.mxu0 %vm323_vm0, %v483_v46  ;;  %v6129_v46 = vld [vmem:[#allocation8 + $0x8] sm:$0xff] }
 0x1a4   :  { %4865 = vmatprep.mubr.msk.f32.mxu0 %vm323_vm0, %v484_v47  ;;  %899 = vmatpush1.msra.mxu0 %v5800_v2  ;;  %v6133_v47 = vld [vmem:[#allocation8] sm:$0xff] }
 0x1a5   :  { %900 = vmatprep.subr.mxu0 %v5805_v3 }
 0x1a6   :  { %901 = vmatpush1.msra.mxu0 %v5811_v4 }
 0x1a7   :  { %4866 = vmatmul.mubr.msk.f32.gmra.mxu0 %vm323_vm0, %v485_v48  ;;  %902 = vmatprep.subr.mxu0 %v5817_v5  ;;  %v6139_v48 = vsub.s32 2, %v5981_v31 }
 0x1a8   :  { %903 = vmatpush1.msra.mxu0 %v5823_v6  ;;  %948 = vmatprep.mubr.f32.mxu0 %v5606_v0 }
 0x1a9   :  { %904 = vmatprep.subr.mxu0 %v5829_v7 }
 0x1aa   :  { %905 = vmatpush1.msra.mxu0 %v5835_v8 }
 0x1ab   :  { %906 = vmatprep.subr.mxu0 %v5841_v9 }
 0x1ac   :  { %907 = vmatpush1.msra.mxu0 %v5852_v11 }
 0x1ad   :  { %908 = vmatprep.subr.mxu0 %v5864_v13 }
 0x1ae   :  { %909 = vmatpush1.msra.mxu0 %v5876_v15 }
 0x1af   :  { %910 = vmatprep.subr.mxu0 %v5883_v16 }
 0x1b0   :  { %911 = vmatpush1.msra.mxu0 %v5895_v18 }
 0x1b1   :  { %912 = vmatprep.subr.mxu0 %v5902_v19 }
 0x1b2   :  { %913 = vmatpush1.msra.mxu0 %v5909_v20 }
 0x1b3   :  { %914 = vmatprep.subr.mxu0 %v5916_v21 }
 0x1b4   :  { %915 = vmatpush1.msra.mxu0 %v5923_v22 }
 0x1b5   :  { %4918 = vmatprep.subr.mxu0 %v5846_v10 }
 0x263   :  { %v4864_v60 = vpop.f32.mrf.mxu0 }
 0x265   :  { %v564_v61 = vpop.f32.mrf.mxu0 }
 0x266   :  { %v583_v62 = vmax.f32 %v564_v61, %v4864_v60 }
 0x267   :  { %v4867_v63 = vpop.f32.mrf.mxu0 }
 0x268   :  { %v584_v1 = vsub.f32 %v564_v61, %v583_v62  ;;  %v587_v2 = vsub.f32 %v4864_v60, %v583_v62  ;;  %v4843_v60 = vpop.f32.mrf.mxu1  ;;  %v6143_v61 = vrot.slane %v5989_v34, %v6139_v48  ;;  %v6168_v34 = vld [vmem:[#allocation9] ss:$0 sm:$0xff] }
 0x269   :  { %v574_v3 = vpop.f32.mrf.mxu0 }
 0x26a   :  { %v585_v4 = vmul.f32 1.442695, %v584_v1  ;;  %v588_v5 = vmul.f32 1.442695, %v587_v2  ;;  %v594_v6 = vmax.f32 %v574_v3, %v4867_v63  ;;  %v473_v62 = vpop.f32.mrf.mxu1  ;;  %v479_v1 = vadd.f32 %v4843_v60, %v6143_v61 }
 0x26b   :  { %v474_v2 = vadd.f32 %v473_v62, %v6143_v61 }
 0x26c   :  { %5180 = vpow2.f32 %v585_v4  ;;  %v595_v7 = vsub.f32 %v574_v3, %v594_v6  ;;  %v598_v8 = vsub.f32 %v4867_v63, %v594_v6 }
 0x26d   :  { %5182 = vpow2.f32 %v588_v5 }
 0x26e   :  { %v596_v9 = vmul.f32 1.442695, %v595_v7  ;;  %v599_v11 = vmul.f32 1.442695, %v598_v8 }
 0x270   :  { %5184 = vpow2.f32 %v596_v9 }
 0x271   :  { %5186 = vpow2.f32 %v599_v11 }
 0x279   :  { %v5181_v13 = vpop.eup %5180 }
 0x27a   :  { %v5183_v15 = vpop.eup %5182 }
 0x27b   :  { %v590_v16 = vadd.f32 %v5183_v15, %v5181_v13 }
 0x27d   :  { %v5185_v18 = vpop.eup %5184  ;;  %5188 = vrcp.f32 %v590_v16 }
 0x27e   :  { %v5187_v19 = vpop.eup %5186 }
 0x27f   :  { %v601_v20 = vadd.f32 %v5187_v19, %v5185_v18 }
 0x281   :  { %5190 = vrcp.f32 %v601_v20 }
 0x28a   :  { %v5189_v21 = vpop.eup %5188 }
 0x28b   :  { %v592_v22 = vmul.f32 %v5189_v21, %v5181_v13  ;;  %v593_v30 = vmul.f32 %v5189_v21, %v5183_v15 }
 0x28d   :  { %4870 = vmatprep.mubr.msk.f32.mxu1 %vm605_vm2, %v592_v22 }
 0x28e   :  { %v5191_v38 = vpop.eup %5190  ;;  %4871 = vmatmul.mubr.msk.f32.vlgmr.msra.gmra.mxu1 %vm605_vm2, %v593_v30 }
 0x28f   :  { %v603_v39 = vmul.f32 %v5191_v38, %v5185_v18  ;;  %v604_v40 = vmul.f32 %v5191_v38, %v5187_v19  ;;  %4877 = vmatpush3.msra.mxu1 %v6097_v59 }
 0x290   :  { %4878 = vmatprep.subr.mxu1 %v6101_v37 }
 0x291   :  { %4873 = vmatprep.mubr.msk.f32.mxu1 %vm605_vm2, %v603_v39  ;;  %4879 = vmatpush3.msra.mxu1 %v6101_v37 }
 0x292   :  { %4874 = vmatmul.mubr.msk.f32.gmra.mxu1 %vm605_vm2, %v604_v40  ;;  %4880 = vmatprep.subr.mxu1 %v6105_v41 }
 0x293   :  { %4881 = vmatpush3.msra.mxu1 %v6105_v41 }
 0x294   :  { %4882 = vmatprep.subr.mxu1 %v6110_v42 }
 0x295   :  { %4883 = vmatpush3.msra.mxu1 %v6110_v42 }
 0x296   :  { %4884 = vmatprep.subr.mxu1 %v6117_v43 }
 0x297   :  { %4885 = vmatpush3.msra.mxu1 %v6117_v43 }
 0x298   :  { %4886 = vmatprep.subr.mxu1 %v6121_v44 }
 0x299   :  { %4887 = vmatpush3.msra.mxu1 %v6121_v44 }
 0x29a   :  { %4888 = vmatprep.subr.mxu1 %v6125_v45 }
 0x29b   :  { %4889 = vmatpush3.msra.mxu1 %v6125_v45 }
 0x29c   :  { %4890 = vmatprep.subr.mxu1 %v6129_v46 }
 0x29d   :  { %4891 = vmatpush3.msra.mxu1 %v6129_v46 }
 0x29e   :  { %4892 = vmatprep.subr.mxu1 %v6133_v47 }
 0x29f   :  { %4893 = vmatpush3.msra.mxu1 %v6133_v47 }
 0x2a0   :  { %4897 = vmatprep.subr.mxu1 %v6029_v49 }
 0x34e   :  { %v4872_v63 = vpop.f32.mrf.mxu1 }
 0x34f   :  { %v708_v4 = vmul.f32 %v4872_v63, %v479_v1 }
 0x350   :  { %v688_v3 = vpop.f32.mrf.mxu1 }
 0x351   :  { %v707_v5 = vmul.f32 %v688_v3, %v474_v2 }
 0x352   :  { %v4875_v6 = vpop.f32.mrf.mxu1 }
 0x353   :  { %v709_v7 = vadd.f32 %v708_v4, %v707_v5  ;;  %v711_v9 = vmul.f32 %v4875_v6, %v479_v1 }
 0x354   :  { %v698_v8 = vpop.f32.mrf.mxu1 }
 0x355   :  { %v710_v11 = vmul.f32 %v698_v8, %v474_v2  ;;  %4894 = vmatprep.mubr.msk.f32.mxu1 %vm323_vm0, %v709_v7 }
 0x357   :  { %v712_v13 = vadd.f32 %v711_v9, %v710_v11 }
 0x359   :  { %4895 = vmatmul.mubr.msk.f32.vlgmr.msra.gmra.mxu1 %vm323_vm0, %v712_v13  ;;  %v6180_v13 = vld [vmem:[#allocation11] sm:$0xff] }
 0x35a   :  { %4898 = vmatpush3.msra.mxu1 %v6029_v49 }
 0x35b   :  { %4899 = vmatprep.subr.mxu1 %v6036_v50 }
 0x35c   :  { %4900 = vmatpush3.msra.mxu1 %v6036_v50 }
 0x35d   :  { %4901 = vmatprep.subr.mxu1 %v6043_v51 }
 0x35e   :  { %4902 = vmatpush3.msra.mxu1 %v6043_v51 }
 0x35f   :  { %4903 = vmatprep.subr.mxu1 %v6050_v52 }
 0x360   :  { %4904 = vmatpush3.msra.mxu1 %v6050_v52 }
 0x361   :  { %4905 = vmatprep.subr.mxu1 %v6057_v53 }
 0x362   :  { %4906 = vmatpush3.msra.mxu1 %v6057_v53 }
 0x363   :  { %4907 = vmatprep.subr.mxu1 %v6064_v54 }
 0x364   :  { %4908 = vmatpush3.msra.mxu1 %v6064_v54 }
 0x365   :  { %4909 = vmatprep.subr.mxu1 %v6071_v55 }
 0x366   :  { %4910 = vmatpush3.msra.mxu1 %v6071_v55 }
 0x367   :  { %4911 = vmatprep.subr.mxu1 %v6076_v56 }
 0x368   :  { %4912 = vmatpush3.msra.mxu1 %v6076_v56 }
 0x369   :  { %4913 = vmatprep.subr.mxu1 %v6083_v57 }
 0x36a   :  { %4914 = vmatpush3.msra.mxu1 %v6083_v57 }
 0x36b   :  { %4942 = vmatprep.subr.msk.mxu1 %vm618_vm1, %v6087_v58 }
 0x419   :  { %v4896_v49 = vpop.f32.mrf.mxu1 }
 0x41a   :  { %v797_v50 = vadd.f32 %v4896_v49, %v6168_v34 }
 0x41b   :  { %v791_v51 = vpop.f32.mrf.mxu1 }
 0x41c   :  { %v6172_v52 = vadd.f32 %v797_v50, %v5939_v24  ;;  %v792_v53 = vadd.f32 %v6168_v34, %v791_v51  ;;  %v6182_v51 = vld [vmem:[#allocation12] sm:$0xff] }
 0x41e   :  { %v800_v54 = vadd.f32 %v792_v53, %v5929_v23  ;;  %v840_v55 = vsel %vm323_vm0, %v6172_v52, 0.0 }
 0x41f   :  { %841 = vadd.xlane.f32.xlu1 %v840_v55 }
 0x420   :  { %v802_v56 = vsel %vm323_vm0, %v800_v54, 0.0 }
 0x421   :  { %803 = vadd.xlane.f32.xlu0 %v802_v56 }
 0x4a8   :  { %v842_v2 = vpop.xlane.xlu1 %841 }
 0x4a9   :  { %v843_v3 = vrot.slane %v842_v2, 4 }
 0x4aa   :  { %v804_v57 = vpop.xlane.xlu0 %803 }
 0x4ab   :  { %v805_v15 = vrot.slane %v804_v57, 4  ;;  %v844_v4 = vadd.f32 %v843_v3, %v842_v2 }
 0x4ad   :  { %v806_v16 = vadd.f32 %v805_v15, %v804_v57  ;;  %v845_v6 = vrot.slane %v844_v4, 2 }
 0x4af   :  { %v807_v18 = vrot.slane %v806_v16, 2  ;;  %v846_v7 = vadd.f32 %v845_v6, %v844_v4 }
 0x4b1   :  { %v808_v19 = vadd.f32 %v807_v18, %v806_v16  ;;  %v847_v8 = vrot.slane %v846_v7, 1 }
 0x4b3   :  { %v809_v20 = vrot.slane %v808_v19, 1  ;;  %v848_v11 = vadd.f32 %v847_v8, %v846_v7 }
 0x4b5   :  { %v810_v21 = vadd.f32 %v809_v20, %v808_v19 }
 0x4b7   :  { %5133 = vpush %v810_v21 }
 0x4e8   :  { %s5134_s7 = spop %5133 }
 0x4e9   :  { %s814_s18 = smul.f32 0.0017361111, %s5134_s7 }
 0x4eb   :  { %v815_v24 = vstv %s814_s18 }
 0x4ec   :  { %v816_v22 = vsub.f32 %v800_v54, %v815_v24 }
 0x4ee   :  { %v817_v23 = vmul.f32 %v816_v22, %v816_v22 }
 0x4f0   :  { %v818_v30 = vsel %vm323_vm0, %v817_v23, 0.0 }
 0x4f1   :  { %819 = vadd.xlane.f32.xlu0 %v818_v30 }
 0x57a   :  { %v820_v38 = vpop.xlane.xlu0 %819 }
 0x57b   :  { %v821_v39 = vrot.slane %v820_v38, 4 }
 0x57d   :  { %v822_v40 = vadd.f32 %v821_v39, %v820_v38 }
 0x57f   :  { %v823_v60 = vrot.slane %v822_v40, 2 }
 0x581   :  { %v824_v62 = vadd.f32 %v823_v60, %v822_v40 }
 0x583   :  { %v825_v63 = vrot.slane %v824_v62, 1 }
 0x585   :  { %v826_v1 = vadd.f32 %v825_v63, %v824_v62 }
 0x587   :  { %5135 = vpush %v826_v1 }
 0x5b8   :  { %s5136_s29 = spop %5135 }
 0x5b9   :  { %s830_s6 = smul.f32 0.0017361111, %s5136_s29 }
 0x5bb   :  { %s831_s11 = sadd.f32 1e-05, %s830_s6 }
 0x5bd   :  { %v832_v5 = vstv %s831_s11 }
 0x5be   :  { %5192 = vrsqrt.f32 %v832_v5 }
 0x5cb   :  { %v5193_v9 = vpop.eup %5192 }
 0x5cc   :  { %5137 = vpush %v5193_v9 }
 0x5cd   :  { %5139 = vpush %v848_v11 }
 0x5fd   :  { %s5138_s3 = spop %5137 }
 0x5fe   :  { %v835_v49 = vstv %s5138_s3  ;;  %s5140_s2 = spop %5139 }
 0x5ff   :  { %v836_v50 = vmul.f32 %v835_v49, %v816_v22  ;;  %s852_s19 = smul.f32 0.0017361111, %s5140_s2 }
 0x601   :  { %v837_v53 = vmul.f32 %v836_v50, %v6180_v13  ;;  %v853_v55 = vstv %s852_s19 }
 0x602   :  { %v854_v56 = vsub.f32 %v6172_v52, %v853_v55 }
 0x603   :  { %v838_v57 = vadd.f32 %v837_v53, %v6182_v51 }
 0x604   :  { %v855_v15 = vmul.f32 %v854_v56, %v854_v56 }
 0x605   :  { %v6187_v16 = vadd.f32 %v838_v57, %v800_v54 }
 0x606   :  { %v856_v18 = vsel %vm323_vm0, %v855_v15, 0.0 }
 0x607   :  { %857 = vadd.xlane.f32.xlu1 %v856_v18  ;;  %4489 = vmatmul.mubr.msk.f32.vlgmr.msra.gmra.mxu0 %vm323_vm0, %v6187_v16 }
 0x608   :  { %4915 = vmatprep.mubr.msk.f32.mxu1 %vm323_vm0, %v6187_v16  ;;  %954 = vmatprep.mubr.f32.mxu0 %v5606_v0 }
 0x609   :  { %4919 = vmatpush3.msra.mxu0 %v5846_v10 }
 0x60a   :  { %4920 = vmatprep.subr.mxu0 %v5858_v12 }
 0x60b   :  { %4921 = vmatpush3.msra.mxu0 %v5858_v12 }
 0x60c   :  { %4922 = vmatprep.subr.mxu0 %v5870_v14 }
 0x60d   :  { %4923 = vmatpush3.msra.mxu0 %v5870_v14 }
 0x60e   :  { %4924 = vmatprep.subr.mxu0 %v5889_v17 }
 0x60f   :  { %4925 = vmatpush3.msra.mxu0 %v5889_v17 }
 0x610   :  { %4926 = vmatprep.subr.mxu0 %v5948_v25 }
 0x611   :  { %4927 = vmatpush3.msra.mxu0 %v5948_v25 }
 0x612   :  { %4928 = vmatprep.subr.mxu0 %v5955_v26 }
 0x613   :  { %4929 = vmatpush3.msra.mxu0 %v5955_v26 }
 0x614   :  { %4930 = vmatprep.subr.mxu0 %v5962_v27 }
 0x615   :  { %4931 = vmatpush3.msra.mxu0 %v5962_v27 }
 0x616   :  { %4932 = vmatprep.subr.mxu0 %v5969_v28 }
 0x617   :  { %4933 = vmatpush3.msra.mxu0 %v5969_v28 }
 0x618   :  { %4934 = vmatprep.subr.mxu0 %v5976_v29 }
 0x619   :  { %4935 = vmatpush3.msra.mxu0 %v5976_v29 }
 0x690   :  { %v858_v10 = vpop.xlane.xlu1 %857 }
 0x691   :  { %v859_v12 = vrot.slane %v858_v10, 4 }
 0x693   :  { %v860_v14 = vadd.f32 %v859_v12, %v858_v10 }
 0x695   :  { %v861_v17 = vrot.slane %v860_v14, 2 }
 0x697   :  { %v862_v25 = vadd.f32 %v861_v17, %v860_v14 }
 0x699   :  { %v863_v54 = vrot.slane %v862_v25, 1 }
 0x69b   :  { %v864_v19 = vadd.f32 %v863_v54, %v862_v25 }
 0x69d   :  { %5141 = vpush %v864_v19 }
 0x6c7   :  { %v950_v28 = vpop.f32.mrf.mxu0 }
 0x6c8   :  { %v951_v30 = vadd.f32 %v950_v28, %v5993_v35 }
 0x6c9   :  { %v952_v21 = vpop.f32.mrf.mxu0 }
 0x6ca   :  { %v953_v22 = vadd.f32 %v952_v21, %v5997_v36 }
 0x6cc   :  { %v1036_v39 = vmul.f32 %v953_v22, %v951_v30 }
 0x6ce   :  { %s5142_s21 = spop %5141 }
 0x6cf   :  { %s868_s8 = smul.f32 0.0017361111, %s5142_s21 }
 0x6d1   :  { %s869_s22 = sadd.f32 1e-05, %s868_s8 }
 0x6d3   :  { %v870_v26 = vstv %s869_s22 }
 0x6d4   :  { %5194 = vrsqrt.f32 %v870_v26 }
 0x6e1   :  { %v5195_v27 = vpop.eup %5194 }
 0x6e2   :  { %5143 = vpush %v5195_v27 }
 0x713   :  { %s5144_s26 = spop %5143 }
 0x714   :  { %v873_v20 = vstv %s5144_s26 }
 0x715   :  { %v874_v29 = vmul.f32 %v873_v20, %v854_v56 }
 0x717   :  { %v875_v24 = vmul.f32 %v874_v29, %v6180_v13 }
 0x719   :  { %v876_v23 = vadd.f32 %v875_v24, %v6182_v51 }
 0x71b   :  { %v6217_v38 = vadd.f32 %v876_v23, %v6172_v52 }
 0x71d   :  { %4490 = vmatmul.mubr.msk.f32.gmra.mxu0 %vm323_vm0, %v6217_v38  ;;  %4916 = vmatmul.mubr.msk.f32.vlgmr.msra.gmra.mxu1 %vm323_vm0, %v6217_v38 }
 0x71e   :  { %4936 = vmatprep.mubr.msk.f32.mxu0 %vm323_vm0, %v1036_v39  ;;  %4943 = vmatpush3.msk.msra.mxu1 %vm618_vm1, %v6087_v58 }
 0x71f   :  { %4950 = vmatprep.subr.mxu1 %v6097_v59 }
 0x7dd   :  { %v956_v40 = vpop.f32.mrf.mxu0 }
 0x7de   :  { %v957_v60 = vadd.f32 %v956_v40, %v5993_v35 }
 0x7df   :  { %v958_v62 = vpop.f32.mrf.mxu0 }
 0x7e0   :  { %v959_v52 = vadd.f32 %v958_v62, %v5997_v36  ;;  %v1038_v1 = vmul.f32 %v957_v60, %v953_v22 }
 0x7e2   :  { %v1037_v63 = vmul.f32 %v959_v52, %v951_v30  ;;  %v1039_v2 = vmul.f32 %v959_v52, %v957_v60 }
 0x7e4   :  { %4937 = vmatmul.mubr.msk.f32.vlgmr.msra.gmra.mxu0 %vm323_vm0, %v1037_v63 }
 0x7e5   :  { %4939 = vmatprep.mubr.msk.f32.mxu0 %vm323_vm0, %v1038_v1 }
 0x7e8   :  { %4940 = vmatmul.mubr.msk.f32.gmra.mxu0 %vm323_vm0, %v1039_v2 }
 0x7e9   :  { %1536 = vmatprep.mubr.f32.mxu0 %v5606_v0 }
 0x8a4   :  { %v4938_v58 = vpop.f32.mrf.mxu0 }
 0x8a6   :  { %v1118_v3 = vpop.f32.mrf.mxu0 }
 0x8a7   :  { %v1137_v4 = vmax.f32 %v1118_v3, %v4938_v58 }
 0x8a8   :  { %v4941_v5 = vpop.f32.mrf.mxu0 }
 0x8a9   :  { %v1138_v6 = vsub.f32 %v1118_v3, %v1137_v4  ;;  %v1141_v35 = vsub.f32 %v4938_v58, %v1137_v4  ;;  %v1462_v4 = vld [vmem:[%s7244_s12 + $0x148] sm:$0xff] }
 0x8aa   :  { %v1128_v7 = vpop.f32.mrf.mxu0  ;;  %1486 = vmatprep.subr.mxu0 %v1462_v4 }
 0x8ab   :  { %v1139_v8 = vmul.f32 1.442695, %v1138_v6  ;;  %v1142_v36 = vmul.f32 1.442695, %v1141_v35  ;;  %v1148_v9 = vmax.f32 %v1128_v7, %v4941_v5  ;;  %v1461_v6 = vld [vmem:[%s7244_s12 + $0x140] sm:$0xff]  ;;  %v1463_v35 = vld [vmem:[%s7244_s12 + $0x150] sm:$0xff] }
 0x8ac   :  { %1487 = vmatpush1.msra.mxu0 %v1461_v6 }
 0x8ad   :  { %5196 = vpow2.f32 %v1139_v8  ;;  %v1149_v11 = vsub.f32 %v1128_v7, %v1148_v9  ;;  %v1152_v49 = vsub.f32 %v4941_v5, %v1148_v9  ;;  %v1464_v5 = vld [vmem:[%s7244_s12 + $0x158] sm:$0xff]  ;;  %v1457_v7 = vld [vmem:[%s7244_s12 + $0x120] sm:$0xff]  ;;  %v1459_v8 = vld [vmem:[%s7244_s12 + $0x130] sm:$0xff] }
 0x8ae   :  { %5198 = vpow2.f32 %v1142_v36  ;;  %v1456_v36 = vld [vmem:[%s7244_s12 + $0x118] sm:$0xff]  ;;  %v1458_v9 = vld [vmem:[%s7244_s12 + $0x128] sm:$0xff]  ;;  %1488 = vmatprep.subr.mxu0 %v1457_v7 }
 0x8af   :  { %v1150_v50 = vmul.f32 1.442695, %v1149_v11  ;;  %v1153_v53 = vmul.f32 1.442695, %v1152_v49  ;;  %v1452_v11 = vld [vmem:[%s7244_s12 + $0xf8] sm:$0xff]  ;;  %v1454_v49 = vld [vmem:[%s7244_s12 + $0x108] sm:$0xff]  ;;  %1489 = vmatpush1.msra.mxu0 %v1456_v36 }
 0x8b0   :  { %1490 = vmatprep.subr.mxu0 %v1452_v11  ;;  %v1834_v11 = vld [vmem:[%s7247_s15 + $0x38] sm:$0xff] }
 0x8b1   :  { %5200 = vpow2.f32 %v1150_v50  ;;  %v1451_v50 = vld [vmem:[%s7244_s12 + $0xf0] sm:$0xff] }
 0x8b2   :  { %5202 = vpow2.f32 %v1153_v53  ;;  %v1453_v53 = vld [vmem:[%s7244_s12 + $0x100] sm:$0xff]  ;;  %1491 = vmatpush1.msra.mxu0 %v1451_v50 }
 0x8ba   :  { %v5197_v55 = vpop.eup %5196 }
 0x8bb   :  { %v5199_v56 = vpop.eup %5198 }
 0x8bc   :  { %v1144_v57 = vadd.f32 %v5199_v56, %v5197_v55 }
 0x8be   :  { %v5201_v15 = vpop.eup %5200  ;;  %5204 = vrcp.f32 %v1144_v57  ;;  %v1446_v57 = vld [vmem:[%s7244_s12 + $0xc8] sm:$0xff] }
 0x8bf   :  { %v5203_v18 = vpop.eup %5202 }
 0x8c0   :  { %v1155_v10 = vadd.f32 %v5203_v18, %v5201_v15 }
 0x8c2   :  { %5206 = vrcp.f32 %v1155_v10 }
 0x8cb   :  { %v5205_v12 = vpop.eup %5204 }
 0x8cc   :  { %v1146_v14 = vmul.f32 %v5205_v12, %v5197_v55  ;;  %v1147_v17 = vmul.f32 %v5205_v12, %v5199_v56  ;;  %v1447_v55 = vld [vmem:[%s7244_s12 + $0xd0] sm:$0xff]  ;;  %v1449_v56 = vld [vmem:[%s7244_s12 + $0xe0] sm:$0xff] }
 0x8cd   :  { %1492 = vmatprep.subr.mxu0 %v1447_v55  ;;  %v1833_v55 = vld [vmem:[%s7247_s15 + $0x30] sm:$0xff] }
 0x8ce   :  { %4944 = vmatprep.mubr.msk.f32.mxu1 %vm605_vm2, %v1146_v14  ;;  %1493 = vmatpush1.msra.mxu0 %v1446_v57  ;;  %v1442_v14 = vld [vmem:[%s7244_s12 + $0xa8] sm:$0xff] }
 0x8cf   :  { %v5207_v25 = vpop.eup %5206  ;;  %4945 = vmatmul.mubr.msk.f32.vlgmr.msra.gmra.mxu1 %vm605_vm2, %v1147_v17  ;;  %v1444_v17 = vld [vmem:[%s7244_s12 + $0xb8] sm:$0xff]  ;;  %1494 = vmatprep.subr.mxu0 %v1442_v14  ;;  %v1450_v57 = vld [vmem:[%s7244_s12 + $0xe8] sm:$0xff] }
 0x8d0   :  { %v1157_v54 = vmul.f32 %v5207_v25, %v5201_v15  ;;  %v1158_v19 = vmul.f32 %v5207_v25, %v5203_v18  ;;  %4951 = vmatpush3.msra.mxu1 %v6097_v59  ;;  %v4917_v59 = vpop.f32.mrf.mxu1  ;;  %v1448_v15 = vld [vmem:[%s7244_s12 + $0xd8] sm:$0xff]  ;;  %v1441_v25 = vld [vmem:[%s7244_s12 + $0xa0] sm:$0xff] }
 0x8d1   :  { %4952 = vmatprep.subr.mxu1 %v6101_v37  ;;  %1495 = vmatpush1.msra.mxu0 %v1441_v25  ;;  %v1830_v25 = vld [vmem:[%s7247_s15 + $0x18] sm:$0xff] }
 0x8d2   :  { %4947 = vmatprep.mubr.msk.f32.mxu1 %vm605_vm2, %v1157_v54  ;;  %4953 = vmatpush3.msra.mxu1 %v6101_v37  ;;  %v1027_v37 = vpop.f32.mrf.mxu1  ;;  %v1443_v54 = vld [vmem:[%s7244_s12 + $0xb0] sm:$0xff] }
 0x8d3   :  { %4948 = vmatmul.mubr.msk.f32.gmra.mxu1 %vm605_vm2, %v1158_v19  ;;  %4954 = vmatprep.subr.mxu1 %v6105_v41 }
 0x8d4   :  { %4955 = vmatpush3.msra.mxu1 %v6105_v41 }
 0x8d5   :  { %4956 = vmatprep.subr.mxu1 %v6110_v42 }
 0x8d6   :  { %4957 = vmatpush3.msra.mxu1 %v6110_v42  ;;  %v1033_v42 = vadd.f32 %v4917_v59, %v6143_v61  ;;  %v1437_v59 = vld [vmem:[%s7244_s12 + $0x80] sm:$0xff] }
 0x8d7   :  { %4958 = vmatprep.subr.mxu1 %v6117_v43  ;;  %1496 = vmatprep.subr.mxu0 %v1437_v59  ;;  %v1829_v59 = vld [vmem:[%s7247_s15 + $0x10] sm:$0xff] }
 0x8d8   :  { %4959 = vmatpush3.msra.mxu1 %v6117_v43  ;;  %v1028_v43 = vadd.f32 %v1027_v37, %v6143_v61  ;;  %v1439_v37 = vld [vmem:[%s7244_s12 + $0x90] sm:$0xff] }
 0x8d9   :  { %4960 = vmatprep.subr.mxu1 %v6121_v44 }
 0x8da   :  { %4961 = vmatpush3.msra.mxu1 %v6121_v44 }
 0x8db   :  { %4962 = vmatprep.subr.mxu1 %v6125_v45 }
 0x8dc   :  { %4963 = vmatpush3.msra.mxu1 %v6125_v45 }
 0x8dd   :  { %4964 = vmatprep.subr.mxu1 %v6129_v46 }
 0x8de   :  { %4965 = vmatpush3.msra.mxu1 %v6129_v46 }
 0x8df   :  { %4966 = vmatprep.subr.mxu1 %v6133_v47 }
 0x8e0   :  { %4967 = vmatpush3.msra.mxu1 %v6133_v47 }
 0x8e1   :  { %1563 = vmatprep.subr.mxu1 %v1464_v5 }
 0x98f   :  { %v4946_v41 = vpop.f32.mrf.mxu1 }
 0x990   :  { %v1257_v26 = vmul.f32 %v4946_v41, %v1033_v42  ;;  %v1436_v41 = vld [vmem:[%s7244_s12 + $0x78] sm:$0xff] }
 0x991   :  { %v1237_v44 = vpop.f32.mrf.mxu1  ;;  %1497 = vmatpush1.msra.mxu0 %v1436_v41  ;;  %v1430_v41 = vld [vmem:[%s7244_s12 + $0x48] sm:$0xff] }
 0x992   :  { %v1256_v27 = vmul.f32 %v1237_v44, %v1028_v43  ;;  %v1432_v44 = vld [vmem:[%s7244_s12 + $0x58] sm:$0xff] }
 0x993   :  { %v4949_v28 = vpop.f32.mrf.mxu1  ;;  %1498 = vmatprep.subr.mxu0 %v1432_v44  ;;  %v1827_v44 = vld [vmem:[%s7247_s15] sm:$0xff] }
 0x994   :  { %v1258_v45 = vadd.f32 %v1257_v26, %v1256_v27  ;;  %v1260_v21 = vmul.f32 %v4949_v28, %v1033_v42  ;;  %v1438_v42 = vld [vmem:[%s7244_s12 + $0x88] sm:$0xff]  ;;  %v1431_v27 = vld [vmem:[%s7244_s12 + $0x50] sm:$0xff]  ;;  %v1433_v28 = vld [vmem:[%s7244_s12 + $0x60] sm:$0xff] }
 0x995   :  { %v1247_v20 = vpop.f32.mrf.mxu1  ;;  %v1434_v26 = vld [vmem:[%s7244_s12 + $0x68] sm:$0xff]  ;;  %1499 = vmatpush1.msra.mxu0 %v1431_v27 }
 0x996   :  { %v1259_v29 = vmul.f32 %v1247_v20, %v1028_v43  ;;  %4968 = vmatprep.mubr.msk.f32.mxu1 %vm323_vm0, %v1258_v45  ;;  %v1427_v20 = vld [vmem:[%s7244_s12 + $0x30] sm:$0xff]  ;;  %v6459_v27 = vld [vmem:[#allocation14 + $0x10] sm:$0xff] }
 0x997   :  { %1500 = vmatprep.subr.mxu0 %v1427_v20 }
 0x998   :  { %v1261_v46 = vadd.f32 %v1260_v21, %v1259_v29  ;;  %v1429_v21 = vld [vmem:[%s7244_s12 + $0x40] sm:$0xff]  ;;  %v1426_v29 = vld [vmem:[%s7244_s12 + $0x28] sm:$0xff] }
 0x999   :  { %1501 = vmatpush1.msra.mxu0 %v1426_v29  ;;  %v6464_v29 = vld [vmem:[#allocation14 + $0x18] sm:$0xff] }
 0x99a   :  { %4969 = vmatmul.mubr.msk.f32.vlgmr.msra.gmra.mxu1 %vm323_vm0, %v1261_v46  ;;  %v1428_v46 = vld [vmem:[%s7244_s12 + $0x38] sm:$0xff] }
 0x99b   :  { %1613 = vmatprep.mubr.f32.mxu1 %v5606_v0  ;;  %1564 = vmatpush1.msra.mxu1 %v1463_v35 }
 0x99c   :  { %1565 = vmatprep.subr.mxu1 %v1459_v8 }
 0x99d   :  { %1566 = vmatpush1.msra.mxu1 %v1458_v9  ;;  %v1460_v9 = vld [vmem:[%s7244_s12 + $0x138] sm:$0xff] }
 0x99e   :  { %1567 = vmatprep.subr.mxu1 %v1454_v49 }
 0x99f   :  { %1568 = vmatpush1.msra.mxu1 %v1453_v53  ;;  %v1455_v53 = vld [vmem:[%s7244_s12 + $0x110] sm:$0xff] }
 0x9a0   :  { %1569 = vmatprep.subr.mxu1 %v1449_v56 }
 0x9a1   :  { %1570 = vmatpush1.msra.mxu1 %v1448_v15  ;;  %v1832_v15 = vld [vmem:[%s7247_s15 + $0x28] sm:$0xff] }
 0x9a2   :  { %1571 = vmatprep.subr.mxu1 %v1444_v17  ;;  %v1440_v17 = vld [vmem:[%s7244_s12 + $0x98] sm:$0xff] }
 0x9a3   :  { %1572 = vmatpush1.msra.mxu1 %v1443_v54 }
 0x9a4   :  { %1573 = vmatprep.subr.mxu1 %v1439_v37 }
 0x9a5   :  { %1574 = vmatpush1.msra.mxu1 %v1438_v42  ;;  %v1828_v42 = vld [vmem:[%s7247_s15 + $0x8] sm:$0xff] }
 0x9a6   :  { %1575 = vmatprep.subr.mxu1 %v1434_v26  ;;  %v6457_v26 = vld [vmem:[#allocation14] sm:$0xff] }
 0x9a7   :  { %1576 = vmatpush1.msra.mxu1 %v1433_v28 }
 0x9a8   :  { %1577 = vmatprep.subr.mxu1 %v1429_v21 }
 0x9a9   :  { %1578 = vmatpush1.msra.mxu1 %v1428_v46 }
 0xa5a   :  { %v4970_v47 = vpop.f32.mrf.mxu1 }
 0xa5b   :  { %v1340_v22 = vadd.f32 %v4970_v47, %v6168_v34 }
 0xa5c   :  { %v1334_v24 = vpop.f32.mrf.mxu1 }
 0xa5d   :  { %v1335_v61 = vadd.f32 %v6168_v34, %v1334_v24  ;;  %v6265_v30 = vadd.f32 %v1340_v22, %v6217_v38  ;;  %v1422_v24 = vld [vmem:[%s7244_s12 + $0x8] sm:$0xff]  ;;  %v1424_v22 = vld [vmem:[%s7244_s12 + $0x18] sm:$0xff] }
 0xa5e   :  { %1502 = vmatprep.subr.mxu0 %v1422_v24  ;;  %1579 = vmatprep.subr.mxu1 %v1424_v22 }
 0xa5f   :  { %v6262_v23 = vadd.f32 %v1335_v61, %v6187_v16  ;;  %v1383_v40 = vsel %vm323_vm0, %v6265_v30, 0.0  ;;  %v1421_v61 = vld [vmem:[%s7244_s12] sm:$0xff] }
 0xa60   :  { %1503 = vmatpush1.msra.mxu0 %v1421_v61 }
 0xa61   :  { %v1345_v39 = vsel %vm323_vm0, %v6262_v23, 0.0 }
 0xa62   :  { %1346 = vadd.xlane.f32.xlu0 %v1345_v39  ;;  %v1423_v39 = vld [vmem:[%s7244_s12 + $0x10] sm:$0xff] }
 0xa63   :  { %1580 = vmatpush1.msra.mxu1 %v1423_v39 }
 0xa66   :  { %1384 = vadd.xlane.f32.xlu0 %v1383_v40 }
 0xaeb   :  { %v1347_v60 = vpop.xlane.xlu0 %1346 }
 0xaec   :  { %v1348_v62 = vrot.slane %v1347_v60, 4 }
 0xaee   :  { %v1349_v52 = vadd.f32 %v1348_v62, %v1347_v60 }
 0xaef   :  { %v1385_v40 = vpop.xlane.xlu0 %1384 }
 0xaf0   :  { %v1350_v63 = vrot.slane %v1349_v52, 2  ;;  %v1386_v60 = vrot.slane %v1385_v40, 4 }
 0xaf2   :  { %v1351_v1 = vadd.f32 %v1350_v63, %v1349_v52  ;;  %v1387_v62 = vadd.f32 %v1386_v60, %v1385_v40 }
 0xaf4   :  { %v1352_v34 = vrot.slane %v1351_v1, 1  ;;  %v1388_v63 = vrot.slane %v1387_v62, 2 }
 0xaf6   :  { %v1353_v2 = vadd.f32 %v1352_v34, %v1351_v1  ;;  %v1389_v1 = vadd.f32 %v1388_v63, %v1387_v62 }
 0xaf8   :  { %5145 = vpush %v1353_v2  ;;  %v1390_v34 = vrot.slane %v1389_v1, 1 }
 0xb29   :  { %s5146_s5 = spop %5145 }
 0xb2a   :  { %s1357_s4 = smul.f32 0.0017361111, %s5146_s5 }
 0xb2c   :  { %v1358_v16 = vstv %s1357_s4 }
 0xb2d   :  { %v6272_v38 = vsub.f32 %v6262_v23, %v1358_v16  ;;  %v1391_v16 = vadd.f32 %v1390_v34, %v1389_v1 }
 0xb2f   :  { %v1360_v58 = vmul.f32 %v6272_v38, %v6272_v38 }
 0xb31   :  { %v1361_v3 = vsel %vm323_vm0, %v1360_v58, 0.0 }
 0xb32   :  { %1362 = vadd.xlane.f32.xlu1 %v1361_v3 }
 0xbbb   :  { %v1363_v18 = vpop.xlane.xlu1 %1362 }
 0xbbc   :  { %v1364_v10 = vrot.slane %v1363_v18, 4 }
 0xbbe   :  { %v1365_v12 = vadd.f32 %v1364_v10, %v1363_v18  ;;  %v1445_v10 = vld [vmem:[%s7244_s12 + $0xc0] sm:$0xff] }
 0xbc0   :  { %v1366_v19 = vrot.slane %v1365_v12, 2 }
 0xbc2   :  { %v1367_v43 = vadd.f32 %v1366_v19, %v1365_v12  ;;  %v1831_v12 = vld [vmem:[%s7247_s15 + $0x20] sm:$0xff]  ;;  %v1435_v19 = vld [vmem:[%s7244_s12 + $0x70] sm:$0xff] }
 0xbc4   :  { %v1368_v45 = vrot.slane %v1367_v43, 1 }
 0xbc6   :  { %v1369_v47 = vadd.f32 %v1368_v45, %v1367_v43  ;;  %v1425_v43 = vld [vmem:[%s7244_s12 + $0x20] sm:$0xff] }
 0xbc7   :  { %v6461_v45 = vld [vmem:[#allocation14 + $0x8] sm:$0xff] }
 0xbc8   :  { %5147 = vpush %v1369_v47 }
 0xbf9   :  { %s5148_s9 = spop %5147 }
 0xbfa   :  { %s1373_s0 = smul.f32 0.0017361111, %s5148_s9  ;;  %s7287_s9 = sld [smem:[#allocation37_spill]] }
 0xbfc   :  { %s1374_s10 = sadd.f32 1e-05, %s1373_s0 }
 0xbfe   :  { %v1375_v52 = vstv %s1374_s10 }
 0xbff   :  { %5208 = vrsqrt.f32 %v1375_v52 }
 0xc0c   :  { %v5209_v2 = vpop.eup %5208 }
 0xc0d   :  { %5149 = vpush %v5209_v2  ;;  %v6469_v2 = vld [vmem:[#allocation15] sm:$0x1f] }
 0xc0e   :  { %5151 = vpush %v1391_v16 }
 0xc3e   :  { %s5150_s30 = spop %5149 }
 0xc3f   :  { %v1378_v58 = vstv %s5150_s30  ;;  %s5152_s1 = spop %5151 }
 0xc40   :  { %v1379_v3 = vmul.f32 %v1378_v58, %v6272_v38  ;;  %s1395_s16 = smul.f32 0.0017361111, %s5152_s1  ;;  %v1465_v38 = vld [vmem:[%s7244_s12 + $0x160] sm:$0xff] }
 0xc41   :  { %4971 = vmatprep.subr.mxu0 %v1465_v38 }
 0xc42   :  { %v1380_v4 = vmul.f32 %v1379_v3, %v6180_v13  ;;  %v1396_v5 = vstv %s1395_s16  ;;  %s7288_s16 = sld [smem:[#allocation38_spill]] }
 0xc43   :  { %v6388_v6 = vsub.f32 %v6265_v30, %v1396_v5 }
 0xc44   :  { %v1381_v35 = vadd.f32 %v1380_v4, %v6182_v51 }
 0xc45   :  { %v1398_v7 = vmul.f32 %v6388_v6, %v6388_v6 }
 0xc46   :  { %v6394_v8 = vadd.f32 %v1381_v35, %v6262_v23  ;;  %v1835_v23 = vld [vmem:[%s7247_s15 + $0x40] sm:$0xff] }
 0xc47   :  { %v1399_v36 = vsel %vm323_vm0, %v1398_v7, 0.0  ;;  %4992 = vmatprep.subr.mxu1 %v1835_v23  ;;  %v1757_v7 = vsub.s32 3, %v5981_v31 }
 0xc48   :  { %1400 = vadd.xlane.f32.xlu1 %v1399_v36  ;;  %4504 = vmatmul.mubr.msk.f32.vlgmr.msra.gmra.mxu0 %vm323_vm0, %v6394_v8 }
 0xc49   :  { %4506 = vmatmul.mubr.msk.f32.vlgmr.msra.gmra.mxu1 %vm323_vm0, %v6394_v8  ;;  %1542 = vmatprep.mubr.f32.mxu0 %v5606_v0 }
 0xc4a   :  { %1619 = vmatprep.mubr.f32.mxu1 %v5606_v0  ;;  %4972 = vmatpush3.msra.mxu0 %v1465_v38  ;;  %v6474_v38 = vrot.slane %v6469_v2, %v5984_v32 }
 0xc4b   :  { %4993 = vmatpush3.msra.mxu1 %v1835_v23  ;;  %4973 = vmatprep.subr.mxu0 %v1460_v9 }
 0xc4c   :  { %4994 = vmatprep.subr.mxu1 %v1834_v11  ;;  %4974 = vmatpush3.msra.mxu0 %v1460_v9 }
 0xc4d   :  { %4995 = vmatpush3.msra.mxu1 %v1834_v11  ;;  %4975 = vmatprep.subr.mxu0 %v1455_v53  ;;  %v6478_v11 = vrot.slane %v6469_v2, %v6139_v48 }
 0xc4e   :  { %4996 = vmatprep.subr.mxu1 %v1833_v55  ;;  %4976 = vmatpush3.msra.mxu0 %v1455_v53 }
 0xc4f   :  { %4997 = vmatpush3.msra.mxu1 %v1833_v55  ;;  %4977 = vmatprep.subr.mxu0 %v1450_v57 }
 0xc50   :  { %4998 = vmatprep.subr.mxu1 %v1832_v15  ;;  %4978 = vmatpush3.msra.mxu0 %v1450_v57 }
 0xc51   :  { %4999 = vmatpush3.msra.mxu1 %v1832_v15  ;;  %4979 = vmatprep.subr.mxu0 %v1445_v10 }
 0xc52   :  { %5000 = vmatprep.subr.mxu1 %v1831_v12  ;;  %4980 = vmatpush3.msra.mxu0 %v1445_v10 }
 0xc53   :  { %5001 = vmatpush3.msra.mxu1 %v1831_v12  ;;  %4981 = vmatprep.subr.mxu0 %v1440_v17 }
 0xc54   :  { %5002 = vmatprep.subr.mxu1 %v1830_v25  ;;  %4982 = vmatpush3.msra.mxu0 %v1440_v17 }
 0xc55   :  { %5003 = vmatpush3.msra.mxu1 %v1830_v25  ;;  %4983 = vmatprep.subr.mxu0 %v1435_v19 }
 0xc56   :  { %5004 = vmatprep.subr.mxu1 %v1829_v59  ;;  %4984 = vmatpush3.msra.mxu0 %v1435_v19 }
 0xc57   :  { %5005 = vmatpush3.msra.mxu1 %v1829_v59  ;;  %4985 = vmatprep.subr.mxu0 %v1430_v41 }
 0xc58   :  { %5006 = vmatprep.subr.mxu1 %v1828_v42  ;;  %4986 = vmatpush3.msra.mxu0 %v1430_v41 }
 0xc59   :  { %5007 = vmatpush3.msra.mxu1 %v1828_v42  ;;  %4987 = vmatprep.subr.mxu0 %v1425_v43 }
 0xc5a   :  { %5008 = vmatprep.subr.mxu1 %v1827_v44  ;;  %4988 = vmatpush3.msra.mxu0 %v1425_v43 }
 0xc5b   :  { %5009 = vmatpush3.msra.mxu1 %v1827_v44  ;;  %v6500_v44 = vld [vmem:[%s7287_s9] sm:$0xff] }
 0xcd1   :  { %v1401_v49 = vpop.xlane.xlu1 %1400 }
 0xcd2   :  { %v1402_v50 = vrot.slane %v1401_v49, 4 }
 0xcd4   :  { %v1403_v56 = vadd.f32 %v1402_v50, %v1401_v49 }
 0xcd6   :  { %v1404_v18 = vrot.slane %v1403_v56, 2 }
 0xcd8   :  { %v1405_v14 = vadd.f32 %v1404_v18, %v1403_v56  ;;  %v6482_v56 = vrot.slane %v6469_v2, %v5987_v33  ;;  %v6487_v18 = vrot.slane %v6469_v2, %v1757_v7 }
 0xcda   :  { %v1406_v54 = vrot.slane %v1405_v14, 1 }
 0xcdc   :  { %v1407_v37 = vadd.f32 %v1406_v54, %v1405_v14 }
 0xcde   :  { %5153 = vpush %v1407_v37 }
 0xd08   :  { %v1538_v28 = vpop.f32.mrf.mxu0 }
 0xd09   :  { %v1707_v20 = vmul.f32 %v6457_v26, %v1538_v28  ;;  %v1615_v21 = vpop.f32.mrf.mxu1 }
 0xd0a   :  { %v1709_v46 = vmul.f32 %v6459_v27, %v1615_v21  ;;  %v1540_v47 = vpop.f32.mrf.mxu0 }
 0xd0b   :  { %v1712_v24 = vrot.slane %v1707_v20, 4  ;;  %v1708_v22 = vmul.f32 %v6461_v45, %v1540_v47  ;;  %v1617_v61 = vpop.f32.mrf.mxu1 }
 0xd0c   :  { %v1724_v39 = vrot.slane %v1709_v46, 4  ;;  %v1710_v40 = vmul.f32 %v6464_v29, %v1617_v61  ;;  %v1705_v61 = vld [vmem:[#allocation14 + $0x20] sm:$0xff] }
 0xd0d   :  { %v1713_v60 = vadd.f32 %v1712_v24, %v1707_v20  ;;  %v1718_v62 = vrot.slane %v1708_v22, 4 }
 0xd0e   :  { %v1725_v52 = vadd.f32 %v1724_v39, %v1709_v46  ;;  %v1730_v63 = vrot.slane %v1710_v40, 4 }
 0xd0f   :  { %v1714_v1 = vrot.slane %v1713_v60, 2  ;;  %v1719_v34 = vadd.f32 %v1718_v62, %v1708_v22  ;;  %s5154_s12 = spop %5153 }
 0xd10   :  { %v1726_v16 = vrot.slane %v1725_v52, 2  ;;  %v1731_v58 = vadd.f32 %v1730_v63, %v1710_v40  ;;  %s1411_s15 = smul.f32 0.0017361111, %s5154_s12  ;;  %s7289_s12 = sld [smem:[#allocation39_spill]] }
 0xd11   :  { %v1715_v3 = vadd.f32 %v1714_v1, %v1713_v60  ;;  %v1720_v4 = vrot.slane %v1719_v34, 2 }
 0xd12   :  { %v1727_v5 = vadd.f32 %v1726_v16, %v1725_v52  ;;  %v1732_v35 = vrot.slane %v1731_v58, 2  ;;  %s1412_s4 = sadd.f32 1e-05, %s1411_s15 }
 0xd13   :  { %v1716_v36 = vrot.slane %v1715_v3, 1  ;;  %v1721_v23 = vadd.f32 %v1720_v4, %v1719_v34 }
 0xd14   :  { %v1728_v9 = vrot.slane %v1727_v5, 1  ;;  %v1733_v49 = vadd.f32 %v1732_v35, %v1731_v58  ;;  %v1413_v50 = vstv %s1412_s4  ;;  %v2016_v35 = vld [vmem:[%s7249_s17 + $0x20] sm:$0xff] }
 0xd15   :  { %v1717_v53 = vadd.f32 %v1716_v36, %v1715_v3  ;;  %v1722_v55 = vrot.slane %v1721_v23, 1  ;;  %5210 = vrsqrt.f32 %v1413_v50 }
 0xd16   :  { %v1729_v57 = vadd.f32 %v1728_v9, %v1727_v5  ;;  %v1734_v15 = vrot.slane %v1733_v49, 1 }
 0xd17   :  { %v1768_v10 = vadd.f32 %v6474_v38, %v1717_v53  ;;  %v1723_v12 = vadd.f32 %v1722_v55, %v1721_v23 }
 0xd18   :  { %v1770_v14 = vadd.f32 %v6478_v11, %v1729_v57  ;;  %v1735_v17 = vadd.f32 %v1734_v15, %v1733_v49 }
 0xd19   :  { %1773 = vst [vmem:[#allocation2] sm:$0x1] %v1768_v10  ;;  %v1769_v25 = vadd.f32 %v6482_v56, %v1723_v12  ;;  %v1761_v12 = vsub.s32 4, %v5981_v31 }
 0xd1a   :  { %1775 = vst [vmem:[#allocation2 + $0x2] sm:$0x1] %v1770_v14  ;;  %v1771_v54 = vadd.f32 %v6487_v18, %v1735_v17 }
 0xd1b   :  { %1774 = vst [vmem:[#allocation2 + $0x1] sm:$0x1] %v1769_v25 }
 0xd1c   :  { %1776 = vst [vmem:[#allocation2 + $0x3] sm:$0x1] %v1771_v54 }
 0xd22   :  { %v5211_v19 = vpop.eup %5210 }
 0xd23   :  { %5155 = vpush %v5211_v19 }
 0xd54   :  { %s5156_s28 = spop %5155 }
 0xd55   :  { %v1416_v59 = vstv %s5156_s28 }
 0xd56   :  { %v1417_v37 = vmul.f32 %v1416_v59, %v6388_v6 }
 0xd58   :  { %v1418_v41 = vmul.f32 %v1417_v37, %v6180_v13  ;;  %v6511_v13 = vld [vmem:[%s7287_s9 + $0x8] sm:$0x3] }
 0xd5a   :  { %v1419_v42 = vadd.f32 %v1418_v41, %v6182_v51  ;;  %v1825_v51 = vld [vmem:[%s7288_s16] sm:$0xff] }
 0xd5c   :  { %v1420_v43 = vadd.f32 %v1419_v42, %v6265_v30 }
 0xd5e   :  { %4505 = vmatmul.mubr.msk.f32.gmra.mxu0 %vm323_vm0, %v1420_v43  ;;  %4507 = vmatmul.mubr.msk.f32.gmra.mxu1 %vm323_vm0, %v1420_v43 }
 0xd5f   :  { %4989 = vmatprep.mubr.msk.f32.mxu0 %vm323_vm0, %v6394_v8  ;;  %5010 = vmatprep.mubr.msk.f32.mxu1 %vm323_vm0, %v6500_v44 }
 0xd62   :  { %4990 = vmatmul.mubr.msk.f32.vlgmr.msra.gmra.mxu0 %vm323_vm0, %v1420_v43  ;;  %5011 = vmatmul.mubr.msk.f32.vlgmr.msra.gmra.mxu1 %vm323_vm0, %v6511_v13 }
 0xd63   :  { %5017 = vmatprep.mubr.msk.f32.mxu0 %vm1924_vm3, %v1825_v51  ;;  %5039 = vmatprep.mubr.msk.f32.mxu1 %vm1924_vm3, %v1825_v51 }
 0xe1e   :  { %v1544_v30 = vpop.f32.mrf.mxu0  ;;  %v1621_v6 = vpop.f32.mrf.mxu1 }
 0xe1f   :  { %v1778_v8 = vmul.f32 %v6457_v26, %v1544_v30  ;;  %v1780_v28 = vmul.f32 %v6459_v27, %v1621_v6  ;;  %v1762_v6 = vrot.slane %v6469_v2, %v1761_v12  ;;  %v2015_v2 = vld [vmem:[%s7249_s17 + $0x18] sm:$0xff]  ;;  %v6583_v12 = vld [vmem:[%s7252_s20 + $0x1d0] sm:$0xff] }
 0xe20   :  { %v1546_v20 = vpop.f32.mrf.mxu0  ;;  %v1623_v21 = vpop.f32.mrf.mxu1 }
 0xe21   :  { %v1783_v46 = vrot.slane %v1778_v8, 4  ;;  %v1795_v47 = vrot.slane %v1780_v28, 4  ;;  %v1779_v24 = vmul.f32 %v6461_v45, %v1546_v20  ;;  %v1781_v22 = vmul.f32 %v6464_v29, %v1623_v21  ;;  %v6530_v45 = vld [vmem:[%s7288_s16 + $0x8] sm:$0x3] }
 0xe22   :  { %v4991_v39 = vpop.f32.mrf.mxu0  ;;  %v5012_v40 = vpop.f32.mrf.mxu1  ;;  %v2017_v29 = vld [vmem:[%s7249_s17 + $0x28] sm:$0xff] }
 0xe23   :  { %v1784_v60 = vadd.f32 %v1783_v46, %v1778_v8  ;;  %v1796_v62 = vadd.f32 %v1795_v47, %v1780_v28  ;;  %v1789_v52 = vrot.slane %v1779_v24, 4  ;;  %v1801_v63 = vrot.slane %v1781_v22, 4  ;;  %5013 = vmatprep.subr.msk.mxu0 %vm1931_vm4, %v5012_v40 }
 0xe24   :  { %v1782_v26 = vmul.f32 %v4991_v39, %v1705_v61  ;;  %v1692_v27 = vpop.f32.mrf.mxu0  ;;  %v1908_v1 = vpop.f32.mrf.mxu1  ;;  %5014 = vmatpush3.msk.msra.mxu0 %vm1931_vm4, %v5012_v40  ;;  %v4512_v39 = vld [vmem:[#allocation17] ss:$0 sm:$0xff] }
 0xe25   :  { %v1785_v34 = vrot.slane %v1784_v60, 2  ;;  %v1797_v16 = vrot.slane %v1796_v62, 2  ;;  %v1790_v58 = vadd.f32 %v1789_v52, %v1779_v24  ;;  %v1802_v3 = vadd.f32 %v1801_v63, %v1781_v22  ;;  %5015 = vmatprep.subr.mxu0 %v1908_v1  ;;  %v2012_v22 = vld [vmem:[%s7249_s17] sm:$0xff] }
 0xe26   :  { %v1807_v4 = vrot.slane %v1782_v26, 4  ;;  %v1711_v5 = vmul.f32 %v1705_v61, %v1692_v27  ;;  %5016 = vmatpush3.msra.mxu0 %v1908_v1  ;;  %v2224_v61 = vld [vmem:[#allocation20 + $0x118] sm:$0xff]  ;;  %v2223_v27 = vld [vmem:[#allocation20 + $0x110] sm:$0xff] }
 0xe27   :  { %v1786_v36 = vadd.f32 %v1785_v34, %v1784_v60  ;;  %v1798_v23 = vadd.f32 %v1797_v16, %v1796_v62  ;;  %v1791_v9 = vrot.slane %v1790_v58, 2  ;;  %v1803_v49 = vrot.slane %v1802_v3, 2  ;;  %5018 = vmatmul.mubr.msk.f32.vlgmr.msra.gmra.mxu0 %vm1924_vm3, %v6530_v45  ;;  %5020 = vmatprep.subr.mxu0 %v2017_v29  ;;  %v2220_v1 = vld [vmem:[#allocation20 + $0xf8] sm:$0xff]  ;;  %v2215_v16 = vld [vmem:[#allocation20 + $0xd0] sm:$0xff] }
 0xe28   :  { %v1808_v50 = vadd.f32 %v1807_v4, %v1782_v26  ;;  %v1736_v53 = vrot.slane %v1711_v5, 4  ;;  %5021 = vmatpush3.msra.mxu0 %v2017_v29  ;;  %v2219_v29 = vld [vmem:[#allocation20 + $0xf0] sm:$0xff]  ;;  %v2216_v34 = vld [vmem:[#allocation20 + $0xd8] sm:$0xff] }
 0xe29   :  { %v1787_v55 = vrot.slane %v1786_v36, 1  ;;  %v1799_v57 = vrot.slane %v1798_v23, 1  ;;  %v1792_v15 = vadd.f32 %v1791_v9, %v1790_v58  ;;  %v1804_v10 = vadd.f32 %v1803_v49, %v1802_v3  ;;  %5022 = vmatprep.subr.mxu0 %v2016_v35  ;;  %v2212_v58 = vld [vmem:[#allocation20 + $0xb8] sm:$0xff]  ;;  %v2211_v3 = vld [vmem:[#allocation20 + $0xb0] sm:$0xff] }
 0xe2a   :  { %v1809_v14 = vrot.slane %v1808_v50, 2  ;;  %v1737_v17 = vadd.f32 %v1736_v53, %v1711_v5  ;;  %5023 = vmatpush3.msra.mxu0 %v2016_v35  ;;  %v2208_v4 = vld [vmem:[#allocation20 + $0x98] sm:$0xff]  ;;  %v2207_v5 = vld [vmem:[#allocation20 + $0x90] sm:$0xff] }
 0xe2b   :  { %v1788_v25 = vadd.f32 %v1787_v55, %v1786_v36  ;;  %v1800_v54 = vadd.f32 %v1799_v57, %v1798_v23  ;;  %v1793_v19 = vrot.slane %v1792_v15, 1  ;;  %v1805_v59 = vrot.slane %v1804_v10, 1  ;;  %5024 = vmatprep.subr.mxu0 %v2015_v2  ;;  %v2204_v35 = vld [vmem:[#allocation20 + $0x78] sm:$0xff]  ;;  %v2203_v36 = vld [vmem:[#allocation20 + $0x70] sm:$0xff] }
 0xe2c   :  { %v1810_v37 = vadd.f32 %v1809_v14, %v1808_v50  ;;  %v1738_v41 = vrot.slane %v1737_v17, 2  ;;  %5025 = vmatpush3.msra.mxu0 %v2015_v2  ;;  %v2200_v23 = vld [vmem:[#allocation20 + $0x58] sm:$0xff]  ;;  %v2199_v9 = vld [vmem:[#allocation20 + $0x50] sm:$0xff] }
 0xe2d   :  { %v1813_v42 = vadd.f32 %v1788_v25, %v6474_v38  ;;  %v1815_v43 = vadd.f32 %v1800_v54, %v6478_v11  ;;  %v1794_v51 = vadd.f32 %v1793_v19, %v1792_v15  ;;  %v1806_v30 = vadd.f32 %v1805_v59, %v1804_v10  ;;  %v2196_v49 = vld [vmem:[#allocation20 + $0x38] sm:$0xff]  ;;  %v2195_v50 = vld [vmem:[#allocation20 + $0x30] sm:$0xff] }
 0xe2e   :  { %v1811_v8 = vrot.slane %v1810_v37, 1  ;;  %v1739_v28 = vadd.f32 %v1738_v41, %v1737_v17  ;;  %v2192_v53 = vld [vmem:[#allocation20 + $0x18] sm:$0xff]  ;;  %v2191_v55 = vld [vmem:[#allocation20 + $0x10] sm:$0xff] }
 0xe2f   :  { %1818 = vst [vmem:[#allocation2 + $0x5] sm:$0x1] %v1813_v42  ;;  %1820 = vst [vmem:[#allocation2 + $0x7] sm:$0x1] %v1815_v43  ;;  %v1814_v20 = vadd.f32 %v1794_v51, %v6482_v56  ;;  %v1816_v21 = vadd.f32 %v1806_v30, %v6487_v18  ;;  %v2014_v56 = vld [vmem:[%s7249_s17 + $0x10] sm:$0xff]  ;;  %v2013_v18 = vld [vmem:[%s7249_s17 + $0x8] sm:$0xff] }
 0xe30   :  { %v1812_v46 = vadd.f32 %v1811_v8, %v1810_v37  ;;  %v1740_v47 = vrot.slane %v1739_v28, 1  ;;  %5026 = vmatprep.subr.mxu0 %v2014_v56  ;;  %v6562_v57 = vld [vmem:[%s7252_s20 + $0x1f8] sm:$0xff]  ;;  %v6570_v15 = vld [vmem:[%s7252_s20 + $0x1f0] sm:$0xff] }
 0xe31   :  { %1819 = vst [vmem:[#allocation2 + $0x6] sm:$0x1] %v1814_v20  ;;  %1821 = vst [vmem:[#allocation2 + $0x18] sm:$0x1] %v1816_v21  ;;  %5027 = vmatpush3.msra.mxu0 %v2014_v56  ;;  %v6576_v10 = vld [vmem:[%s7252_s20 + $0x1d8] sm:$0xff]  ;;  %v2455_v17 = vld [vmem:[%s7252_s20 + $0x1b0] sm:$0xff] }
 0xe32   :  { %v1817_v24 = vadd.f32 %v1812_v46, %v1762_v6  ;;  %v1741_v38 = vadd.f32 %v1740_v47, %v1739_v28  ;;  %5028 = vmatprep.subr.mxu0 %v2013_v18  ;;  %v6589_v14 = vld [vmem:[%s7252_s20 + $0x1b8] sm:$0xff]  ;;  %v2451_v54 = vld [vmem:[%s7252_s20 + $0x190] sm:$0xff] }
 0xe33   :  { %5029 = vmatpush3.msra.mxu0 %v2013_v18  ;;  %v2452_v25 = vld [vmem:[%s7252_s20 + $0x198] sm:$0xff]  ;;  %v2447_v59 = vld [vmem:[%s7252_s20 + $0x170] sm:$0xff] }
 0xe34   :  { %1822 = vst [vmem:[#allocation2 + $0x19] sm:$0x1] %v1817_v24  ;;  %v1772_v11 = vadd.f32 %v1762_v6, %v1741_v38  ;;  %5030 = vmatprep.subr.mxu0 %v2012_v22  ;;  %v2448_v19 = vld [vmem:[%s7252_s20 + $0x178] sm:$0xff]  ;;  %v2443_v41 = vld [vmem:[%s7252_s20 + $0x150] sm:$0xff] }
 0xe35   :  { %5031 = vmatpush3.msra.mxu0 %v2012_v22  ;;  %v2444_v37 = vld [vmem:[%s7252_s20 + $0x158] sm:$0xff]  ;;  %v2439_v43 = vld [vmem:[%s7252_s20 + $0x130] sm:$0xff] }
 0xe36   :  { %1777 = vst [vmem:[#allocation2 + $0x4] sm:$0x1] %v1772_v11  ;;  %2338 = vmatprep.subr.mxu0 %v2224_v61  ;;  %v2440_v42 = vld [vmem:[%s7252_s20 + $0x138] sm:$0xff]  ;;  %v2435_v30 = vld [vmem:[%s7252_s20 + $0x110] sm:$0xff] }
 0xe37   :  { %v2436_v51 = vld [vmem:[%s7252_s20 + $0x118] sm:$0xff]  ;;  %v2431_v8 = vld [vmem:[%s7252_s20 + $0xf0] sm:$0xff] }
 0xe38   :  { %v2432_v6 = vld [vmem:[%s7252_s20 + $0xf8] sm:$0xff]  ;;  %v2427_v20 = vld [vmem:[%s7252_s20 + $0xd0] sm:$0xff] }
 0xe39   :  { %v2428_v28 = vld [vmem:[%s7252_s20 + $0xd8] sm:$0xff]  ;;  %v2423_v46 = vld [vmem:[%s7252_s20 + $0xb0] sm:$0xff] }
 0xe3a   :  { %v2424_v21 = vld [vmem:[%s7252_s20 + $0xb8] sm:$0xff]  ;;  %v2419_v24 = vld [vmem:[%s7252_s20 + $0x90] sm:$0xff] }
 0xe3b   :  { %v2420_v47 = vld [vmem:[%s7252_s20 + $0x98] sm:$0xff]  ;;  %v2415_v11 = vld [vmem:[%s7252_s20 + $0x70] sm:$0xff] }
 0xe3c   :  { %v2416_v38 = vld [vmem:[%s7252_s20 + $0x78] sm:$0xff]  ;;  %v2411_v56 = vld [vmem:[%s7252_s20 + $0x50] sm:$0xff] }
 0xe3d   :  { %v2412_v2 = vld [vmem:[%s7252_s20 + $0x58] sm:$0xff]  ;;  %v2407_v22 = vld [vmem:[%s7252_s20 + $0x30] sm:$0xff] }
 0xe3e   :  { %v2408_v18 = vld [vmem:[%s7252_s20 + $0x38] sm:$0xff] }
 0xe3f   :  { %v2404_v61 = vld [vmem:[%s7252_s20 + $0x18] sm:$0xff] }
 0xee7   :  { %v5019_v40 = vpop.f32.mrf.mxu0 }
 0xee8   :  { %v2007_v60 = vadd.f32 %v5019_v40, %v4512_v39 }
 0xee9   :  { %v2001_v62 = vpop.f32.mrf.mxu0 }
 0xeea   :  { %v2002_v52 = vadd.f32 %v4512_v39, %v2001_v62  ;;  %v2011_v26 = vmax.f32 %v2007_v60, 0.0  ;;  %v2403_v39 = vld [vmem:[%s7252_s20 + $0x10] sm:$0xff] }
 0xeeb   :  { %v2222_v62 = vld [vmem:[#allocation20 + $0x108] sm:$0xff] }
 0xeec   :  { %v2010_v63 = vmax.f32 %v2002_v52, 0.0  ;;  %v2221_v52 = vld [vmem:[#allocation20 + $0x100] sm:$0xff] }
 0xeee   :  { %5032 = vmatprep.mubr.msk.f32.mxu0 %vm2018_vm5, %v2010_v63  ;;  %v2218_v63 = vld [vmem:[#allocation20 + $0xe8] sm:$0xff] }
 0xeef   :  { %5033 = vmatmul.mubr.msk.f32.vlgmr.msra.gmra.mxu0 %vm2018_vm5, %v2011_v26  ;;  %v2217_v26 = vld [vmem:[#allocation20 + $0xe0] sm:$0xff] }
 0xef0   :  { %2339 = vmatpush1.msra.mxu0 %v2223_v27  ;;  %2388 = vmatprep.mubr.f32.mxu0 %v5606_v0  ;;  %v2214_v27 = vld [vmem:[#allocation20 + $0xc8] sm:$0xff] }
 0xef1   :  { %2340 = vmatprep.subr.mxu0 %v2220_v1  ;;  %v2213_v1 = vld [vmem:[#allocation20 + $0xc0] sm:$0xff] }
 0xef2   :  { %2341 = vmatpush1.msra.mxu0 %v2219_v29  ;;  %v2210_v29 = vld [vmem:[#allocation20 + $0xa8] sm:$0xff] }
 0xef3   :  { %2342 = vmatprep.subr.mxu0 %v2216_v34  ;;  %v2209_v34 = vld [vmem:[#allocation20 + $0xa0] sm:$0xff] }
 0xef4   :  { %2343 = vmatpush1.msra.mxu0 %v2215_v16  ;;  %v2206_v16 = vld [vmem:[#allocation20 + $0x88] sm:$0xff] }
 0xef5   :  { %2344 = vmatprep.subr.mxu0 %v2212_v58  ;;  %v2205_v58 = vld [vmem:[#allocation20 + $0x80] sm:$0xff] }
 0xef6   :  { %2345 = vmatpush1.msra.mxu0 %v2211_v3  ;;  %v2202_v3 = vld [vmem:[#allocation20 + $0x68] sm:$0xff] }
 0xef7   :  { %2346 = vmatprep.subr.mxu0 %v2208_v4  ;;  %v2198_v4 = vld [vmem:[#allocation20 + $0x48] sm:$0xff] }
 0xef8   :  { %2347 = vmatpush1.msra.mxu0 %v2207_v5  ;;  %v2197_v5 = vld [vmem:[#allocation20 + $0x40] sm:$0xff] }
 0xef9   :  { %2348 = vmatprep.subr.mxu0 %v2204_v35  ;;  %v2194_v35 = vld [vmem:[#allocation20 + $0x28] sm:$0xff] }
 0xefa   :  { %2349 = vmatpush1.msra.mxu0 %v2203_v36  ;;  %v2193_v36 = vld [vmem:[#allocation20 + $0x20] sm:$0xff] }
 0xefb   :  { %2350 = vmatprep.subr.mxu0 %v2200_v23  ;;  %v2190_v23 = vld [vmem:[#allocation20 + $0x8] sm:$0xff] }
 0xefc   :  { %2351 = vmatpush1.msra.mxu0 %v2199_v9  ;;  %v2189_v9 = vld [vmem:[#allocation20] sm:$0xff] }
 0xefd   :  { %2352 = vmatprep.subr.mxu0 %v2196_v49  ;;  %v6691_v49 = vld [vmem:[%s7252_s20 + $0x1e8] sm:$0xff] }
 0xefe   :  { %2353 = vmatpush1.msra.mxu0 %v2195_v50  ;;  %v6696_v50 = vld [vmem:[%s7252_s20 + $0x1e0] sm:$0xff] }
 0xeff   :  { %2354 = vmatprep.subr.mxu0 %v2192_v53  ;;  %v6701_v53 = vld [vmem:[%s7252_s20 + $0x1c8] sm:$0xff] }
 0xf00   :  { %2355 = vmatpush1.msra.mxu0 %v2191_v55  ;;  %v6709_v55 = vld [vmem:[%s7252_s20 + $0x1c0] sm:$0xff] }
 0xf01   :  { %2536 = vmatprep.subr.mxu0 %v6562_v57  ;;  %4524 = vmatmul.mubr.msk.f32.vlgmr.msra.gmra.mxu0 %vm323_vm0, %v6500_v44 }
 0xf02   :  { %2537 = vmatpush1.msra.mxu0 %v6570_v15  ;;  %2394 = vmatprep.mubr.f32.mxu0 %v5606_v0 }
 0xf03   :  { %2538 = vmatprep.subr.mxu0 %v6576_v10 }
 0xf04   :  { %2539 = vmatpush1.msra.mxu0 %v6583_v12 }
 0xf05   :  { %2540 = vmatprep.subr.mxu0 %v6589_v14  ;;  %4525 = vmatmul.mubr.msk.f32.gmra.mxu0 %vm323_vm0, %v6511_v13 }
 0xf06   :  { %2541 = vmatpush1.msra.mxu0 %v2455_v17  ;;  %2600 = vmatprep.mubr.f32.mxu0 %v5606_v0 }
 0xf07   :  { %2542 = vmatprep.subr.mxu0 %v2452_v25 }
 0xf08   :  { %2543 = vmatpush1.msra.mxu0 %v2451_v54 }
 0xf09   :  { %2544 = vmatprep.subr.mxu0 %v2448_v19 }
 0xf0a   :  { %2545 = vmatpush1.msra.mxu0 %v2447_v59 }
 0xf0b   :  { %2546 = vmatprep.subr.mxu0 %v2444_v37 }
 0xf0c   :  { %2547 = vmatpush1.msra.mxu0 %v2443_v41 }
 0xf0d   :  { %2548 = vmatprep.subr.mxu0 %v2440_v42 }
 0xf0e   :  { %2549 = vmatpush1.msra.mxu0 %v2439_v43 }
 0xf0f   :  { %2550 = vmatprep.subr.mxu0 %v2436_v51 }
 0xf10   :  { %2551 = vmatpush1.msra.mxu0 %v2435_v30 }
 0xf11   :  { %2552 = vmatprep.subr.mxu0 %v2432_v6 }
 0xf12   :  { %2553 = vmatpush1.msra.mxu0 %v2431_v8 }
 0xf13   :  { %2554 = vmatprep.subr.mxu0 %v2428_v28 }
 0xf14   :  { %2555 = vmatpush1.msra.mxu0 %v2427_v20 }
 0xf15   :  { %2556 = vmatprep.subr.mxu0 %v2424_v21 }
 0xf16   :  { %2557 = vmatpush1.msra.mxu0 %v2423_v46 }
 0xf17   :  { %2558 = vmatprep.subr.mxu0 %v2420_v47 }
 0xf18   :  { %2559 = vmatpush1.msra.mxu0 %v2419_v24 }
 0xf19   :  { %2560 = vmatprep.subr.mxu0 %v2416_v38 }
 0xf1a   :  { %2561 = vmatpush1.msra.mxu0 %v2415_v11 }
 0xf1b   :  { %2562 = vmatprep.subr.mxu0 %v2412_v2 }
 0xf1c   :  { %2563 = vmatpush1.msra.mxu0 %v2411_v56 }
 0xf1d   :  { %2564 = vmatprep.subr.mxu0 %v2408_v18 }
 0xf1e   :  { %2565 = vmatpush1.msra.mxu0 %v2407_v22 }
 0xf1f   :  { %2566 = vmatprep.subr.mxu0 %v2404_v61 }
 0xf20   :  { %2567 = vmatpush1.msra.mxu0 %v2403_v39 }
 0xf21   :  { %2601 = vmatmul.mubr.f32.vlgmr.msra.gmra.mxu0 %v5606_v0  ;;  %2707 = vmatprep.subr.mxu0 %v6562_v57  ;;  %v6715_v57 = vld [vmem:[%s7252_s20 + $0x1a8] sm:$0xff] }
 0xf22   :  { %2708 = vmatpush1.msra.mxu0 %v6570_v15  ;;  %2771 = vmatprep.mubr.f32.mxu0 %v5606_v0  ;;  %v6728_v15 = vld [vmem:[%s7252_s20 + $0x188] sm:$0xff] }
 0xf23   :  { %2709 = vmatprep.subr.mxu0 %v6576_v10  ;;  %v2449_v10 = vld [vmem:[%s7252_s20 + $0x180] sm:$0xff] }
 0xf24   :  { %2710 = vmatpush1.msra.mxu0 %v6583_v12  ;;  %v2446_v12 = vld [vmem:[%s7252_s20 + $0x168] sm:$0xff] }
 0xf25   :  { %2711 = vmatprep.subr.mxu0 %v6589_v14  ;;  %v2445_v14 = vld [vmem:[%s7252_s20 + $0x160] sm:$0xff] }
 0xf26   :  { %2712 = vmatpush1.msra.mxu0 %v2455_v17  ;;  %v2442_v17 = vld [vmem:[%s7252_s20 + $0x148] sm:$0xff] }
 0xf27   :  { %2713 = vmatprep.subr.mxu0 %v2452_v25  ;;  %v2438_v25 = vld [vmem:[%s7252_s20 + $0x128] sm:$0xff] }
 0xf28   :  { %2714 = vmatpush1.msra.mxu0 %v2451_v54  ;;  %v2437_v54 = vld [vmem:[%s7252_s20 + $0x120] sm:$0xff] }
 0xf29   :  { %2715 = vmatprep.subr.mxu0 %v2448_v19  ;;  %v2434_v19 = vld [vmem:[%s7252_s20 + $0x108] sm:$0xff] }
 0xf2a   :  { %2716 = vmatpush1.msra.mxu0 %v2447_v59  ;;  %v2433_v59 = vld [vmem:[%s7252_s20 + $0x100] sm:$0xff] }
 0xf2b   :  { %2717 = vmatprep.subr.mxu0 %v2444_v37  ;;  %v2430_v37 = vld [vmem:[%s7252_s20 + $0xe8] sm:$0xff] }
 0xf2c   :  { %2718 = vmatpush1.msra.mxu0 %v2443_v41  ;;  %v2429_v41 = vld [vmem:[%s7252_s20 + $0xe0] sm:$0xff] }
 0xf2d   :  { %2719 = vmatprep.subr.mxu0 %v2440_v42  ;;  %v2426_v42 = vld [vmem:[%s7252_s20 + $0xc8] sm:$0xff] }
 0xf2e   :  { %2720 = vmatpush1.msra.mxu0 %v2439_v43  ;;  %v2425_v43 = vld [vmem:[%s7252_s20 + $0xc0] sm:$0xff] }
 0xf2f   :  { %2721 = vmatprep.subr.mxu0 %v2436_v51  ;;  %v2422_v51 = vld [vmem:[%s7252_s20 + $0xa8] sm:$0xff] }
 0xf30   :  { %2722 = vmatpush1.msra.mxu0 %v2435_v30  ;;  %v2421_v30 = vld [vmem:[%s7252_s20 + $0xa0] sm:$0xff] }
 0xf31   :  { %2723 = vmatprep.subr.mxu0 %v2432_v6  ;;  %v2418_v6 = vld [vmem:[%s7252_s20 + $0x88] sm:$0xff] }
 0xf32   :  { %2724 = vmatpush1.msra.mxu0 %v2431_v8  ;;  %v2417_v8 = vld [vmem:[%s7252_s20 + $0x80] sm:$0xff] }
 0xf33   :  { %2725 = vmatprep.subr.mxu0 %v2428_v28  ;;  %v2414_v28 = vld [vmem:[%s7252_s20 + $0x68] sm:$0xff] }
 0xf34   :  { %2726 = vmatpush1.msra.mxu0 %v2427_v20  ;;  %v2413_v20 = vld [vmem:[%s7252_s20 + $0x60] sm:$0xff] }
 0xf35   :  { %2727 = vmatprep.subr.mxu0 %v2424_v21  ;;  %v2410_v21 = vld [vmem:[%s7252_s20 + $0x48] sm:$0xff] }
 0xf36   :  { %2728 = vmatpush1.msra.mxu0 %v2423_v46  ;;  %v2409_v46 = vld [vmem:[%s7252_s20 + $0x40] sm:$0xff] }
 0xf37   :  { %2729 = vmatprep.subr.mxu0 %v2420_v47  ;;  %v2406_v47 = vld [vmem:[%s7252_s20 + $0x28] sm:$0xff] }
 0xf38   :  { %2730 = vmatpush1.msra.mxu0 %v2419_v24  ;;  %v2405_v24 = vld [vmem:[%s7252_s20 + $0x20] sm:$0xff] }
 0xf39   :  { %2731 = vmatprep.subr.mxu0 %v2416_v38  ;;  %v2402_v38 = vld [vmem:[%s7252_s20 + $0x8] sm:$0xff] }
 0xf3a   :  { %2732 = vmatpush1.msra.mxu0 %v2415_v11  ;;  %v2401_v11 = vld [vmem:[%s7252_s20] sm:$0xff] }
 0xf3b   :  { %2733 = vmatprep.subr.mxu0 %v2412_v2 }
 0xf3c   :  { %2734 = vmatpush1.msra.mxu0 %v2411_v56  ;;  %v2225_v56 = vld [vmem:[#allocation21] sm:$0xf] }
 0xf3d   :  { %2735 = vmatprep.subr.mxu0 %v2408_v18 }
 0xf3e   :  { %2736 = vmatpush1.msra.mxu0 %v2407_v22  ;;  %v2238_v22 = vrot.slane %v2225_v56, %v6139_v48 }
 0xf3f   :  { %2737 = vmatprep.subr.mxu0 %v2404_v61 }
 0xf40   :  { %2738 = vmatpush1.msra.mxu0 %v2403_v39  ;;  %v2242_v39 = vrot.slane %v2225_v56, %v1757_v7  ;;  %v2230_v7 = vrot.slane %v2225_v56, %v5984_v32 }
 0xfaf   :  { %v5034_v40 = vpop.f32.mrf.mxu0 }
 0xfb0   :  { %5035 = vmatprep.subr.msk.mxu1 %vm1931_vm4, %v5034_v40 }
 0xfb1   :  { %v2091_v60 = vpop.f32.mrf.mxu0  ;;  %5036 = vmatpush3.msk.msra.mxu1 %vm1931_vm4, %v5034_v40 }
 0xfb2   :  { %5037 = vmatprep.subr.mxu1 %v2091_v60 }
 0xfb3   :  { %5038 = vmatpush3.msra.mxu1 %v2091_v60 }
 0xfb4   :  { %5040 = vmatmul.mubr.msk.f32.vlgmr.msra.gmra.mxu1 %vm1924_vm3, %v6530_v45  ;;  %2261 = vmatprep.subr.mxu1 %v2222_v62  ;;  %v2201_v45 = vld [vmem:[#allocation20 + $0x60] sm:$0xff] }
 0xfb5   :  { %2262 = vmatpush1.msra.mxu1 %v2221_v52  ;;  %2311 = vmatprep.mubr.f32.mxu1 %v5606_v0  ;;  %v4518_v52 = vld [vmem:[#allocation18] ss:$0 sm:$0xff] }
 0xfb6   :  { %2263 = vmatprep.subr.mxu1 %v2218_v63 }
 0xfb7   :  { %2264 = vmatpush1.msra.mxu1 %v2217_v26 }
 0xfb8   :  { %2265 = vmatprep.subr.mxu1 %v2214_v27 }
 0xfb9   :  { %2266 = vmatpush1.msra.mxu1 %v2213_v1 }
 0xfba   :  { %2267 = vmatprep.subr.mxu1 %v2210_v29 }
 0xfbb   :  { %2268 = vmatpush1.msra.mxu1 %v2209_v34 }
 0xfbc   :  { %2269 = vmatprep.subr.mxu1 %v2206_v16 }
 0xfbd   :  { %2270 = vmatpush1.msra.mxu1 %v2205_v58 }
 0xfbe   :  { %2271 = vmatprep.subr.mxu1 %v2202_v3  ;;  %v2234_v3 = vrot.slane %v2225_v56, %v5987_v33 }
 0xfbf   :  { %2272 = vmatpush1.msra.mxu1 %v2201_v45 }
 0xfc0   :  { %2273 = vmatprep.subr.mxu1 %v2198_v4 }
 0xfc1   :  { %2274 = vmatpush1.msra.mxu1 %v2197_v5  ;;  %v2390_v2 = vpop.f32.mrf.mxu0 }
 0xfc2   :  { %2275 = vmatprep.subr.mxu1 %v2194_v35 }
 0xfc3   :  { %2276 = vmatpush1.msra.mxu1 %v2193_v36  ;;  %v2392_v18 = vpop.f32.mrf.mxu0 }
 0xfc4   :  { %2277 = vmatprep.subr.mxu1 %v2190_v23 }
 0xfc5   :  { %2278 = vmatpush1.msra.mxu1 %v2189_v9  ;;  %v2396_v61 = vpop.f32.mrf.mxu0 }
 0xfc6   :  { %4522 = vmatmul.mubr.msk.f32.vlgmr.msra.gmra.mxu1 %vm323_vm0, %v6500_v44  ;;  %2465 = vmatprep.subr.mxu1 %v6691_v49  ;;  %v6722_v44 = vld [vmem:[%s7252_s20 + $0x1a0] sm:$0xff]  ;;  %v6823_v40 = vadd.f32 %v2396_v61, %v2238_v22 }
 0xfc7   :  { %2466 = vmatpush1.msra.mxu1 %v6696_v50  ;;  %2317 = vmatprep.mubr.f32.mxu1 %v5606_v0  ;;  %v2398_v60 = vpop.f32.mrf.mxu0 }
 0xfc8   :  { %2467 = vmatprep.subr.mxu1 %v6701_v53  ;;  %v6825_v62 = vadd.f32 %v2398_v60, %v2242_v39 }
 0xfc9   :  { %2468 = vmatpush1.msra.mxu1 %v6709_v55 }
 0xfca   :  { %2469 = vmatprep.subr.mxu1 %v6715_v57  ;;  %4523 = vmatmul.mubr.msk.f32.gmra.mxu1 %vm323_vm0, %v6511_v13  ;;  %v2441_v13 = vld [vmem:[%s7252_s20 + $0x140] sm:$0xff] }
 0xfcb   :  { %2470 = vmatpush1.msra.mxu1 %v6722_v44  ;;  %2529 = vmatprep.mubr.f32.mxu1 %v5606_v0 }
 0xfcc   :  { %2471 = vmatprep.subr.mxu1 %v6728_v15 }
 0xfcd   :  { %2472 = vmatpush1.msra.mxu1 %v2449_v10 }
 0xfce   :  { %2473 = vmatprep.subr.mxu1 %v2446_v12 }
 0xfcf   :  { %2474 = vmatpush1.msra.mxu1 %v2445_v14 }
 0xfd0   :  { %2475 = vmatprep.subr.mxu1 %v2442_v17 }
 0xfd1   :  { %2476 = vmatpush1.msra.mxu1 %v2441_v13 }
 0xfd2   :  { %2477 = vmatprep.subr.mxu1 %v2438_v25 }
 0xfd3   :  { %2478 = vmatpush1.msra.mxu1 %v2437_v54 }
 0xfd4   :  { %2479 = vmatprep.subr.mxu1 %v2434_v19 }
 0xfd5   :  { %2480 = vmatpush1.msra.mxu1 %v2433_v59 }
 0xfd6   :  { %2481 = vmatprep.subr.mxu1 %v2430_v37 }
 0xfd7   :  { %2482 = vmatpush1.msra.mxu1 %v2429_v41 }
 0xfd8   :  { %2483 = vmatprep.subr.mxu1 %v2426_v42 }
 0xfd9   :  { %2484 = vmatpush1.msra.mxu1 %v2425_v43 }
 0xfda   :  { %2485 = vmatprep.subr.mxu1 %v2422_v51 }
 0xfdb   :  { %2486 = vmatpush1.msra.mxu1 %v2421_v30 }
 0xfdc   :  { %2487 = vmatprep.subr.mxu1 %v2418_v6 }
 0xfdd   :  { %2488 = vmatpush1.msra.mxu1 %v2417_v8 }
 0xfde   :  { %2489 = vmatprep.subr.mxu1 %v2414_v28 }
 0xfdf   :  { %2490 = vmatpush1.msra.mxu1 %v2413_v20 }
 0xfe0   :  { %2491 = vmatprep.subr.mxu1 %v2410_v21 }
 0xfe1   :  { %2492 = vmatpush1.msra.mxu1 %v2409_v46 }
 0xfe2   :  { %2493 = vmatprep.subr.mxu1 %v2406_v47 }
 0xfe3   :  { %2494 = vmatpush1.msra.mxu1 %v2405_v24 }
 0xfe4   :  { %2495 = vmatprep.subr.mxu1 %v2402_v38 }
 0xfe5   :  { %2496 = vmatpush1.msra.mxu1 %v2401_v11 }
 0xfe6   :  { %2530 = vmatmul.mubr.f32.vlgmr.msra.gmra.mxu1 %v5606_v0  ;;  %2636 = vmatprep.subr.mxu1 %v6691_v49 }
 0xfe7   :  { %2637 = vmatpush1.msra.mxu1 %v6696_v50  ;;  %2700 = vmatprep.mubr.f32.mxu1 %v5606_v0 }
 0xfe8   :  { %2638 = vmatprep.subr.mxu1 %v6701_v53 }
 0xfe9   :  { %2639 = vmatpush1.msra.mxu1 %v6709_v55  ;;  %v2602_v55 = vpop.f32.mrf.mxu0 }
 0xfea   :  { %2640 = vmatprep.subr.mxu1 %v6715_v57 }
 0xfeb   :  { %2641 = vmatpush1.msra.mxu1 %v6722_v44  ;;  %v2393_v44 = vadd.f32 %v2392_v18, %v2242_v39 }
 0xfec   :  { %2642 = vmatprep.subr.mxu1 %v6728_v15  ;;  %v2604_v15 = vpop.f32.mrf.mxu0 }
 0xfed   :  { %2643 = vmatpush1.msra.mxu1 %v2449_v10  ;;  %v2610_v32 = vadd.f32 %v2604_v15, %v2393_v44  ;;  %v6834_v10 = vadd.f32 %v2390_v2, %v2238_v22 }
 0xfee   :  { %2644 = vmatprep.subr.mxu1 %v2446_v12 }
 0xfef   :  { %2645 = vmatpush1.msra.mxu1 %v2445_v14  ;;  %v4528_v33 = vmul.f32 -1.442695, %v2610_v32  ;;  %v2609_v14 = vadd.f32 %v2602_v55, %v6834_v10 }
 0xff0   :  { %2646 = vmatprep.subr.mxu1 %v2442_v17 }
 0xff1   :  { %2647 = vmatpush1.msra.mxu1 %v2441_v13 }
 0xff2   :  { %2648 = vmatprep.subr.mxu1 %v2438_v25 }
 0xff3   :  { %2649 = vmatpush1.msra.mxu1 %v2437_v54 }
 0xff4   :  { %2650 = vmatprep.subr.mxu1 %v2434_v19 }
 0xff5   :  { %2651 = vmatpush1.msra.mxu1 %v2433_v59 }
 0xff6   :  { %2652 = vmatprep.subr.mxu1 %v2430_v37 }
 0xff7   :  { %2653 = vmatpush1.msra.mxu1 %v2429_v41 }
 0xff8   :  { %2654 = vmatprep.subr.mxu1 %v2426_v42 }
 0xff9   :  { %2655 = vmatpush1.msra.mxu1 %v2425_v43 }
 0xffa   :  { %2656 = vmatprep.subr.mxu1 %v2422_v51 }
 0xffb   :  { %2657 = vmatpush1.msra.mxu1 %v2421_v30 }
 0xffc   :  { %2658 = vmatprep.subr.mxu1 %v2418_v6 }
 0xffd   :  { %2659 = vmatpush1.msra.mxu1 %v2417_v8 }
 0xffe   :  { %2660 = vmatprep.subr.mxu1 %v2414_v28  ;;  %v6840_v28 = vld [vmem:[#allocation2 + $0x18] sm:$0x3] }
 0xfff   :  { %2661 = vmatpush1.msra.mxu1 %v2413_v20  ;;  %v6845_v20 = vld [vmem:[#allocation2] sm:$0xff] }
0x1000   :  { %2662 = vmatprep.subr.mxu1 %v2410_v21 }
0x1001   :  { %2663 = vmatpush1.msra.mxu1 %v2409_v46 }
0x1002   :  { %2664 = vmatprep.subr.mxu1 %v2406_v47 }
0x1003   :  { %2665 = vmatpush1.msra.mxu1 %v2405_v24 }
0x1004   :  { %2666 = vmatprep.subr.mxu1 %v2402_v38 }
0x1005   :  { %2667 = vmatpush1.msra.mxu1 %v2401_v11 }
0x1074   :  { %v5041_v63 = vpop.f32.mrf.mxu1 }
0x1075   :  { %v2182_v26 = vadd.f32 %v5041_v63, %v4518_v52 }
0x1076   :  { %v2176_v27 = vpop.f32.mrf.mxu1 }
0x1077   :  { %v2186_v1 = vmax.f32 %v2182_v26, 0.0  ;;  %v2177_v29 = vadd.f32 %v4518_v52, %v2176_v27 }
0x1079   :  { %2188 = vst [vmem:[#allocation2 + $0x20] sm:$0x3] %v2186_v1  ;;  %v6827_v34 = vmax.f32 %v2177_v29, 0.0 }
0x1080   :  { %v6829_v16 = vld [vmem:[#allocation2 + $0x20] sm:$0x3] }
0x1081   :  { %2885 = vmatprep.subr.mxu1 %v6829_v16 }
0x1086   :  { %v2313_v31 = vpop.f32.mrf.mxu1 }
0x1087   :  { %v2314_v35 = vadd.f32 %v2313_v31, %v2230_v7 }
0x1088   :  { %v2315_v48 = vpop.f32.mrf.mxu1 }
0x1089   :  { %v2316_v23 = vadd.f32 %v2315_v48, %v2234_v3 }
0x108a   :  { %v2319_v58 = vpop.f32.mrf.mxu1 }
0x108b   :  { %v2320_v45 = vadd.f32 %v2319_v58, %v2230_v7 }
0x108c   :  { %v2321_v4 = vpop.f32.mrf.mxu1 }
0x108d   :  { %v2322_v5 = vadd.f32 %v2321_v4, %v2234_v3 }
0x10a6   :  { %v2531_v36 = vpop.f32.mrf.mxu1 }
0x10a7   :  { %v2607_v9 = vadd.f32 %v2531_v36, %v2314_v35 }
0x10a8   :  { %v2533_v49 = vpop.f32.mrf.mxu1 }
0x10a9   :  { %v4526_v50 = vmul.f32 -1.442695, %v2607_v9  ;;  %v2608_v53 = vadd.f32 %v2533_v49, %v2316_v23 }
0x10ab   :  { %5212 = vpow2.f32 %v4526_v50  ;;  %v4527_v57 = vmul.f32 -1.442695, %v2608_v53 }
0x10ad   :  { %5214 = vpow2.f32 %v4527_v57 }
0x10ae   :  { %5216 = vpow2.f32 %v4528_v33 }
0x10b8   :  { %v5213_v12 = vpop.eup %5212 }
0x10b9   :  { %v2614_v17 = vadd.f32 1.0, %v5213_v12 }
0x10ba   :  { %v5215_v13 = vpop.eup %5214 }
0x10bb   :  { %5218 = vrcp.f32 %v2614_v17  ;;  %v2620_v25 = vadd.f32 1.0, %v5215_v13  ;;  %v5217_v54 = vpop.eup %5216 }
0x10bc   :  { %5220 = vtanh.f32 %v2609_v14  ;;  %v2627_v41 = vadd.f32 1.0, %v5217_v54 }
0x10bd   :  { %5222 = vrcp.f32 %v2620_v25 }
0x10be   :  { %5224 = vrcp.f32 %v2627_v41 }
0x10c8   :  { %v5219_v19 = vpop.eup %5218 }
0x10c9   :  { %v5221_v59 = vpop.eup %5220 }
0x10ca   :  { %v5223_v37 = vpop.eup %5222  ;;  %v2631_v43 = vmul.f32 %v5221_v59, %v5219_v19 }
0x10cb   :  { %v2630_v42 = vmul.f32 0.0, %v5223_v37  ;;  %v5225_v30 = vpop.eup %5224 }
0x10cd   :  { %v6837_v51 = vadd.f32 %v2631_v43, %v2630_v42 }
0x10cf   :  { %5226 = vtanh.f32 %v6837_v51  ;;  %v2837_v32 = vrot.slane %v6837_v51, 3 }
0x10dc   :  { %v5227_v6 = vpop.eup %5226 }
0x10dd   :  { %v2634_v8 = vmul.f32 %v5227_v6, %v5225_v30 }
0x10df   :  { %2635 = vst [vmem:[#allocation2 + $0x10] sm:$0x1f] %v2634_v8  ;;  %2701 = vmatmul.mubr.f32.vlgmr.msra.gmra.mxu1 %v2634_v8  ;;  %2772 = vmatmul.mubr.f32.vlgmr.msra.gmra.mxu0 %v2634_v8 }
0x10e0   :  { %2886 = vmatpush1.xpose.msra.mxu1 %v6840_v28  ;;  %2921 = vmatprep.mubr.f32.mxu1 %v6827_v34 }
0x10e1   :  { %2887 = vmatprep.subr.mxu1 %v6827_v34 }
0x10e4   :  { %2888 = vmatpush1.xpose.msra.mxu1 %v6845_v20 }
0x10e7   :  { %2922 = vmatmul.mubr.f32.vlgmr.msra.gmra.mxu1 %v6845_v20 }
0x10e8   :  { %2926 = vmatprep.mubr.f32.mxu1 %v6829_v16 }
0x10eb   :  { %2927 = vmatmul.mubr.f32.gmra.mxu1 %v6840_v28 }
0x119f   :  { %v2702_v21 = vpop.f32.mrf.mxu1  ;;  %v2773_v47 = vpop.f32.mrf.mxu0 }
0x11a0   :  { %v2782_v46 = vrot.slane %v2702_v21, 3  ;;  %v2784_v1 = vrot.slane %v2773_v47, 3 }
0x11a1   :  { %v2704_v24 = vpop.f32.mrf.mxu1  ;;  %v2775_v39 = vpop.f32.mrf.mxu0 }
0x11a2   :  { %v2790_v38 = vadd.f32 %v2782_v46, %v2314_v35  ;;  %v2794_v11 = vadd.f32 %v2782_v46, %v2320_v45  ;;  %v2783_v2 = vrot.slane %v2704_v24, 3  ;;  %v2785_v26 = vrot.slane %v2775_v39, 3  ;;  %v3010_v24 = vld [vmem:[%s7289_s12 + $0x8] sm:$0x3] }
0x11a3   :  { %v2796_v58 = vadd.f32 %v2784_v1, %v6823_v40  ;;  %v2792_v36 = vadd.f32 %v2784_v1, %v6834_v10 }
0x11a4   :  { %v4529_v56 = vmul.f32 -1.442695, %v2790_v38  ;;  %v4530_v18 = vmul.f32 -1.442695, %v2794_v11  ;;  %v2791_v22 = vadd.f32 %v2783_v2, %v2316_v23  ;;  %v2795_v61 = vadd.f32 %v2783_v2, %v2322_v5 }
0x11a5   :  { %v2793_v31 = vadd.f32 %v2785_v26, %v2393_v44  ;;  %v2797_v48 = vadd.f32 %v2785_v26, %v6825_v62 }
0x11a6   :  { %5228 = vpow2.f32 %v4529_v56  ;;  %v4531_v60 = vmul.f32 -1.442695, %v2791_v22  ;;  %v4532_v52 = vmul.f32 -1.442695, %v2795_v61 }
0x11a7   :  { %5230 = vpow2.f32 %v4530_v18  ;;  %v6851_v63 = vpop.f32.mrf.mxu1  ;;  %v4533_v3 = vmul.f32 -1.442695, %v2793_v31  ;;  %v4534_v45 = vmul.f32 -1.442695, %v2797_v48  ;;  %v3439_v31 = vld [vmem:[#allocation23 + $0x760] sm:$0xff] }
0x11a8   :  { %5232 = vpow2.f32 %v4531_v60 }
0x11a9   :  { %v2925_v27 = vpop.f32.mrf.mxu1  ;;  %5234 = vpow2.f32 %v4532_v52 }
0x11aa   :  { %5236 = vtanh.f32 %v2796_v58 }
0x11ab   :  { %v6853_v29 = vpop.f32.mrf.mxu1  ;;  %5238 = vpow2.f32 %v4533_v3 }
0x11ac   :  { %5240 = vpow2.f32 %v4534_v45 }
0x11ad   :  { %v2930_v7 = vpop.f32.mrf.mxu1 }
0x11b3   :  { %v5229_v4 = vpop.eup %5228 }
0x11b4   :  { %v5231_v5 = vpop.eup %5230  ;;  %v2804_v35 = vadd.f32 1.0, %v5229_v4 }
0x11b5   :  { %v2805_v23 = vadd.f32 1.0, %v5231_v5  ;;  %v5233_v9 = vpop.eup %5232  ;;  %v3278_v5 = vld [vmem:[#allocation23 + $0x258] sm:$0xff] }
0x11b6   :  { %5242 = vrcp.f32 %v2804_v35  ;;  %v5235_v49 = vpop.eup %5234  ;;  %v2816_v50 = vadd.f32 1.0, %v5233_v9  ;;  %v3438_v35 = vld [vmem:[#allocation23 + $0x758] sm:$0xff]  ;;  %v3433_v9 = vld [vmem:[#allocation23 + $0x730] sm:$0xff] }
0x11b7   :  { %5244 = vrcp.f32 %v2805_v23  ;;  %v2817_v62 = vadd.f32 1.0, %v5235_v49  ;;  %v5237_v40 = vpop.eup %5236  ;;  %v3434_v23 = vld [vmem:[#allocation23 + $0x738] sm:$0xff]  ;;  %v3273_v49 = vld [vmem:[#allocation23 + $0x230] sm:$0xff] }
0x11b8   :  { %5246 = vtanh.f32 %v2792_v36  ;;  %v5239_v53 = vpop.eup %5238  ;;  %v3274_v36 = vld [vmem:[#allocation23 + $0x238] sm:$0xff] }
0x11b9   :  { %5248 = vrcp.f32 %v2816_v50  ;;  %v5241_v55 = vpop.eup %5240  ;;  %v2830_v33 = vadd.f32 1.0, %v5239_v53  ;;  %v3429_v50 = vld [vmem:[#allocation23 + $0x710] sm:$0xff]  ;;  %v3268_v53 = vld [vmem:[#allocation23 + $0x208] sm:$0xff] }
0x11ba   :  { %5250 = vrcp.f32 %v2817_v62  ;;  %v2831_v14 = vadd.f32 1.0, %v5241_v55  ;;  %v3269_v62 = vld [vmem:[#allocation23 + $0x210] sm:$0xff]  ;;  %v3424_v55 = vld [vmem:[#allocation23 + $0x6e8] sm:$0xff] }
0x11bb   :  { %5252 = vrcp.f32 %v2830_v33  ;;  %v3418_v33 = vld [vmem:[#allocation23 + $0x6b8] sm:$0xff] }
0x11bc   :  { %5254 = vrcp.f32 %v2831_v14  ;;  %v3414_v14 = vld [vmem:[#allocation23 + $0x698] sm:$0xff] }
0x11c3   :  { %v5243_v57 = vpop.eup %5242 }
0x11c4   :  { %v5245_v44 = vpop.eup %5244 }
0x11c5   :  { %v5247_v15 = vpop.eup %5246  ;;  %v2842_v10 = vmul.f32 %v5245_v44, %v5237_v40  ;;  %v3428_v40 = vld [vmem:[#allocation23 + $0x708] sm:$0xff]  ;;  %v3423_v44 = vld [vmem:[#allocation23 + $0x6e0] sm:$0xff] }
0x11c6   :  { %v5249_v12 = vpop.eup %5248  ;;  %v2841_v13 = vmul.f32 %v5247_v15, %v5243_v57  ;;  %v3264_v57 = vld [vmem:[#allocation23 + $0x1e8] sm:$0xff]  ;;  %v3263_v15 = vld [vmem:[#allocation23 + $0x1e0] sm:$0xff] }
0x11c7   :  { %v5251_v17 = vpop.eup %5250  ;;  %v2839_v25 = vmul.f32 %v5249_v12, %v2837_v32  ;;  %v3258_v12 = vld [vmem:[#allocation23 + $0x1b8] sm:$0xff] }
0x11c8   :  { %v2840_v54 = vmul.f32 %v5251_v17, %v2837_v32  ;;  %v5253_v37 = vpop.eup %5252  ;;  %v3419_v32 = vld [vmem:[#allocation23 + $0x6c0] sm:$0xff]  ;;  %v3254_v17 = vld [vmem:[#allocation23 + $0x198] sm:$0xff] }
0x11c9   :  { %v2843_v19 = vadd.f32 %v2841_v13, %v2839_v25  ;;  %v5255_v41 = vpop.eup %5254  ;;  %v3413_v13 = vld [vmem:[#allocation23 + $0x690] sm:$0xff] }
0x11ca   :  { %v2844_v59 = vadd.f32 %v2842_v10, %v2840_v54  ;;  %v3259_v10 = vld [vmem:[#allocation23 + $0x1c0] sm:$0xff]  ;;  %v3253_v25 = vld [vmem:[#allocation23 + $0x190] sm:$0xff] }
0x11cb   :  { %5256 = vtanh.f32 %v2843_v19  ;;  %v3409_v54 = vld [vmem:[#allocation23 + $0x670] sm:$0xff] }
0x11cc   :  { %5258 = vtanh.f32 %v2844_v59  ;;  %v3249_v19 = vld [vmem:[#allocation23 + $0x170] sm:$0xff]  ;;  %v3408_v59 = vld [vmem:[#allocation23 + $0x668] sm:$0xff] }
0x11d8   :  { %v5257_v42 = vpop.eup %5256 }
0x11d9   :  { %v5259_v43 = vpop.eup %5258  ;;  %v2847_v30 = vmul.f32 %v5257_v42, %v5253_v37  ;;  %v3248_v37 = vld [vmem:[#allocation23 + $0x168] sm:$0xff] }
0x11da   :  { %v2848_v51 = vmul.f32 %v5259_v43, %v5255_v41  ;;  %v3404_v41 = vld [vmem:[#allocation23 + $0x648] sm:$0xff]  ;;  %v3403_v43 = vld [vmem:[#allocation23 + $0x640] sm:$0xff] }
0x11db   :  { %2849 = vst [vmem:[#allocation2 + $0x10] sm:$0xe0] %v2847_v30  ;;  %v3244_v42 = vld [vmem:[#allocation23 + $0x148] sm:$0xff]  ;;  %v3243_v30 = vld [vmem:[#allocation23 + $0x140] sm:$0xff] }
0x11dc   :  { %2850 = vst [vmem:[#allocation2 + $0x28] sm:$0x3] %v2848_v51  ;;  %v3399_v51 = vld [vmem:[#allocation23 + $0x620] sm:$0xff] }
0x11e2   :  { %v2853_v6 = vld [vmem:[#allocation2 + $0x10] sm:$0xff] }
0x11e3   :  { %v2856_v8 = vld [vmem:[#allocation2 + $0x28] sm:$0x3]  ;;  %5046 = vmatprep.mubr.f32.mxu0 %v2853_v6 }
0x11e4   :  { %5042 = vmatprep.subr.mxu0 %v2856_v8  ;;  %5049 = vmatprep.subr.msk.mxu1 %vm1931_vm4, %v2856_v8 }
0x11e5   :  { %5043 = vmatpush3.xpose.msra.mxu0 %v2856_v8  ;;  %5050 = vmatpush3.msk.msra.mxu1 %vm1931_vm4, %v2856_v8 }
0x11e6   :  { %5044 = vmatprep.subr.mxu0 %v2853_v6  ;;  %5051 = vmatprep.subr.mxu1 %v2853_v6 }
0x11e7   :  { %5052 = vmatpush3.msra.mxu1 %v2853_v6 }
0x11e8   :  { %3520 = vmatprep.subr.mxu1 %v3439_v31  ;;  %v3208_v31 = vld [vmem:[#allocation23 + $0x28] sm:$0xff] }
0x11e9   :  { %5045 = vmatpush3.xpose.msra.mxu0 %v2853_v6  ;;  %v3239_v6 = vld [vmem:[#allocation23 + $0x120] sm:$0xff] }
0x11ea   :  { %4535 = vmatprep.subr.msk.mxu0 %vm1931_vm4, %v6829_v16 }
0x11ec   :  { %5047 = vmatmul.mubr.f32.vlgmr.msra.gmra.mxu0 %v2856_v8  ;;  %v3398_v8 = vld [vmem:[#allocation23 + $0x618] sm:$0xff] }
0x11ed   :  { %4536 = vmatpush1.msk.msra.mxu0 %vm1931_vm4, %v6840_v28  ;;  %3115 = vmatprep.mubr.f32.mxu0 %v5606_v0  ;;  %v3009_v28 = vld [vmem:[%s7289_s12] sm:$0xff] }
0x11ee   :  { %3081 = vmatprep.subr.mxu0 %v6827_v34 }
0x11ef   :  { %3082 = vmatpush1.msra.mxu0 %v6845_v20 }
0x12ac   :  { %v5048_v21 = vpop.f32.mrf.mxu0 }
0x12ad   :  { %v3004_v46 = vadd.f32 %v5048_v21, %v6853_v29  ;;  %v3279_v29 = vld [vmem:[#allocation23 + $0x260] sm:$0xff]  ;;  %v3238_v21 = vld [vmem:[#allocation23 + $0x118] sm:$0xff] }
0x12ae   :  { %v2998_v47 = vpop.f32.mrf.mxu0  ;;  %3443 = vmatprep.subr.mxu0 %v3279_v29  ;;  %v3209_v29 = vld [vmem:[#allocation23 + $0x30] sm:$0xff] }
0x12af   :  { %v3008_v38 = vmul.f32 0.083333336, %v3004_v46  ;;  %v2999_v16 = vadd.f32 %v2998_v47, %v6851_v63  ;;  %v3394_v46 = vld [vmem:[#allocation23 + $0x5f8] sm:$0xff] }
0x12b0   :  { %v3234_v47 = vld [vmem:[#allocation23 + $0xf8] sm:$0xff] }
0x12b1   :  { %v3007_v11 = vmul.f32 0.083333336, %v2999_v16  ;;  %v3012_v34 = vadd.f32 %v3010_v24, %v3008_v38  ;;  %v3393_v24 = vld [vmem:[#allocation23 + $0x5f0] sm:$0xff] }
0x12b2   :  { %v3233_v38 = vld [vmem:[#allocation23 + $0xf0] sm:$0xff] }
0x12b3   :  { %v3017_v20 = vsel %vm3016_vm6, %v3012_v34, -inf  ;;  %v3011_v2 = vadd.f32 %v3009_v28, %v3007_v11  ;;  %v3389_v16 = vld [vmem:[#allocation23 + $0x5d0] sm:$0xff]  ;;  %v3388_v11 = vld [vmem:[#allocation23 + $0x5c8] sm:$0xff] }
0x12b4   :  { %3018 = vmax.xlane.f32.xlu1 %v3017_v20  ;;  %v3229_v28 = vld [vmem:[#allocation23 + $0xd0] sm:$0xff]  ;;  %v3384_v20 = vld [vmem:[#allocation23 + $0x5a8] sm:$0xff] }
0x12b5   :  { %v3013_v56 = vsel %vm1924_vm3, %v3011_v2, -inf }
0x12b6   :  { %3014 = vmax.xlane.f32.xlu0 %v3013_v56  ;;  %v3383_v56 = vld [vmem:[#allocation23 + $0x5a0] sm:$0xff] }
0x133d   :  { %v3019_v18 = vpop.xlane.xlu1 %3018 }
0x133e   :  { %v3021_v22 = vsub.f32 %v3012_v34, %v3019_v18  ;;  %v3228_v34 = vld [vmem:[#allocation23 + $0xc8] sm:$0xff]  ;;  %v3223_v18 = vld [vmem:[#allocation23 + $0xa0] sm:$0xff] }
0x133f   :  { %v3015_v61 = vpop.xlane.xlu0 %3014 }
0x1340   :  { %v3024_v39 = vmul.f32 1.442695, %v3021_v22  ;;  %v3020_v60 = vsub.f32 %v3011_v2, %v3015_v61  ;;  %v3224_v2 = vld [vmem:[#allocation23 + $0xa8] sm:$0xff]  ;;  %v3379_v22 = vld [vmem:[#allocation23 + $0x580] sm:$0xff] }
0x1341   :  { %v3219_v61 = vld [vmem:[#allocation23 + $0x80] sm:$0xff] }
0x1342   :  { %5260 = vpow2.f32 %v3024_v39  ;;  %v3022_v52 = vmul.f32 1.442695, %v3020_v60  ;;  %v3378_v39 = vld [vmem:[#allocation23 + $0x578] sm:$0xff] }
0x1343   :  { %v3218_v60 = vld [vmem:[#allocation23 + $0x78] sm:$0xff] }
0x1344   :  { %5262 = vpow2.f32 %v3022_v52  ;;  %v3374_v52 = vld [vmem:[#allocation23 + $0x558] sm:$0xff] }
0x134f   :  { %v5261_v63 = vpop.eup %5260 }
0x1350   :  { %v3029_v26 = vsel %vm3016_vm6, %v5261_v63, 0.0 }
0x1351   :  { %v5263_v27 = vpop.eup %5262  ;;  %3030 = vadd.xlane.f32.xlu1 %v3029_v26  ;;  %v3373_v26 = vld [vmem:[#allocation23 + $0x550] sm:$0xff] }
0x1352   :  { %v3026_v1 = vsel %vm1924_vm3, %v5263_v27, 0.0 }
0x1353   :  { %3027 = vadd.xlane.f32.xlu0 %v3026_v1  ;;  %v3369_v1 = vld [vmem:[#allocation23 + $0x530] sm:$0xff] }
0x13da   :  { %v3031_v48 = vpop.xlane.xlu1 %3030 }
0x13db   :  { %5264 = vrcp.f32 %v3031_v48  ;;  %v3204_v48 = vld [vmem:[#allocation23 + $0x8] sm:$0xff] }
0x13dc   :  { %v3028_v7 = vpop.xlane.xlu0 %3027 }
0x13dd   :  { %5266 = vrcp.f32 %v3028_v7  ;;  %v3203_v7 = vld [vmem:[#allocation23] sm:$0xff] }
0x13e8   :  { %v5265_v58 = vpop.eup %5264 }
0x13e9   :  { %v3035_v4 = vmul.f32 %v5265_v58, %v5261_v63  ;;  %v3214_v63 = vld [vmem:[#allocation23 + $0x58] sm:$0xff]  ;;  %v3359_v58 = vld [vmem:[#allocation23 + $0x4e0] sm:$0xff] }
0x13ea   :  { %v5267_v3 = vpop.eup %5266 }
0x13eb   :  { %v3034_v45 = vmul.f32 %v5267_v3, %v5263_v27  ;;  %v3213_v27 = vld [vmem:[#allocation23 + $0x50] sm:$0xff]  ;;  %v3358_v3 = vld [vmem:[#allocation23 + $0x4d8] sm:$0xff] }
0x13ed   :  { %4537 = vmatmul.mubr.msk.f32.vlgmr.msra.gmra.mxu0 %vm1924_vm3, %v3034_v45  ;;  %5053 = vmatprep.mubr.msk.f32.mxu1 %vm1924_vm3, %v3034_v45  ;;  %v3354_v45 = vld [vmem:[#allocation23 + $0x4b8] sm:$0xff] }
0x13ee   :  { %5054 = vmatmul.mubr.msk.f32.vlgmr.msra.gmra.mxu1 %vm1924_vm3, %v3035_v4  ;;  %3121 = vmatprep.mubr.f32.mxu0 %v5606_v0 }
0x13ef   :  { %3444 = vmatpush1.msra.mxu0 %v3278_v5  ;;  %3521 = vmatpush1.msra.mxu1 %v3438_v35  ;;  %v3349_v5 = vld [vmem:[#allocation23 + $0x490] sm:$0xff]  ;;  %v3348_v35 = vld [vmem:[#allocation23 + $0x488] sm:$0xff] }
0x13f0   :  { %3445 = vmatprep.subr.mxu0 %v3274_v36  ;;  %3522 = vmatprep.subr.mxu1 %v3434_v23  ;;  %v3344_v36 = vld [vmem:[#allocation23 + $0x468] sm:$0xff]  ;;  %v3343_v23 = vld [vmem:[#allocation23 + $0x460] sm:$0xff] }
0x13f1   :  { %4538 = vmatmul.mubr.msk.f32.gmra.mxu0 %vm1924_vm3, %v3035_v4  ;;  %3523 = vmatpush1.msra.mxu1 %v3433_v9  ;;  %v3353_v4 = vld [vmem:[#allocation23 + $0x4b0] sm:$0xff]  ;;  %v3339_v9 = vld [vmem:[#allocation23 + $0x440] sm:$0xff] }
0x13f2   :  { %3446 = vmatpush1.msra.mxu0 %v3273_v49  ;;  %3524 = vmatprep.subr.mxu1 %v3429_v50  ;;  %v3338_v49 = vld [vmem:[#allocation23 + $0x438] sm:$0xff] }
0x13f3   :  { %3447 = vmatprep.subr.mxu0 %v3269_v62  ;;  %3525 = vmatpush1.msra.mxu1 %v3428_v40  ;;  %v3334_v50 = vld [vmem:[#allocation23 + $0x418] sm:$0xff]  ;;  %v3333_v62 = vld [vmem:[#allocation23 + $0x410] sm:$0xff] }
0x13f4   :  { %3448 = vmatpush1.msra.mxu0 %v3268_v53  ;;  %3526 = vmatprep.subr.mxu1 %v3424_v55  ;;  %v3329_v40 = vld [vmem:[#allocation23 + $0x3f0] sm:$0xff]  ;;  %v3328_v53 = vld [vmem:[#allocation23 + $0x3e8] sm:$0xff] }
0x13f5   :  { %3449 = vmatprep.subr.mxu0 %v3264_v57  ;;  %3527 = vmatpush1.msra.mxu1 %v3423_v44  ;;  %v3324_v55 = vld [vmem:[#allocation23 + $0x3c8] sm:$0xff]  ;;  %v3323_v57 = vld [vmem:[#allocation23 + $0x3c0] sm:$0xff] }
0x13f6   :  { %3450 = vmatpush1.msra.mxu0 %v3263_v15  ;;  %3528 = vmatprep.subr.mxu1 %v3419_v32  ;;  %v3319_v44 = vld [vmem:[#allocation23 + $0x3a0] sm:$0xff]  ;;  %v3318_v15 = vld [vmem:[#allocation23 + $0x398] sm:$0xff] }
0x13f7   :  { %3451 = vmatprep.subr.mxu0 %v3259_v10  ;;  %3529 = vmatpush1.msra.mxu1 %v3418_v33  ;;  %v3314_v32 = vld [vmem:[#allocation23 + $0x378] sm:$0xff]  ;;  %v3313_v10 = vld [vmem:[#allocation23 + $0x370] sm:$0xff] }
0x13f8   :  { %3452 = vmatpush1.msra.mxu0 %v3258_v12  ;;  %3530 = vmatprep.subr.mxu1 %v3414_v14  ;;  %v3309_v33 = vld [vmem:[#allocation23 + $0x350] sm:$0xff]  ;;  %v3308_v12 = vld [vmem:[#allocation23 + $0x348] sm:$0xff] }
0x13f9   :  { %3453 = vmatprep.subr.mxu0 %v3254_v17  ;;  %3531 = vmatpush1.msra.mxu1 %v3413_v13  ;;  %v3304_v14 = vld [vmem:[#allocation23 + $0x328] sm:$0xff]  ;;  %v3303_v17 = vld [vmem:[#allocation23 + $0x320] sm:$0xff] }
0x13fa   :  { %3454 = vmatpush1.msra.mxu0 %v3253_v25  ;;  %3532 = vmatprep.subr.mxu1 %v3409_v54  ;;  %v3299_v13 = vld [vmem:[#allocation23 + $0x300] sm:$0xff]  ;;  %v3298_v25 = vld [vmem:[#allocation23 + $0x2f8] sm:$0xff] }
0x13fb   :  { %3455 = vmatprep.subr.mxu0 %v3249_v19  ;;  %3533 = vmatpush1.msra.mxu1 %v3408_v59  ;;  %v3294_v54 = vld [vmem:[#allocation23 + $0x2d8] sm:$0xff]  ;;  %v3293_v19 = vld [vmem:[#allocation23 + $0x2d0] sm:$0xff] }
0x13fc   :  { %3456 = vmatpush1.msra.mxu0 %v3248_v37  ;;  %3534 = vmatprep.subr.mxu1 %v3404_v41  ;;  %v3289_v59 = vld [vmem:[#allocation23 + $0x2b0] sm:$0xff]  ;;  %v3288_v37 = vld [vmem:[#allocation23 + $0x2a8] sm:$0xff] }
0x13fd   :  { %3457 = vmatprep.subr.mxu0 %v3244_v42  ;;  %3535 = vmatpush1.msra.mxu1 %v3403_v43  ;;  %v3368_v41 = vld [vmem:[#allocation23 + $0x528] sm:$0xff] }
0x13fe   :  { %3458 = vmatpush1.msra.mxu0 %v3243_v30  ;;  %3536 = vmatprep.subr.mxu1 %v3399_v51  ;;  %v3284_v42 = vld [vmem:[#allocation23 + $0x288] sm:$0xff]  ;;  %v3283_v30 = vld [vmem:[#allocation23 + $0x280] sm:$0xff] }
0x13ff   :  { %3459 = vmatprep.subr.mxu0 %v3239_v6  ;;  %3537 = vmatpush1.msra.mxu1 %v3398_v8  ;;  %v3364_v43 = vld [vmem:[#allocation23 + $0x508] sm:$0xff]  ;;  %v3363_v51 = vld [vmem:[#allocation23 + $0x500] sm:$0xff]  ;;  %v3281_v6 = vld [vmem:[#allocation23 + $0x270] sm:$0xff] }
0x1400   :  { %3460 = vmatpush1.msra.mxu0 %v3238_v21  ;;  %3538 = vmatprep.subr.mxu1 %v3394_v46  ;;  %v3441_v8 = vld [vmem:[#allocation23 + $0x770] sm:$0xff] }
0x1401   :  { %3461 = vmatprep.subr.mxu0 %v3234_v47  ;;  %3539 = vmatpush1.msra.mxu1 %v3393_v24  ;;  %v3280_v24 = vld [vmem:[#allocation23 + $0x268] sm:$0xff] }
0x1402   :  { %3462 = vmatpush1.msra.mxu0 %v3233_v38  ;;  %3540 = vmatprep.subr.mxu1 %v3389_v16  ;;  %v3440_v38 = vld [vmem:[#allocation23 + $0x768] sm:$0xff] }
0x1403   :  { %3463 = vmatprep.subr.mxu0 %v3229_v28  ;;  %3541 = vmatpush1.msra.mxu1 %v3388_v11  ;;  %v3276_v28 = vld [vmem:[#allocation23 + $0x248] sm:$0xff] }
0x1404   :  { %3464 = vmatpush1.msra.mxu0 %v3228_v34  ;;  %3542 = vmatprep.subr.mxu1 %v3384_v20  ;;  %v3436_v11 = vld [vmem:[#allocation23 + $0x748] sm:$0xff]  ;;  %v3275_v20 = vld [vmem:[#allocation23 + $0x240] sm:$0xff] }
0x1405   :  { %3465 = vmatprep.subr.mxu0 %v3224_v2  ;;  %3543 = vmatpush1.msra.mxu1 %v3383_v56  ;;  %v3435_v2 = vld [vmem:[#allocation23 + $0x740] sm:$0xff] }
0x1406   :  { %3466 = vmatpush1.msra.mxu0 %v3223_v18  ;;  %3544 = vmatprep.subr.mxu1 %v3379_v22  ;;  %v3271_v18 = vld [vmem:[#allocation23 + $0x220] sm:$0xff] }
0x1407   :  { %3467 = vmatprep.subr.mxu0 %v3219_v61  ;;  %3545 = vmatpush1.msra.mxu1 %v3378_v39  ;;  %v3431_v22 = vld [vmem:[#allocation23 + $0x720] sm:$0xff]  ;;  %v3270_v61 = vld [vmem:[#allocation23 + $0x218] sm:$0xff] }
0x1408   :  { %3468 = vmatpush1.msra.mxu0 %v3218_v60  ;;  %3546 = vmatprep.subr.mxu1 %v3374_v52  ;;  %v3430_v39 = vld [vmem:[#allocation23 + $0x718] sm:$0xff] }
0x1409   :  { %3469 = vmatprep.subr.mxu0 %v3214_v63  ;;  %3547 = vmatpush1.msra.mxu1 %v3373_v26  ;;  %v3266_v60 = vld [vmem:[#allocation23 + $0x1f8] sm:$0xff]  ;;  %v3265_v63 = vld [vmem:[#allocation23 + $0x1f0] sm:$0xff] }
0x140a   :  { %3470 = vmatpush1.msra.mxu0 %v3213_v27  ;;  %3548 = vmatprep.subr.mxu1 %v3369_v1  ;;  %v3426_v52 = vld [vmem:[#allocation23 + $0x6f8] sm:$0xff]  ;;  %v3425_v26 = vld [vmem:[#allocation23 + $0x6f0] sm:$0xff] }
0x140b   :  { %3471 = vmatprep.subr.mxu0 %v3209_v29  ;;  %3584 = vmatprep.mubr.f32.mxu1 %v5606_v0  ;;  %v3261_v27 = vld [vmem:[#allocation23 + $0x1d0] sm:$0xff]  ;;  %v3260_v29 = vld [vmem:[#allocation23 + $0x1c8] sm:$0xff] }
0x140c   :  { %3472 = vmatpush1.msra.mxu0 %v3208_v31  ;;  %3549 = vmatpush1.msra.mxu1 %v3368_v41  ;;  %v3421_v1 = vld [vmem:[#allocation23 + $0x6d0] sm:$0xff]  ;;  %v3420_v31 = vld [vmem:[#allocation23 + $0x6c8] sm:$0xff] }
0x140d   :  { %3473 = vmatprep.subr.mxu0 %v3204_v48  ;;  %3550 = vmatprep.subr.mxu1 %v3364_v43  ;;  %v3256_v48 = vld [vmem:[#allocation23 + $0x1a8] sm:$0xff]  ;;  %v3215_v43 = vld [vmem:[#allocation23 + $0x60] sm:$0xff] }
0x140e   :  { %3474 = vmatpush1.msra.mxu0 %v3203_v7  ;;  %3551 = vmatpush1.msra.mxu1 %v3363_v51  ;;  %v3416_v7 = vld [vmem:[#allocation23 + $0x6a8] sm:$0xff]  ;;  %v3211_v51 = vld [vmem:[#allocation23 + $0x40] sm:$0xff] }
0x140f   :  { %3475 = vmatprep.subr.mxu0 %v3359_v58  ;;  %3597 = vmatprep.subr.mxu1 %v3281_v6  ;;  %v3255_v58 = vld [vmem:[#allocation23 + $0x1a0] sm:$0xff]  ;;  %v3216_v41 = vld [vmem:[#allocation23 + $0x68] sm:$0xff] }
0x1410   :  { %3476 = vmatpush2.msra.mxu0 %v3358_v3  ;;  %v3415_v3 = vld [vmem:[#allocation23 + $0x6a0] sm:$0xff] }
0x1411   :  { %3477 = vmatprep.subr.mxu0 %v3354_v45  ;;  %v3251_v45 = vld [vmem:[#allocation23 + $0x180] sm:$0xff] }
0x1412   :  { %3478 = vmatpush2.msra.mxu0 %v3353_v4  ;;  %v3411_v4 = vld [vmem:[#allocation23 + $0x680] sm:$0xff] }
0x1413   :  { %3479 = vmatprep.subr.mxu0 %v3349_v5  ;;  %v3250_v5 = vld [vmem:[#allocation23 + $0x178] sm:$0xff]  ;;  %v3371_v6 = vld [vmem:[#allocation23 + $0x540] sm:$0xff] }
0x1414   :  { %3480 = vmatpush2.msra.mxu0 %v3348_v35  ;;  %v3410_v35 = vld [vmem:[#allocation23 + $0x678] sm:$0xff] }
0x1415   :  { %3481 = vmatprep.subr.mxu0 %v3344_v36  ;;  %v3246_v36 = vld [vmem:[#allocation23 + $0x158] sm:$0xff] }
0x1416   :  { %3482 = vmatpush2.msra.mxu0 %v3343_v23  ;;  %v3406_v23 = vld [vmem:[#allocation23 + $0x658] sm:$0xff] }
0x1417   :  { %3483 = vmatprep.subr.mxu0 %v3339_v9  ;;  %v3245_v9 = vld [vmem:[#allocation23 + $0x150] sm:$0xff] }
0x1418   :  { %3484 = vmatpush2.msra.mxu0 %v3338_v49  ;;  %v3405_v49 = vld [vmem:[#allocation23 + $0x650] sm:$0xff] }
0x1419   :  { %3485 = vmatprep.subr.mxu0 %v3334_v50  ;;  %v3241_v50 = vld [vmem:[#allocation23 + $0x130] sm:$0xff] }
0x141a   :  { %3486 = vmatpush2.msra.mxu0 %v3333_v62  ;;  %v3401_v62 = vld [vmem:[#allocation23 + $0x630] sm:$0xff] }
0x141b   :  { %3487 = vmatprep.subr.mxu0 %v3329_v40  ;;  %v3240_v40 = vld [vmem:[#allocation23 + $0x128] sm:$0xff] }
0x141c   :  { %3488 = vmatpush2.msra.mxu0 %v3328_v53  ;;  %v3400_v53 = vld [vmem:[#allocation23 + $0x628] sm:$0xff] }
0x141d   :  { %3489 = vmatprep.subr.mxu0 %v3324_v55  ;;  %v3236_v55 = vld [vmem:[#allocation23 + $0x108] sm:$0xff] }
0x141e   :  { %3490 = vmatpush2.msra.mxu0 %v3323_v57  ;;  %v3396_v57 = vld [vmem:[#allocation23 + $0x608] sm:$0xff] }
0x141f   :  { %3491 = vmatprep.subr.mxu0 %v3319_v44  ;;  %v3235_v44 = vld [vmem:[#allocation23 + $0x100] sm:$0xff] }
0x1420   :  { %3492 = vmatpush2.msra.mxu0 %v3318_v15  ;;  %v3395_v15 = vld [vmem:[#allocation23 + $0x600] sm:$0xff] }
0x1421   :  { %3493 = vmatprep.subr.mxu0 %v3314_v32  ;;  %v3231_v32 = vld [vmem:[#allocation23 + $0xe0] sm:$0xff] }
0x1422   :  { %3494 = vmatpush2.msra.mxu0 %v3313_v10  ;;  %v3391_v10 = vld [vmem:[#allocation23 + $0x5e0] sm:$0xff] }
0x1423   :  { %3495 = vmatprep.subr.mxu0 %v3309_v33  ;;  %v3230_v33 = vld [vmem:[#allocation23 + $0xd8] sm:$0xff] }
0x1424   :  { %3496 = vmatpush2.msra.mxu0 %v3308_v12  ;;  %v3390_v12 = vld [vmem:[#allocation23 + $0x5d8] sm:$0xff] }
0x1425   :  { %3497 = vmatprep.subr.mxu0 %v3304_v14  ;;  %v3226_v14 = vld [vmem:[#allocation23 + $0xb8] sm:$0xff] }
0x1426   :  { %3498 = vmatpush2.msra.mxu0 %v3303_v17  ;;  %v3386_v17 = vld [vmem:[#allocation23 + $0x5b8] sm:$0xff] }
0x1427   :  { %3499 = vmatprep.subr.mxu0 %v3299_v13  ;;  %v3225_v13 = vld [vmem:[#allocation23 + $0xb0] sm:$0xff] }
0x1428   :  { %3500 = vmatpush2.msra.mxu0 %v3298_v25  ;;  %v3385_v25 = vld [vmem:[#allocation23 + $0x5b0] sm:$0xff] }
0x1429   :  { %3501 = vmatprep.subr.mxu0 %v3294_v54  ;;  %v3221_v54 = vld [vmem:[#allocation23 + $0x90] sm:$0xff] }
0x142a   :  { %3502 = vmatpush2.msra.mxu0 %v3293_v19  ;;  %v3381_v19 = vld [vmem:[#allocation23 + $0x590] sm:$0xff] }
0x142b   :  { %3503 = vmatprep.subr.mxu0 %v3289_v59  ;;  %v3220_v59 = vld [vmem:[#allocation23 + $0x88] sm:$0xff] }
0x142c   :  { %3504 = vmatpush2.msra.mxu0 %v3288_v37  ;;  %v3380_v37 = vld [vmem:[#allocation23 + $0x588] sm:$0xff] }
0x142d   :  { %3505 = vmatprep.subr.mxu0 %v3284_v42  ;;  %v3376_v42 = vld [vmem:[#allocation23 + $0x568] sm:$0xff] }
0x142e   :  { %3506 = vmatpush2.msra.mxu0 %v3283_v30  ;;  %v3375_v30 = vld [vmem:[#allocation23 + $0x560] sm:$0xff] }
0x142f   :  { %3674 = vmatprep.subr.mxu0 %v3441_v8  ;;  %v3210_v8 = vld [vmem:[#allocation23 + $0x38] sm:$0xff] }
0x14ad   :  { %v6886_v21 = vpop.f32.mrf.mxu0 }
0x14ae   :  { %v6888_v46 = vpop.f32.mrf.mxu1 }
0x14af   :  { %v6890_v47 = vpop.f32.mrf.mxu0 }
0x14b0   :  { %v6892_v16 = vpop.f32.mrf.mxu1  ;;  %3507 = vmatprep.mubr.f32.mxu0 %v6890_v47 }
0x14b1   :  { %v6895_v34 = vpop.f32.mrf.mxu0  ;;  %3508 = vmatmul.mubr.f32.vlgmr.msra.gmra.mxu0 %v6886_v21  ;;  %3585 = vmatmul.mubr.f32.vlgmr.msra.gmra.mxu1 %v6892_v16 }
0x14b2   :  { %3598 = vmatpush1.msra.mxu1 %v3280_v24  ;;  %3675 = vmatpush1.msra.mxu0 %v3440_v38  ;;  %v3370_v24 = vld [vmem:[#allocation23 + $0x538] sm:$0xff] }
0x14b3   :  { %3599 = vmatprep.subr.mxu1 %v3276_v28  ;;  %3676 = vmatprep.subr.mxu0 %v3436_v11  ;;  %v6899_v56 = vpop.f32.mrf.mxu0  ;;  %v3206_v38 = vld [vmem:[#allocation23 + $0x18] sm:$0xff]  ;;  %v3205_v11 = vld [vmem:[#allocation23 + $0x10] sm:$0xff] }
0x14b4   :  { %3600 = vmatpush1.msra.mxu1 %v3275_v20  ;;  %3677 = vmatpush1.msra.mxu0 %v3435_v2  ;;  %v3366_v28 = vld [vmem:[#allocation23 + $0x518] sm:$0xff]  ;;  %v3365_v20 = vld [vmem:[#allocation23 + $0x510] sm:$0xff] }
0x14b5   :  { %3513 = vmatprep.mubr.f32.mxu0 %v6899_v56  ;;  %3590 = vmatprep.mubr.f32.mxu1 %v5606_v0  ;;  %v3361_v2 = vld [vmem:[#allocation23 + $0x4f0] sm:$0xff] }
0x14b6   :  { %3601 = vmatprep.subr.mxu1 %v3271_v18  ;;  %3678 = vmatprep.subr.mxu0 %v3431_v22  ;;  %v3362_v18 = vld [vmem:[#allocation23 + $0x4f8] sm:$0xff]  ;;  %v3360_v22 = vld [vmem:[#allocation23 + $0x4e8] sm:$0xff] }
0x14b7   :  { %3514 = vmatmul.mubr.f32.gmra.mxu0 %v6895_v34  ;;  %3591 = vmatmul.mubr.f32.gmra.mxu1 %v6888_v46 }
0x14b8   :  { %3602 = vmatpush1.msra.mxu1 %v3270_v61  ;;  %3679 = vmatpush1.msra.mxu0 %v3430_v39  ;;  %v3282_v61 = vld [vmem:[#allocation23 + $0x278] sm:$0xff]  ;;  %v3356_v39 = vld [vmem:[#allocation23 + $0x4c8] sm:$0xff] }
0x14b9   :  { %3603 = vmatprep.subr.mxu1 %v3266_v60  ;;  %3661 = vmatprep.mubr.f32.mxu1 %v6890_v47  ;;  %v3357_v60 = vld [vmem:[#allocation23 + $0x4d0] sm:$0xff] }
0x14ba   :  { %3680 = vmatprep.subr.mxu0 %v3426_v52  ;;  %3604 = vmatpush1.msra.mxu1 %v3265_v63  ;;  %v3355_v52 = vld [vmem:[#allocation23 + $0x4c0] sm:$0xff]  ;;  %v3277_v63 = vld [vmem:[#allocation23 + $0x250] sm:$0xff] }
0x14bb   :  { %3681 = vmatpush1.msra.mxu0 %v3425_v26  ;;  %3605 = vmatprep.subr.mxu1 %v3261_v27  ;;  %v3351_v26 = vld [vmem:[#allocation23 + $0x4a0] sm:$0xff]  ;;  %v3352_v27 = vld [vmem:[#allocation23 + $0x4a8] sm:$0xff] }
0x14bc   :  { %3682 = vmatprep.subr.mxu0 %v3421_v1  ;;  %3606 = vmatpush1.msra.mxu1 %v3260_v29  ;;  %v3350_v1 = vld [vmem:[#allocation23 + $0x498] sm:$0xff]  ;;  %v3272_v29 = vld [vmem:[#allocation23 + $0x228] sm:$0xff] }
0x14bd   :  { %3683 = vmatpush1.msra.mxu0 %v3420_v31  ;;  %3607 = vmatprep.subr.mxu1 %v3256_v48  ;;  %v3346_v31 = vld [vmem:[#allocation23 + $0x478] sm:$0xff]  ;;  %v3347_v48 = vld [vmem:[#allocation23 + $0x480] sm:$0xff] }
0x14be   :  { %3684 = vmatprep.subr.mxu0 %v3416_v7  ;;  %3608 = vmatpush1.msra.mxu1 %v3255_v58  ;;  %v3345_v7 = vld [vmem:[#allocation23 + $0x470] sm:$0xff]  ;;  %v3267_v58 = vld [vmem:[#allocation23 + $0x200] sm:$0xff] }
0x14bf   :  { %3685 = vmatpush1.msra.mxu0 %v3415_v3  ;;  %3609 = vmatprep.subr.mxu1 %v3251_v45  ;;  %v3341_v3 = vld [vmem:[#allocation23 + $0x450] sm:$0xff]  ;;  %v3342_v45 = vld [vmem:[#allocation23 + $0x458] sm:$0xff] }
0x14c0   :  { %3686 = vmatprep.subr.mxu0 %v3411_v4  ;;  %3610 = vmatpush1.msra.mxu1 %v3250_v5  ;;  %v3340_v4 = vld [vmem:[#allocation23 + $0x448] sm:$0xff]  ;;  %v3262_v5 = vld [vmem:[#allocation23 + $0x1d8] sm:$0xff] }
0x14c1   :  { %3687 = vmatpush1.msra.mxu0 %v3410_v35  ;;  %3611 = vmatprep.subr.mxu1 %v3246_v36  ;;  %v3336_v35 = vld [vmem:[#allocation23 + $0x428] sm:$0xff]  ;;  %v3337_v36 = vld [vmem:[#allocation23 + $0x430] sm:$0xff] }
0x14c2   :  { %3688 = vmatprep.subr.mxu0 %v3406_v23  ;;  %3612 = vmatpush1.msra.mxu1 %v3245_v9  ;;  %v3335_v23 = vld [vmem:[#allocation23 + $0x420] sm:$0xff]  ;;  %v3257_v9 = vld [vmem:[#allocation23 + $0x1b0] sm:$0xff] }
0x14c3   :  { %3689 = vmatpush1.msra.mxu0 %v3405_v49  ;;  %3613 = vmatprep.subr.mxu1 %v3241_v50  ;;  %v3331_v49 = vld [vmem:[#allocation23 + $0x400] sm:$0xff]  ;;  %v3332_v50 = vld [vmem:[#allocation23 + $0x408] sm:$0xff] }
0x14c4   :  { %3690 = vmatprep.subr.mxu0 %v3401_v62  ;;  %3614 = vmatpush1.msra.mxu1 %v3240_v40  ;;  %v3252_v62 = vld [vmem:[#allocation23 + $0x188] sm:$0xff]  ;;  %v3326_v40 = vld [vmem:[#allocation23 + $0x3d8] sm:$0xff] }
0x14c5   :  { %3691 = vmatpush1.msra.mxu0 %v3400_v53  ;;  %3615 = vmatprep.subr.mxu1 %v3236_v55  ;;  %v3327_v53 = vld [vmem:[#allocation23 + $0x3e0] sm:$0xff]  ;;  %v3325_v55 = vld [vmem:[#allocation23 + $0x3d0] sm:$0xff] }
0x14c6   :  { %3692 = vmatprep.subr.mxu0 %v3396_v57  ;;  %3616 = vmatpush1.msra.mxu1 %v3235_v44  ;;  %v3247_v57 = vld [vmem:[#allocation23 + $0x160] sm:$0xff]  ;;  %v3321_v44 = vld [vmem:[#allocation23 + $0x3b0] sm:$0xff] }
0x14c7   :  { %3693 = vmatpush1.msra.mxu0 %v3395_v15  ;;  %3617 = vmatprep.subr.mxu1 %v3231_v32  ;;  %v3322_v15 = vld [vmem:[#allocation23 + $0x3b8] sm:$0xff]  ;;  %v3320_v32 = vld [vmem:[#allocation23 + $0x3a8] sm:$0xff] }
0x14c8   :  { %3694 = vmatprep.subr.mxu0 %v3391_v10  ;;  %3618 = vmatpush1.msra.mxu1 %v3230_v33  ;;  %v3242_v10 = vld [vmem:[#allocation23 + $0x138] sm:$0xff]  ;;  %v3316_v33 = vld [vmem:[#allocation23 + $0x388] sm:$0xff] }
0x14c9   :  { %3695 = vmatpush1.msra.mxu0 %v3390_v12  ;;  %3619 = vmatprep.subr.mxu1 %v3226_v14  ;;  %v3317_v12 = vld [vmem:[#allocation23 + $0x390] sm:$0xff]  ;;  %v3315_v14 = vld [vmem:[#allocation23 + $0x380] sm:$0xff] }
0x14ca   :  { %3696 = vmatprep.subr.mxu0 %v3386_v17  ;;  %3620 = vmatpush1.msra.mxu1 %v3225_v13  ;;  %v3237_v17 = vld [vmem:[#allocation23 + $0x110] sm:$0xff]  ;;  %v3311_v13 = vld [vmem:[#allocation23 + $0x360] sm:$0xff] }
0x14cb   :  { %3697 = vmatpush1.msra.mxu0 %v3385_v25  ;;  %3621 = vmatprep.subr.mxu1 %v3221_v54  ;;  %v3312_v25 = vld [vmem:[#allocation23 + $0x368] sm:$0xff]  ;;  %v3310_v54 = vld [vmem:[#allocation23 + $0x358] sm:$0xff] }
0x14cc   :  { %3698 = vmatprep.subr.mxu0 %v3381_v19  ;;  %3622 = vmatpush1.msra.mxu1 %v3220_v59  ;;  %v3232_v19 = vld [vmem:[#allocation23 + $0xe8] sm:$0xff]  ;;  %v3306_v59 = vld [vmem:[#allocation23 + $0x338] sm:$0xff] }
0x14cd   :  { %3699 = vmatpush1.msra.mxu0 %v3380_v37  ;;  %3623 = vmatprep.subr.mxu1 %v3216_v41  ;;  %v3307_v37 = vld [vmem:[#allocation23 + $0x340] sm:$0xff]  ;;  %v3305_v41 = vld [vmem:[#allocation23 + $0x330] sm:$0xff] }
0x14ce   :  { %3700 = vmatprep.subr.mxu0 %v3376_v42  ;;  %3624 = vmatpush1.msra.mxu1 %v3215_v43  ;;  %v3227_v42 = vld [vmem:[#allocation23 + $0xc0] sm:$0xff]  ;;  %v3301_v43 = vld [vmem:[#allocation23 + $0x310] sm:$0xff] }
0x14cf   :  { %3701 = vmatpush1.msra.mxu0 %v3375_v30  ;;  %3625 = vmatprep.subr.mxu1 %v3211_v51  ;;  %v3302_v30 = vld [vmem:[#allocation23 + $0x318] sm:$0xff]  ;;  %v3300_v51 = vld [vmem:[#allocation23 + $0x308] sm:$0xff] }
0x14d0   :  { %3702 = vmatprep.subr.mxu0 %v3371_v6  ;;  %3626 = vmatpush1.msra.mxu1 %v3210_v8  ;;  %v3222_v6 = vld [vmem:[#allocation23 + $0x98] sm:$0xff]  ;;  %v3296_v8 = vld [vmem:[#allocation23 + $0x2e8] sm:$0xff] }
0x14d1   :  { %3703 = vmatpush1.msra.mxu0 %v3370_v24  ;;  %3627 = vmatprep.subr.mxu1 %v3206_v38  ;;  %v3297_v24 = vld [vmem:[#allocation23 + $0x2f0] sm:$0xff]  ;;  %v3295_v38 = vld [vmem:[#allocation23 + $0x2e0] sm:$0xff] }
0x14d2   :  { %3704 = vmatprep.subr.mxu0 %v3366_v28  ;;  %3628 = vmatpush1.msra.mxu1 %v3205_v11  ;;  %v3217_v28 = vld [vmem:[#allocation23 + $0x70] sm:$0xff]  ;;  %v3291_v11 = vld [vmem:[#allocation23 + $0x2c0] sm:$0xff] }
0x14d3   :  { %3705 = vmatpush1.msra.mxu0 %v3365_v20  ;;  %3738 = vmatprep.mubr.f32.mxu0 %v5606_v0  ;;  %v3292_v20 = vld [vmem:[#allocation23 + $0x2c8] sm:$0xff] }
0x14d4   :  { %3629 = vmatprep.subr.mxu1 %v3361_v2  ;;  %3739 = vmatmul.mubr.f32.vlgmr.msra.gmra.mxu0 %v6892_v16  ;;  %v3290_v2 = vld [vmem:[#allocation23 + $0x2b8] sm:$0xff] }
0x14d5   :  { %4677 = vmatprep.subr.mxu0 %v3362_v18  ;;  %3630 = vmatpush2.msra.mxu1 %v3360_v22  ;;  %v3212_v18 = vld [vmem:[#allocation23 + $0x48] sm:$0xff]  ;;  %v3286_v22 = vld [vmem:[#allocation23 + $0x298] sm:$0xff] }
0x14d6   :  { %4678 = vmatpush3.msra.mxu0 %v3282_v61  ;;  %3631 = vmatprep.subr.mxu1 %v3356_v39  ;;  %v3287_v61 = vld [vmem:[#allocation23 + $0x2a0] sm:$0xff]  ;;  %v3285_v39 = vld [vmem:[#allocation23 + $0x290] sm:$0xff] }
0x14d7   :  { %4679 = vmatprep.subr.mxu0 %v3357_v60  ;;  %3632 = vmatpush2.msra.mxu1 %v3355_v52  ;;  %v3207_v60 = vld [vmem:[#allocation23 + $0x20] sm:$0xff]  ;;  %v3442_v52 = vld [vmem:[#allocation23 + $0x778] sm:$0xff] }
0x14d8   :  { %3744 = vmatprep.mubr.f32.mxu0 %v5606_v0  ;;  %4680 = vmatpush3.msra.mxu0 %v3277_v63  ;;  %v3437_v63 = vld [vmem:[#allocation23 + $0x750] sm:$0xff] }
0x14d9   :  { %3633 = vmatprep.subr.mxu1 %v3351_v26  ;;  %3745 = vmatmul.mubr.f32.gmra.mxu0 %v6888_v46  ;;  %v3432_v26 = vld [vmem:[#allocation23 + $0x728] sm:$0xff] }
0x14da   :  { %4681 = vmatprep.subr.mxu0 %v3352_v27  ;;  %3634 = vmatpush2.msra.mxu1 %v3350_v1  ;;  %v3427_v27 = vld [vmem:[#allocation23 + $0x700] sm:$0xff]  ;;  %v3417_v1 = vld [vmem:[#allocation23 + $0x6b0] sm:$0xff] }
0x14db   :  { %4682 = vmatpush3.msra.mxu0 %v3272_v29  ;;  %3815 = vmatprep.mubr.f32.mxu0 %v6890_v47  ;;  %v3330_v47 = vld [vmem:[#allocation23 + $0x3f8] sm:$0xff]  ;;  %v3407_v29 = vld [vmem:[#allocation23 + $0x660] sm:$0xff] }
0x14dc   :  { %3635 = vmatprep.subr.mxu1 %v3346_v31  ;;  %4683 = vmatprep.subr.mxu0 %v3347_v48  ;;  %v3402_v31 = vld [vmem:[#allocation23 + $0x638] sm:$0xff]  ;;  %v3387_v48 = vld [vmem:[#allocation23 + $0x5c0] sm:$0xff] }
0x14dd   :  { %3636 = vmatpush2.msra.mxu1 %v3345_v7  ;;  %4684 = vmatpush3.msra.mxu0 %v3267_v58  ;;  %v3382_v7 = vld [vmem:[#allocation23 + $0x598] sm:$0xff]  ;;  %v3377_v58 = vld [vmem:[#allocation23 + $0x570] sm:$0xff] }
0x14de   :  { %3637 = vmatprep.subr.mxu1 %v3341_v3  ;;  %4685 = vmatprep.subr.mxu0 %v3342_v45  ;;  %v3372_v3 = vld [vmem:[#allocation23 + $0x548] sm:$0xff]  ;;  %v3367_v45 = vld [vmem:[#allocation23 + $0x520] sm:$0xff] }
0x14df   :  { %3638 = vmatpush2.msra.mxu1 %v3340_v4  ;;  %4686 = vmatpush3.msra.mxu0 %v3262_v5 }
0x14e0   :  { %3639 = vmatprep.subr.mxu1 %v3336_v35  ;;  %4687 = vmatprep.subr.mxu0 %v3337_v36 }
0x14e1   :  { %3640 = vmatpush2.msra.mxu1 %v3335_v23  ;;  %4688 = vmatpush3.msra.mxu0 %v3257_v9 }
0x14e2   :  { %3641 = vmatprep.subr.mxu1 %v3331_v49  ;;  %4689 = vmatprep.subr.mxu0 %v3332_v50 }
0x14e3   :  { %3642 = vmatpush2.msra.mxu1 %v3330_v47  ;;  %4690 = vmatpush3.msra.mxu0 %v3252_v62  ;;  %v3907_v62 = vld [vmem:[%s7255_s23 + $0x30] sm:$0x3] }
0x14e4   :  { %3643 = vmatprep.subr.mxu1 %v3326_v40  ;;  %4691 = vmatprep.subr.mxu0 %v3327_v53 }
0x14e5   :  { %3644 = vmatpush2.msra.mxu1 %v3325_v55  ;;  %4692 = vmatpush3.msra.mxu0 %v3247_v57  ;;  %v3902_v57 = vld [vmem:[%s7255_s23 + $0x8] sm:$0xff] }
0x14e6   :  { %3645 = vmatprep.subr.mxu1 %v3321_v44  ;;  %4693 = vmatprep.subr.mxu0 %v3322_v15  ;;  %v3901_v44 = vld [vmem:[%s7255_s23] sm:$0xff] }
0x14e7   :  { %3646 = vmatpush2.msra.mxu1 %v3320_v32  ;;  %4694 = vmatpush3.msra.mxu0 %v3242_v10 }
0x14e8   :  { %3647 = vmatprep.subr.mxu1 %v3316_v33  ;;  %4695 = vmatprep.subr.mxu0 %v3317_v12  ;;  %v6938_v12 = vld [vmem:[%s7256_s24] sm:$0x3] }
0x14e9   :  { %3648 = vmatpush2.msra.mxu1 %v3315_v14  ;;  %4696 = vmatpush3.msra.mxu0 %v3237_v17 }
0x14ea   :  { %3649 = vmatprep.subr.mxu1 %v3311_v13  ;;  %4697 = vmatprep.subr.mxu0 %v3312_v25 }
0x14eb   :  { %3650 = vmatpush2.msra.mxu1 %v3310_v54  ;;  %4698 = vmatpush3.msra.mxu0 %v3232_v19 }
0x14ec   :  { %3651 = vmatprep.subr.mxu1 %v3306_v59  ;;  %4699 = vmatprep.subr.mxu0 %v3307_v37 }
0x14ed   :  { %3652 = vmatpush2.msra.mxu1 %v3305_v41  ;;  %4700 = vmatpush3.msra.mxu0 %v3227_v42  ;;  %v3909_v42 = vld [vmem:[%s7255_s23 + $0x40] sm:$0x3] }
0x14ee   :  { %3653 = vmatprep.subr.mxu1 %v3301_v43  ;;  %4701 = vmatprep.subr.mxu0 %v3302_v30  ;;  %v3908_v30 = vld [vmem:[%s7255_s23 + $0x38] sm:$0x3] }
0x14ef   :  { %3654 = vmatpush2.msra.mxu1 %v3300_v51  ;;  %4702 = vmatpush3.msra.mxu0 %v3222_v6 }
0x14f0   :  { %3655 = vmatprep.subr.mxu1 %v3296_v8  ;;  %4703 = vmatprep.subr.mxu0 %v3297_v24  ;;  %v3904_v8 = vld [vmem:[%s7255_s23 + $0x18] sm:$0xff]  ;;  %v3903_v24 = vld [vmem:[%s7255_s23 + $0x10] sm:$0xff] }
0x14f1   :  { %3656 = vmatpush2.msra.mxu1 %v3295_v38  ;;  %4704 = vmatpush3.msra.mxu0 %v3217_v28 }
0x14f2   :  { %3657 = vmatprep.subr.mxu1 %v3291_v11  ;;  %4705 = vmatprep.subr.mxu0 %v3292_v20 }
0x14f3   :  { %3658 = vmatpush2.msra.mxu1 %v3290_v2  ;;  %4706 = vmatpush3.msra.mxu0 %v3212_v18  ;;  %v4183_v2 = vld [vmem:[%s7257_s25 + $0xf8] sm:$0xff] }
0x14f4   :  { %3659 = vmatprep.subr.mxu1 %v3286_v22  ;;  %4707 = vmatprep.subr.mxu0 %v3287_v61  ;;  %v4167_v18 = vld [vmem:[%s7257_s25 + $0x78] sm:$0xff]  ;;  %v4182_v22 = vld [vmem:[%s7257_s25 + $0xf0] sm:$0xff] }
0x14f5   :  { %3660 = vmatpush2.msra.mxu1 %v3285_v39  ;;  %4708 = vmatpush3.msra.mxu0 %v3207_v60  ;;  %v4166_v61 = vld [vmem:[%s7257_s25 + $0x70] sm:$0xff]  ;;  %v4181_v60 = vld [vmem:[%s7257_s25 + $0xe8] sm:$0xff] }
0x14f6   :  { %3662 = vmatmul.mubr.f32.vlgmr.msra.gmra.mxu1 %v6886_v21  ;;  %3816 = vmatmul.mubr.f32.vlgmr.msra.gmra.mxu0 %v6886_v21  ;;  %v3422_v21 = vld [vmem:[#allocation23 + $0x6d8] sm:$0xff] }
0x14f7   :  { %5056 = vmatprep.subr.mxu1 %v3442_v52  ;;  %3667 = vmatprep.mubr.f32.mxu1 %v6899_v56 }
0x14f8   :  { %3820 = vmatprep.mubr.f32.mxu0 %v6899_v56  ;;  %5057 = vmatpush3.msra.mxu1 %v3442_v52  ;;  %v3412_v56 = vld [vmem:[#allocation23 + $0x688] sm:$0xff]  ;;  %v4165_v52 = vld [vmem:[%s7257_s25 + $0x68] sm:$0xff] }
0x14f9   :  { %5058 = vmatprep.subr.mxu1 %v3437_v63 }
0x14fa   :  { %5059 = vmatpush3.msra.mxu1 %v3437_v63  ;;  %3821 = vmatmul.mubr.f32.gmra.mxu0 %v6895_v34  ;;  %v4180_v63 = vld [vmem:[%s7257_s25 + $0xe0] sm:$0xff] }
0x14fb   :  { %3668 = vmatmul.mubr.f32.gmra.mxu1 %v6895_v34  ;;  %5060 = vmatprep.subr.mxu1 %v3432_v26  ;;  %v3397_v34 = vld [vmem:[#allocation23 + $0x610] sm:$0xff] }
0x14fc   :  { %5061 = vmatpush3.msra.mxu1 %v3432_v26  ;;  %5088 = vmatprep.mubr.f32.mxu1 %v6892_v16  ;;  %v3392_v16 = vld [vmem:[#allocation23 + $0x5e8] sm:$0xff]  ;;  %v4164_v26 = vld [vmem:[%s7257_s25 + $0x60] sm:$0xff] }
0x14fd   :  { %5062 = vmatprep.subr.mxu1 %v3427_v27  ;;  %4075 = vmatprep.mubr.f32.mxu0 %v5606_v0 }
0x14fe   :  { %5063 = vmatpush3.msra.mxu1 %v3427_v27 }
0x14ff   :  { %5064 = vmatprep.subr.mxu1 %v3422_v21 }
0x1500   :  { %5065 = vmatpush3.msra.mxu1 %v3422_v21  ;;  %v4179_v21 = vld [vmem:[%s7257_s25 + $0xd8] sm:$0xff] }
0x1501   :  { %5066 = vmatprep.subr.mxu1 %v3417_v1 }
0x1502   :  { %5067 = vmatpush3.msra.mxu1 %v3417_v1  ;;  %v4163_v1 = vld [vmem:[%s7257_s25 + $0x58] sm:$0xff] }
0x1503   :  { %5068 = vmatprep.subr.mxu1 %v3412_v56 }
0x1504   :  { %5069 = vmatpush3.msra.mxu1 %v3412_v56  ;;  %v4178_v56 = vld [vmem:[%s7257_s25 + $0xd0] sm:$0xff] }
0x1505   :  { %5070 = vmatprep.subr.mxu1 %v3407_v29 }
0x1506   :  { %5071 = vmatpush3.msra.mxu1 %v3407_v29  ;;  %v4162_v29 = vld [vmem:[%s7257_s25 + $0x50] sm:$0xff] }
0x1507   :  { %5072 = vmatprep.subr.mxu1 %v3402_v31 }
0x1508   :  { %5073 = vmatpush3.msra.mxu1 %v3402_v31 }
0x1509   :  { %5074 = vmatprep.subr.mxu1 %v3397_v34 }
0x150a   :  { %5075 = vmatpush3.msra.mxu1 %v3397_v34  ;;  %v4177_v34 = vld [vmem:[%s7257_s25 + $0xc8] sm:$0xff] }
0x150b   :  { %5076 = vmatprep.subr.mxu1 %v3392_v16 }
0x150c   :  { %5077 = vmatpush3.msra.mxu1 %v3392_v16  ;;  %v4161_v16 = vld [vmem:[%s7257_s25 + $0x48] sm:$0xff] }
0x150d   :  { %5078 = vmatprep.subr.mxu1 %v3387_v48 }
0x150e   :  { %5079 = vmatpush3.msra.mxu1 %v3387_v48  ;;  %v4176_v48 = vld [vmem:[%s7257_s25 + $0xc0] sm:$0xff] }
0x150f   :  { %5080 = vmatprep.subr.mxu1 %v3382_v7 }
0x1510   :  { %5081 = vmatpush3.msra.mxu1 %v3382_v7  ;;  %v4160_v7 = vld [vmem:[%s7257_s25 + $0x40] sm:$0xff] }
0x1511   :  { %5082 = vmatprep.subr.mxu1 %v3377_v58 }
0x1512   :  { %5083 = vmatpush3.msra.mxu1 %v3377_v58 }
0x1513   :  { %5084 = vmatprep.subr.mxu1 %v3372_v3 }
0x1514   :  { %5085 = vmatpush3.msra.mxu1 %v3372_v3  ;;  %v4175_v3 = vld [vmem:[%s7257_s25 + $0xb8] sm:$0xff] }
0x1515   :  { %5086 = vmatprep.subr.mxu1 %v3367_v45 }
0x1516   :  { %5087 = vmatpush3.msra.mxu1 %v3367_v45  ;;  %v4159_v45 = vld [vmem:[%s7257_s25 + $0x38] sm:$0xff] }
0x1517   :  { %5089 = vmatmul.mubr.f32.vlgmr.msra.gmra.mxu1 %v6888_v46  ;;  %v3906_v46 = vld [vmem:[%s7255_s23 + $0x28] sm:$0x3] }
0x1518   :  { %4004 = vmatprep.mubr.f32.mxu1 %v5606_v0 }
0x1571   :  { %v3509_v4 = vpop.f32.mrf.mxu0  ;;  %v3586_v5 = vpop.f32.mrf.mxu1 }
0x1572   :  { %v3587_v55 = vadd.f32 %v3586_v5, %v3509_v4  ;;  %v4174_v4 = vld [vmem:[%s7257_s25 + $0xb0] sm:$0xff] }
0x1573   :  { %v3511_v35 = vpop.f32.mrf.mxu0  ;;  %v3588_v36 = vpop.f32.mrf.mxu1 }
0x1574   :  { %v3589_v40 = vadd.f32 %v3588_v36, %v3511_v35  ;;  %v3911_v33 = vmul.f32 %v3901_v44, %v3587_v55  ;;  %v4158_v35 = vld [vmem:[%s7257_s25 + $0x30] sm:$0xff]  ;;  %v4171_v44 = vld [vmem:[%s7257_s25 + $0x98] sm:$0xff] }
0x1576   :  { %v3912_v10 = vmul.f32 %v3902_v57, %v3589_v40  ;;  %v3905_v40 = vld [vmem:[%s7255_s23 + $0x20] sm:$0xff] }
0x1577   :  { %v3515_v23 = vpop.f32.mrf.mxu0  ;;  %v3592_v9 = vpop.f32.mrf.mxu1  ;;  %v4156_v57 = vld [vmem:[%s7257_s25 + $0x20] sm:$0xff] }
0x1578   :  { %v3593_v49 = vadd.f32 %v3592_v9, %v3515_v23  ;;  %v3910_v23 = vld [vmem:[%s7255_s23 + $0x48] sm:$0x3] }
0x1579   :  { %v3517_v50 = vpop.f32.mrf.mxu0  ;;  %v3594_v47 = vpop.f32.mrf.mxu1  ;;  %v4173_v9 = vld [vmem:[%s7257_s25 + $0xa8] sm:$0xff] }
0x157a   :  { %v3595_v53 = vadd.f32 %v3594_v47, %v3517_v50  ;;  %v3916_v32 = vmul.f32 %v3906_v46, %v3593_v49  ;;  %v4157_v47 = vld [vmem:[%s7257_s25 + $0x28] sm:$0xff]  ;;  %v4172_v46 = vld [vmem:[%s7257_s25 + $0xa0] sm:$0xff] }
0x157c   :  { %v3917_v15 = vmul.f32 %v3907_v62, %v3595_v53 }
0x157e   :  { %4542 = vmatprep.subr.msk.mxu1 %vm1931_vm4, %v3917_v15 }
0x157f   :  { %4543 = vmatpush1.msk.msra.mxu1 %vm1931_vm4, %v3916_v32  ;;  %v4215_v32 = vld [vmem:[%s7257_s25 + $0x1f8] sm:$0xff] }
0x1580   :  { %3970 = vmatprep.subr.mxu1 %v3912_v10  ;;  %v4199_v10 = vld [vmem:[%s7257_s25 + $0x178] sm:$0xff] }
0x1581   :  { %3971 = vmatpush1.msra.mxu1 %v3911_v33  ;;  %v4155_v33 = vld [vmem:[%s7257_s25 + $0x18] sm:$0xff] }
0x1582   :  { %4544 = vmatmul.mubr.msk.f32.vlgmr.msra.gmra.mxu1 %vm1924_vm3, %v6938_v12  ;;  %5091 = vmatprep.subr.mxu1 %v5606_v0 }
0x1583   :  { %5095 = vmatprep.mubr.msk.f32.mxu1 %vm5607_vm7, %v5606_v0 }
0x1594   :  { %v3740_v14 = vpop.f32.mrf.mxu0 }
0x1596   :  { %v3742_v17 = vpop.f32.mrf.mxu0 }
0x1599   :  { %v3746_v54 = vpop.f32.mrf.mxu0 }
0x159b   :  { %v3748_v59 = vpop.f32.mrf.mxu0 }
0x15b6   :  { %v3663_v13 = vpop.f32.mrf.mxu1  ;;  %v4709_v39 = vpop.f32.mrf.mxu0 }
0x15b7   :  { %v3741_v6 = vadd.f32 %v3740_v14, %v3663_v13  ;;  %v4214_v14 = vld [vmem:[%s7257_s25 + $0x1f0] sm:$0xff] }
0x15b8   :  { %v3665_v25 = vpop.f32.mrf.mxu1  ;;  %v4710_v27 = vpop.f32.mrf.mxu0  ;;  %v4198_v13 = vld [vmem:[%s7257_s25 + $0x170] sm:$0xff] }
0x15b9   :  { %v3743_v43 = vadd.f32 %v3742_v17, %v3665_v25  ;;  %v3913_v20 = vmul.f32 %v3903_v24, %v3741_v6  ;;  %v4711_v49 = vadd.f32 %v4710_v27, %v4709_v39  ;;  %v4170_v17 = vld [vmem:[%s7257_s25 + $0x90] sm:$0xff]  ;;  %v4209_v24 = vld [vmem:[%s7257_s25 + $0x1c8] sm:$0xff] }
0x15ba   :  { %v4712_v31 = vpop.f32.mrf.mxu0  ;;  %v4154_v25 = vld [vmem:[%s7257_s25 + $0x10] sm:$0xff]  ;;  %v4189_v39 = vld [vmem:[%s7257_s25 + $0x128] sm:$0xff] }
0x15bb   :  { %v3669_v19 = vpop.f32.mrf.mxu1  ;;  %v3914_v11 = vmul.f32 %v3904_v8, %v3743_v43  ;;  %v4152_v43 = vld [vmem:[%s7257_s25] sm:$0xff]  ;;  %v4210_v6 = vld [vmem:[%s7257_s25 + $0x1d0] sm:$0xff] }
0x15bc   :  { %v3747_v37 = vadd.f32 %v3746_v54, %v3669_v19  ;;  %v4713_v58 = vpop.f32.mrf.mxu0  ;;  %v4213_v54 = vld [vmem:[%s7257_s25 + $0x1e8] sm:$0xff]  ;;  %v4194_v8 = vld [vmem:[%s7257_s25 + $0x150] sm:$0xff] }
0x15bd   :  { %v3671_v41 = vpop.f32.mrf.mxu1  ;;  %v4714_v5 = vadd.f32 %v4713_v58, %v4712_v31  ;;  %v4169_v19 = vld [vmem:[%s7257_s25 + $0x88] sm:$0xff]  ;;  %v4202_v27 = vld [vmem:[%s7257_s25 + $0x190] sm:$0xff]  ;;  %v4184_v31 = vld [vmem:[%s7257_s25 + $0x100] sm:$0xff] }
0x15be   :  { %v3749_v51 = vadd.f32 %v3748_v59, %v3671_v41  ;;  %v3918_v28 = vmul.f32 %v3908_v30, %v3747_v37  ;;  %v4153_v59 = vld [vmem:[%s7257_s25 + $0x8] sm:$0xff]  ;;  %v4212_v37 = vld [vmem:[%s7257_s25 + $0x1e0] sm:$0xff]  ;;  %v4211_v30 = vld [vmem:[%s7257_s25 + $0x1d8] sm:$0xff] }
0x15bf   :  { %v4168_v41 = vld [vmem:[%s7257_s25 + $0x80] sm:$0xff]  ;;  %v4229_v58 = vld [vmem:[%s7257_s25 + $0x268] sm:$0xff] }
0x15c0   :  { %v3919_v38 = vmul.f32 %v3909_v42, %v3749_v51  ;;  %v4196_v42 = vld [vmem:[%s7257_s25 + $0x160] sm:$0xff]  ;;  %v4195_v51 = vld [vmem:[%s7257_s25 + $0x158] sm:$0xff] }
0x15c2   :  { %4545 = vmatprep.subr.msk.mxu0 %vm1931_vm4, %v3919_v38  ;;  %v4193_v38 = vld [vmem:[%s7257_s25 + $0x148] sm:$0xff] }
0x15c3   :  { %4546 = vmatpush1.msk.msra.mxu0 %vm1931_vm4, %v3918_v28  ;;  %v4208_v28 = vld [vmem:[%s7257_s25 + $0x1c0] sm:$0xff] }
0x15c4   :  { %4041 = vmatprep.subr.mxu0 %v3914_v11  ;;  %v4192_v11 = vld [vmem:[%s7257_s25 + $0x140] sm:$0xff] }
0x15c5   :  { %4042 = vmatpush1.msra.mxu0 %v3913_v20  ;;  %v4207_v20 = vld [vmem:[%s7257_s25 + $0x1b8] sm:$0xff] }
0x15c6   :  { %4547 = vmatmul.mubr.msk.f32.vlgmr.msra.gmra.mxu0 %vm1924_vm3, %v6938_v12  ;;  %4736 = vmatprep.subr.mxu0 %v4183_v2  ;;  %v4191_v2 = vld [vmem:[%s7257_s25 + $0x138] sm:$0xff] }
0x15c7   :  { %4737 = vmatpush3.msra.mxu0 %v4167_v18  ;;  %v4206_v18 = vld [vmem:[%s7257_s25 + $0x1b0] sm:$0xff] }
0x15c8   :  { %4738 = vmatprep.subr.mxu0 %v4182_v22  ;;  %v4190_v22 = vld [vmem:[%s7257_s25 + $0x130] sm:$0xff] }
0x15c9   :  { %4739 = vmatpush3.msra.mxu0 %v4166_v61  ;;  %v4205_v61 = vld [vmem:[%s7257_s25 + $0x1a8] sm:$0xff] }
0x15ca   :  { %4740 = vmatprep.subr.mxu0 %v4181_v60  ;;  %v4204_v60 = vld [vmem:[%s7257_s25 + $0x1a0] sm:$0xff] }
0x15cb   :  { %4741 = vmatpush3.msra.mxu0 %v4165_v52  ;;  %v4188_v52 = vld [vmem:[%s7257_s25 + $0x120] sm:$0xff] }
0x15cc   :  { %4742 = vmatprep.subr.mxu0 %v4180_v63  ;;  %v4203_v63 = vld [vmem:[%s7257_s25 + $0x198] sm:$0xff] }
0x15cd   :  { %4743 = vmatpush3.msra.mxu0 %v4164_v26  ;;  %v4187_v26 = vld [vmem:[%s7257_s25 + $0x118] sm:$0xff] }
0x15ce   :  { %4744 = vmatprep.subr.mxu0 %v4179_v21  ;;  %v4186_v21 = vld [vmem:[%s7257_s25 + $0x110] sm:$0xff] }
0x15cf   :  { %4745 = vmatpush3.msra.mxu0 %v4163_v1  ;;  %v4201_v1 = vld [vmem:[%s7257_s25 + $0x188] sm:$0xff] }
0x15d0   :  { %4746 = vmatprep.subr.mxu0 %v4178_v56  ;;  %v4185_v56 = vld [vmem:[%s7257_s25 + $0x108] sm:$0xff] }
0x15d1   :  { %4747 = vmatpush3.msra.mxu0 %v4162_v29  ;;  %v4200_v29 = vld [vmem:[%s7257_s25 + $0x180] sm:$0xff] }
0x15d2   :  { %4748 = vmatprep.subr.mxu0 %v4177_v34 }
0x15d3   :  { %4749 = vmatpush3.msra.mxu0 %v4161_v16 }
0x15d4   :  { %4750 = vmatprep.subr.mxu0 %v4176_v48  ;;  %v4231_v48 = vld [vmem:[%s7257_s25 + $0x278] sm:$0xff] }
0x15d5   :  { %4751 = vmatpush3.msra.mxu0 %v4160_v7  ;;  %v4230_v7 = vld [vmem:[%s7257_s25 + $0x270] sm:$0xff] }
0x15d6   :  { %4752 = vmatprep.subr.mxu0 %v4175_v3  ;;  %v4228_v3 = vld [vmem:[%s7257_s25 + $0x260] sm:$0xff] }
0x15d7   :  { %v5090_v36 = vpop.f32.mrf.mxu1  ;;  %4753 = vmatpush3.msra.mxu0 %v4159_v45  ;;  %v4227_v45 = vld [vmem:[%s7257_s25 + $0x258] sm:$0xff] }
0x15d8   :  { %v3898_v50 = vadd.f32 %v5090_v36, %v4714_v5  ;;  %4754 = vmatprep.subr.mxu0 %v4174_v4  ;;  %v4226_v4 = vld [vmem:[%s7257_s25 + $0x250] sm:$0xff]  ;;  %v4225_v5 = vld [vmem:[%s7257_s25 + $0x248] sm:$0xff]  ;;  %v4223_v36 = vld [vmem:[%s7257_s25 + $0x238] sm:$0xff] }
0x15d9   :  { %v3892_v62 = vpop.f32.mrf.mxu1  ;;  %4755 = vmatpush3.msra.mxu0 %v4158_v35  ;;  %v4224_v35 = vld [vmem:[%s7257_s25 + $0x240] sm:$0xff] }
0x15da   :  { %v3920_v53 = vmul.f32 %v3910_v23, %v3898_v50  ;;  %v3893_v55 = vadd.f32 %v4711_v49, %v3892_v62  ;;  %4756 = vmatprep.subr.mxu0 %v4173_v9  ;;  %v4222_v23 = vld [vmem:[%s7257_s25 + $0x230] sm:$0xff]  ;;  %v4221_v9 = vld [vmem:[%s7257_s25 + $0x228] sm:$0xff]  ;;  %v4220_v49 = vld [vmem:[%s7257_s25 + $0x220] sm:$0xff] }
0x15db   :  { %4757 = vmatpush3.msra.mxu0 %v4157_v47  ;;  %v4219_v50 = vld [vmem:[%s7257_s25 + $0x218] sm:$0xff]  ;;  %v4218_v47 = vld [vmem:[%s7257_s25 + $0x210] sm:$0xff]  ;;  %v4217_v62 = vld [vmem:[%s7257_s25 + $0x208] sm:$0xff] }
0x15dc   :  { %v3915_v15 = vmul.f32 %v3905_v40, %v3893_v55  ;;  %5092 = vmatpush3.msk.msra.mxu1 %vm1931_vm4, %v3920_v53  ;;  %4758 = vmatprep.subr.mxu0 %v4172_v46  ;;  %v4216_v40 = vld [vmem:[%s7257_s25 + $0x200] sm:$0xff] }
0x15dd   :  { %5093 = vmatprep.subr.mxu1 %v5606_v0  ;;  %4759 = vmatpush3.msra.mxu0 %v4156_v57 }
0x15de   :  { %5094 = vmatpush3.msra.mxu1 %v3915_v15  ;;  %4760 = vmatprep.subr.mxu0 %v4171_v44 }
0x15df   :  { %5096 = vmatmul.mubr.msk.f32.vlgmr.msra.gmra.mxu1 %vm1924_vm3, %v6938_v12  ;;  %4771 = vmatprep.subr.mxu1 %v4215_v32  ;;  %v4197_v12 = vld [vmem:[%s7257_s25 + $0x168] sm:$0xff]  ;;  %s5608_s25 = smov [#allocation26]  }
0x15e0   :  { %4772 = vmatpush3.msra.mxu1 %v4199_v10  ;;  %4761 = vmatpush3.msra.mxu0 %v4155_v33  ;;  %s4457_s24 = sshll.u32 %s5608_s25, 4  ;;  %s4458_s24 = int_to_ptr.vmem [resolvable:$true] %s4457_s24 }
0x15e1   :  { %4773 = vmatprep.subr.mxu1 %v4214_v14  ;;  %4762 = vmatprep.subr.mxu0 %v4170_v17  ;;  %v4550_v14 = vld [vmem:[#allocation24] ss:$0 sm:$0xff]  ;;  %s5548_s7 = scalar_lea.vmem %s4458_s24, 32  ;;  %p5553_p1 = scmp.lt.s32.totalorder %s4458_s24, %s4458_s24 }
0x15e2   :  { %4774 = vmatpush3.msra.mxu1 %v4198_v13  ;;  %4763 = vmatpush3.msra.mxu0 %v4154_v25  ;;  %p5549_p0 = scmp.ne.s32.totalorder %s4458_s24, %s5548_s7  ;;  %p5554_p2 = scmp.lt.s32.totalorder %s5548_s7, %s5548_s7 }
0x15e3   :  { %4775 = vmatprep.subr.mxu1 %v4213_v54  ;;  %4764 = vmatprep.subr.mxu0 %v4169_v19 }
0x15e4   :  { %4776 = vmatpush3.msra.mxu1 %v4197_v12  ;;  %4765 = vmatpush3.msra.mxu0 %v4153_v59  ;;  %p5555_p3 = por %p5554_p2, %p5553_p1 }
0x15e5   :  { %4777 = vmatprep.subr.mxu1 %v4212_v37  ;;  %4766 = vmatprep.subr.mxu0 %v4168_v41 }
0x15e6   :  { %4778 = vmatpush3.msra.mxu1 %v4196_v42  ;;  %4767 = vmatpush3.msra.mxu0 %v4152_v43  ;;  %p5556_p4 = pnand %p5555_p3, %p5549_p0 }
0x15e7   :  { %4779 = vmatprep.subr.mxu1 %v4211_v30  ;;  %5098 = vmatprep.subr.mxu0 %v5606_v0 }
0x15e8   :  { %4780 = vmatpush3.msra.mxu1 %v4195_v51 }
0x15e9   :  { %4781 = vmatprep.subr.mxu1 %v4210_v6 }
0x15ea   :  { %4782 = vmatpush3.msra.mxu1 %v4194_v8 }
0x15eb   :  { %4783 = vmatprep.subr.mxu1 %v4209_v24 }
0x15ec   :  { %4784 = vmatpush3.msra.mxu1 %v4193_v38 }
0x15ed   :  { %4785 = vmatprep.subr.mxu1 %v4208_v28 }
0x15ee   :  { %4786 = vmatpush3.msra.mxu1 %v4192_v11 }
0x15ef   :  { %4787 = vmatprep.subr.mxu1 %v4207_v20 }
0x15f0   :  { %4788 = vmatpush3.msra.mxu1 %v4191_v2 }
0x15f1   :  { %4789 = vmatprep.subr.mxu1 %v4206_v18 }
0x15f2   :  { %4790 = vmatpush3.msra.mxu1 %v4190_v22 }
0x15f3   :  { %4791 = vmatprep.subr.mxu1 %v4205_v61 }
0x15f4   :  { %4792 = vmatpush3.msra.mxu1 %v4189_v39 }
0x15f5   :  { %4793 = vmatprep.subr.mxu1 %v4204_v60 }
0x15f6   :  { %4794 = vmatpush3.msra.mxu1 %v4188_v52 }
0x15f7   :  { %4795 = vmatprep.subr.mxu1 %v4203_v63 }
0x15f8   :  { %4796 = vmatpush3.msra.mxu1 %v4187_v26 }
0x15f9   :  { %4797 = vmatprep.subr.mxu1 %v4202_v27 }
0x15fa   :  { %4798 = vmatpush3.msra.mxu1 %v4186_v21 }
0x15fb   :  { %4799 = vmatprep.subr.mxu1 %v4201_v1 }
0x15fc   :  { %4800 = vmatpush3.msra.mxu1 %v4185_v56 }
0x15fd   :  { %4801 = vmatprep.subr.mxu1 %v4200_v29 }
0x15fe   :  { %4802 = vmatpush3.msra.mxu1 %v4184_v31 }
0x1642   :  { %v4006_v34 = vpop.f32.mrf.mxu1 }
0x1644   :  { %v4008_v16 = vpop.f32.mrf.mxu1 }
0x1645   :  { %4303 = vmatprep.mubr.f32.mxu0 %v4008_v16 }
0x1646   :  { %4304 = vmatmul.mubr.f32.vlgmr.msra.gmra.mxu0 %v4006_v34 }
0x1647   :  { %5099 = vmatpush3.msra.mxu0 %v4231_v48  ;;  %5130 = vmatprep.mubr.msk.f32.mxu0 %vm5607_vm7, %v5606_v0 }
0x1648   :  { %5100 = vmatprep.subr.mxu0 %v5606_v0 }
0x1649   :  { %5101 = vmatpush3.msra.mxu0 %v4230_v7 }
0x164a   :  { %5102 = vmatprep.subr.mxu0 %v5606_v0 }
0x164b   :  { %5103 = vmatpush3.msra.mxu0 %v4229_v58 }
0x164c   :  { %5104 = vmatprep.subr.mxu0 %v5606_v0 }
0x164d   :  { %5105 = vmatpush3.msra.mxu0 %v4228_v3 }
0x164e   :  { %5106 = vmatprep.subr.mxu0 %v5606_v0 }
0x164f   :  { %5107 = vmatpush3.msra.mxu0 %v4227_v45 }
0x1650   :  { %5108 = vmatprep.subr.mxu0 %v5606_v0 }
0x1651   :  { %5109 = vmatpush3.msra.mxu0 %v4226_v4 }
0x1652   :  { %5110 = vmatprep.subr.mxu0 %v5606_v0 }
0x1653   :  { %5111 = vmatpush3.msra.mxu0 %v4225_v5 }
0x1654   :  { %5112 = vmatprep.subr.mxu0 %v5606_v0 }
0x1655   :  { %5113 = vmatpush3.msra.mxu0 %v4224_v35 }
0x1656   :  { %5114 = vmatprep.subr.mxu0 %v5606_v0 }
0x1657   :  { %5115 = vmatpush3.msra.mxu0 %v4223_v36 }
0x1658   :  { %5116 = vmatprep.subr.mxu0 %v5606_v0 }
0x1659   :  { %5117 = vmatpush3.msra.mxu0 %v4222_v23 }
0x165a   :  { %5118 = vmatprep.subr.mxu0 %v5606_v0 }
0x165b   :  { %5119 = vmatpush3.msra.mxu0 %v4221_v9 }
0x165c   :  { %5120 = vmatprep.subr.mxu0 %v5606_v0 }
0x165d   :  { %5121 = vmatpush3.msra.mxu0 %v4220_v49 }
0x165e   :  { %5122 = vmatprep.subr.mxu0 %v5606_v0 }
0x165f   :  { %5123 = vmatpush3.msra.mxu0 %v4219_v50 }
0x1660   :  { %5124 = vmatprep.subr.mxu0 %v5606_v0 }
0x1661   :  { %5125 = vmatpush3.msra.mxu0 %v4218_v47 }
0x1662   :  { %5126 = vmatprep.subr.mxu0 %v5606_v0 }
0x1663   :  { %5127 = vmatpush3.msra.mxu0 %v4217_v62 }
0x1664   :  { %5128 = vmatprep.subr.mxu0 %v5606_v0 }
0x1665   :  { %5129 = vmatpush3.msra.mxu0 %v4216_v40 }
0x1686   :  { %v4077_v46 = vpop.f32.mrf.mxu0 }
0x1688   :  { %v4079_v53 = vpop.f32.mrf.mxu0 }
0x1689   :  { %4373 = vmatprep.mubr.f32.mxu1 %v4079_v53 }
0x168a   :  { %4374 = vmatmul.mubr.f32.vlgmr.msra.gmra.mxu1 %v4077_v46 }
0x169f   :  { %v4148_v55 = vpop.f32.mrf.mxu1 }
0x16a0   :  { %5131 = vmatmul.mubr.f32.vlgmr.msra.gmra.mxu0 %v4148_v55 }
0x16a1   :  { %v5097_v57 = vpop.f32.mrf.mxu1 }
0x1706   :  { %v4768_v44 = vpop.f32.mrf.mxu0 }
0x1708   :  { %v4769_v32 = vpop.f32.mrf.mxu0 }
0x1709   :  { %v4770_v33 = vadd.f32 %v4769_v32, %v4768_v44 }
0x170b   :  { %v4306_v13 = vadd.f32 %v4770_v33, %v4550_v14 }
0x174a   :  { %v4803_v15 = vpop.f32.mrf.mxu1 }
0x174c   :  { %v4804_v10 = vpop.f32.mrf.mxu1 }
0x174d   :  { %v4805_v17 = vadd.f32 %v4804_v10, %v4803_v15 }
0x174f   :  { %v4376_v25 = vadd.f32 %v4805_v17, %v4306_v13 }
0x1760   :  { %v4445_v0 = vpop.f32.mrf.mxu0 }
0x1761   :  { %v4446_v54 = vadd.f32 %v4445_v0, %v4376_v25 }
0x1762   :  { %v5132_v19 = vpop.f32.mrf.mxu0 }
0x1763   :  { %4450 = vst.msk [vmem:[#allocation26] sm:$0x3] %vm4449_vm8, %v4446_v54 }
0x1764   :  { %5559 = shalt.err (!%p5556_p4)
}
0x1765   :  { %4460 = dma.vmem_to_hbm [thread:$0]  %s4458_s24, 32, %s7259_s27, [#allocation5]  }
0x1766   :  { %5584 = dma.done.wait [#allocation5], 32  }
0x1767   :  { %5585 = vsyncadd [#allocation5], 4294967264 }
0x1768   :  { %4464 = vsyncpa [#allocation4], 1 }
0x1769   :  { %4465 = vsyncpa [#allocation7], 1 }
0x176a   :  { %4466 = vsyncpa [#allocation10], 1 }
0x176b   :  { %4467 = vsyncpa [#allocation13], 1 }
0x176c   :  { %4468 = vsyncpa [#allocation16], 1 }
0x176d   :  { %4469 = vsyncpa [#allocation19], 1 }
0x176e   :  { %4470 = vsyncpa [#allocation22], 1 }
0x176f   :  { %4471 = vsyncpa [#allocation25], 1 }
0x1770   :  { %4472 = vsyncpa [#allocation5], 1 }

</bundles_post_ra>
